<compile_context>
chip_gen: v7x
topology: tpu7x:2x2x1
jax: 0.10.0
libtpu: 0.0.40
codegen_flags: <defaults>
</compile_context>

<pallas_src>
import functools
import math

import jax
import jax.numpy as jnp
from jax.experimental import pallas as pl
from jax.experimental.pallas import tpu as pltpu


def _layer_norm(x, gamma, beta, eps=1e-5):
    mu = jnp.mean(x, axis=-1, keepdims=True)
    var = jnp.mean((x - mu) ** 2, axis=-1, keepdims=True)
    return (x - mu) * jax.lax.rsqrt(var + eps) * gamma + beta


def _attention(q, k, v, w_o, b_o, *, compute_dtype, exp_dtype, approx_recip, need_weights):
    """Head-batched scaled-dot-product attention + output projection.

    q: (H, Lq, hd) f32 (scale already folded into the Q weights).
    k, v: (H, S, hd) f32.  w_o: (H, hd, D) compute_dtype.  b_o: (1, D) f32.
    Returns (out (Lq, D) f32, mean-over-heads attn weights (Lq, S) f32 or None).
    """
    cdt = compute_dtype
    # Contract last dims of both operands -> no explicit transpose of K (NT matmul).
    s = jnp.einsum('hle,hse->hls', q.astype(cdt), k.astype(cdt),
                   preferred_element_type=jnp.float32)
    s = s - jnp.max(s, axis=-1, keepdims=True)
    p = jnp.exp(s.astype(exp_dtype))                       # bf16 exp on the bf16 path
    denom = jnp.sum(p.astype(jnp.float32), axis=-1, keepdims=True)
    inv = pl.reciprocal(denom, approx=approx_recip)        # EUP slot when approx=True

    if need_weights:
        # Need normalized probabilities anyway for the returned weights.
        p_norm = p.astype(jnp.float32) * inv
        o = jnp.einsum('hls,hse->hle', p_norm.astype(cdt), v.astype(cdt),
                       preferred_element_type=jnp.float32)
        w = jnp.mean(p_norm, axis=0)
    else:
        # Normalize the (H,Lq,hd) output instead of the (H,Lq,S) probabilities.
        o = jnp.einsum('hls,hse->hle', p.astype(cdt), v.astype(cdt),
                       preferred_element_type=jnp.float32)
        o = o * inv
        w = None

    o = jnp.einsum('hle,hed->hld', o.astype(cdt), w_o,
                   preferred_element_type=jnp.float32)
    out = jnp.sum(o, axis=0) + b_o[0]                      # fold heads (no concat)
    return out, w


def _decoder_kernel(tgtq_ref, tgt_ref, mem_ref,
                    wq1, bq1, wk1, bk1, wv1, bv1, wo1, bo1,
                    wq2, bq2, wk2, bk2, wv2, bv2, wo2, bo2,
                    fw1, fb1, fw2, fb2,
                    g1, be1, g2, be2, g3, be3,
                    out_ref, attn_ref=None, *, compute_dtype):
    cdt = jnp.dtype(compute_dtype)
    is_bf16 = cdt == jnp.dtype(jnp.bfloat16)
    exp_dtype = jnp.bfloat16 if is_bf16 else jnp.float32   # bf16 exp only on bf16 path

    xq = tgtq_ref[0]        # (Lq, D)  query tile of tgt
    xf = tgt_ref[0]         # (L,  D)  full tgt (self-attention keys/values)
    mem = mem_ref[0]        # (S,  D)  memory

    H = wq1.shape[0]

    def proj(x, w, b):
        # Head-batched projection; broadcast kept because Mosaic's dot_general lowering
        # only handles matched-rank batched matmuls (see module-level TODO).
        xb = jnp.broadcast_to(x, (H,) + x.shape)
        return jnp.einsum('hld,hde->hle', xb.astype(cdt), w[...],
                          preferred_element_type=jnp.float32) + b[...]

    # ---- self attention (scale pre-folded into wq1/bq1) ----
    q1 = proj(xq, wq1, bq1)
    k1 = proj(xf, wk1, bk1)
    v1 = proj(xf, wv1, bv1)
    a1, _ = _attention(q1, k1, v1, wo1[...], bo1[...],
                       compute_dtype=cdt, exp_dtype=exp_dtype,
                       approx_recip=is_bf16, need_weights=False)
    x = _layer_norm(xq + a1, g1[0], be1[0])          # dropout1: identity (eval mode)

    # ---- cross attention (Q on tgt tile, K/V on memory) ----
    q2 = proj(x, wq2, bq2)
    k2 = proj(mem, wk2, bk2)
    v2 = proj(mem, wv2, bv2)
    need_w = attn_ref is not None
    a2, w = _attention(q2, k2, v2, wo2[...], bo2[...],
                       compute_dtype=cdt, exp_dtype=exp_dtype,
                       approx_recip=is_bf16, need_weights=need_w)
    x = _layer_norm(x + a2, g2[0], be2[0])           # dropout2: identity (eval mode)

    # ---- feed forward (ReLU) + add & norm ----
    # TODO(synk): `Activation(activation)` assumed to be ReLU; FF dropout identity (eval).
    h = jnp.dot(x.astype(cdt), fw1[...], preferred_element_type=jnp.float32) + fb1[0]
    h = jnp.maximum(h, 0.0)
    f = jnp.dot(h.astype(cdt), fw2[...], preferred_element_type=jnp.float32) + fb2[0]
    x = _layer_norm(x + f, g3[0], be3[0])            # dropout3: identity (eval mode)

    out_ref[0] = x
    if need_w:
        attn_ref[0] = w


# ---------------- wrapper: repack weights head-major (free XLA reshapes) ----------------
def _prepare_params(params, n_heads, matmul_dtype):
    (w_in1, b_in1, wo1, bo1, w_in2, b_in2, wo2, bo2,
     fw1, fb1, fw2, fb2, g1, be1, g2, be2, g3, be3) = params
    D = wo1.shape[0]
    H = n_heads
    hd = D // H
    scale = 1.0 / math.sqrt(hd)

    def heads_cols(w):          # (D, D) -> (H, D, hd): per-head output columns
        return w.reshape(D, H, hd).transpose(1, 0, 2)

    def heads_bias(b):          # (D,) -> (H, 1, hd)
        return b.reshape(H, 1, hd)

    def split_qkv(w_in, b_in):
        return [(heads_cols(w_in[:, i * D:(i + 1) * D]),
                 heads_bias(b_in[0, i * D:(i + 1) * D])) for i in range(3)]

    (wq1, bq1), (wk1, bk1), (wv1, bv1) = split_qkv(w_in1, b_in1)
    (wq2, bq2), (wk2, bk2), (wv2, bv2) = split_qkv(w_in2, b_in2)

    # Fold the 1/sqrt(hd) softmax scale into the Q projections (weights + biases).
    wq1, bq1 = wq1 * scale, bq1 * scale
    wq2, bq2 = wq2 * scale, bq2 * scale

    wo1h = wo1.reshape(H, hd, D)
    wo2h = wo2.reshape(H, hd, D)

    cast = lambda w: w.astype(matmul_dtype)          # biases / LN params stay f32
    return (cast(wq1), bq1, cast(wk1), bk1, cast(wv1), bv1, cast(wo1h), bo1,
            cast(wq2), bq2, cast(wk2), bk2, cast(wv2), bv2, cast(wo2h), bo2,
            cast(fw1), fb1, cast(fw2), fb2,
            g1, be1, g2, be2, g3, be3)


def _vmem_limit_bytes():
    """Per-generation VMEM limit: ~80% of physical, capped at 100 MiB (v5e/v6e)."""
    try:
        info = pltpu.get_tpu_info()
        cap = getattr(info, "vmem_capacity_bytes", 128 * 1024 * 1024)
    except Exception:
        cap = 128 * 1024 * 1024
    return min(int(0.8 * cap), 100 * 1024 * 1024)


def decoder_forward(tgt, memory, params, n_heads, matmul_dtype=jnp.float32,
                    l_block=None, need_weights=True):
    B, L, D = tgt.shape
    S = memory.shape[1]
    kparams = _prepare_params(params, n_heads, matmul_dtype)

    if l_block is None:
        l_block = min(L, 128)
    assert L % l_block == 0, "L must be divisible by l_block"
    n_lt = L // l_block

    in_specs = [
        pl.BlockSpec((1, l_block, D), lambda b, lt: (b, lt, 0)),   # tgt query tile
        pl.BlockSpec((1, L, D), lambda b, lt: (b, 0, 0)),          # full tgt (self K/V)
        pl.BlockSpec((1, S, D), lambda b, lt: (b, 0, 0)),          # memory (cross K/V)
    ] + [pl.BlockSpec(p.shape, lambda b, lt, n=p.ndim: (0,) * n) for p in kparams]
    # Weight blocks have constant index_maps -> fetched once, kept resident across the grid.

    if need_weights:
        out_specs = [pl.BlockSpec((1, l_block, D), lambda b, lt: (b, lt, 0)),
                     pl.BlockSpec((1, l_block, S), lambda b, lt: (b, lt, 0))]
        out_shape = [jax.ShapeDtypeStruct((B, L, D), jnp.float32),
                     jax.ShapeDtypeStruct((B, L, S), jnp.float32)]
    else:
        out_specs = pl.BlockSpec((1, l_block, D), lambda b, lt: (b, lt, 0))
        out_shape = jax.ShapeDtypeStruct((B, L, D), jnp.float32)

    res = pl.pallas_call(
        functools.partial(_decoder_kernel, compute_dtype=matmul_dtype),
        grid=(B, n_lt),
        in_specs=in_specs,
        out_specs=out_specs,
        out_shape=out_shape,
        compiler_params=pltpu.CompilerParams(
            dimension_semantics=("parallel", "parallel"),   # B and L tiles across TCs
            vmem_limit_bytes=_vmem_limit_bytes()),
    )(tgt, tgt, memory, *kparams)

    if need_weights:
        out, w = res
        return out, w
    return res, None


# ---------------- deterministic parameter init (synthetic, xavier-style) ----------------
def _xavier(key, shape):
    fan_in, fan_out = shape[0], shape[1]
    limit = math.sqrt(6.0 / (fan_in + fan_out))
    return jax.random.uniform(key, shape, jnp.float32, -limit, limit)


def init_params(key, d_model, d_ff):
    ks = jax.random.split(key, 8)
    D = d_model
    params = (
        _xavier(ks[0], (D, 3 * D)),            # self-attn in_proj (transposed)
        jnp.zeros((1, 3 * D), jnp.float32),    # self-attn in_proj bias
        _xavier(ks[1], (D, D)),                # self-attn out_proj (transposed)
        jnp.zeros((1, D), jnp.float32),        # self-attn out bias
        _xavier(ks[2], (D, 3 * D)),            # cross-attn in_proj (transposed)
        jnp.zeros((1, 3 * D), jnp.float32),
        _xavier(ks[3], (D, D)),                # cross-attn out_proj (transposed)
        jnp.zeros((1, D), jnp.float32),
        _xavier(ks[4], (D, d_ff)),             # ff linear1 (transposed)
        jnp.zeros((1, d_ff), jnp.float32),
        _xavier(ks[5], (d_ff, D)),             # ff linear2 (transposed)
        jnp.zeros((1, D), jnp.float32),
        jnp.ones((1, D), jnp.float32), jnp.zeros((1, D), jnp.float32),   # norm1
        jnp.ones((1, D), jnp.float32), jnp.zeros((1, D), jnp.float32),   # norm2
        jnp.ones((1, D), jnp.float32), jnp.zeros((1, D), jnp.float32),   # norm3
    )
    return params


# ---------------- pure-JAX reference for verification ----------------
def reference_forward(tgt, memory, params, n_heads):
    (w_in1, b_in1, wo1, bo1, w_in2, b_in2, wo2, bo2,
     fw1, fb1, fw2, fb2, g1, be1, g2, be2, g3, be3) = params
    D = tgt.shape[-1]
    hd = D // n_heads

    def mha(q_in, kv_in, w_in, b_in, w_out, b_out):
        q = q_in @ w_in[:, :D] + b_in[0, :D]
        k = kv_in @ w_in[:, D:2 * D] + b_in[0, D:2 * D]
        v = kv_in @ w_in[:, 2 * D:] + b_in[0, 2 * D:]
        B, L, _ = q.shape
        S = k.shape[1]
        qh = q.reshape(B, L, n_heads, hd).transpose(0, 2, 1, 3) / math.sqrt(hd)
        kh = k.reshape(B, S, n_heads, hd).transpose(0, 2, 1, 3)
        vh = v.reshape(B, S, n_heads, hd).transpose(0, 2, 1, 3)
        s = jnp.einsum("bhld,bhsd->bhls", qh, kh)
        p = jax.nn.softmax(s, axis=-1)
        o = jnp.einsum("bhls,bhsd->bhld", p, vh).transpose(0, 2, 1, 3).reshape(B, L, D)
        return o @ w_out + b_out[0], jnp.mean(p, axis=1)

    def ln(x, g, b):
        mu = x.mean(-1, keepdims=True)
        var = ((x - mu) ** 2).mean(-1, keepdims=True)
        return (x - mu) / jnp.sqrt(var + 1e-5) * g[0] + b[0]

    a1, _ = mha(tgt, tgt, w_in1, b_in1, wo1, bo1)
    x = ln(tgt + a1, g1, be1)
    a2, w = mha(x, memory, w_in2, b_in2, wo2, bo2)
    x = ln(x + a2, g2, be2)
    f = jnp.maximum(x @ fw1 + fb1[0], 0.0) @ fw2 + fb2[0]
    x = ln(x + f, g3, be3)
    return x, w


if __name__ == "__main__":
    B, L, S, D, H, FF = 2, 8, 8, 32, 4, 64

    key = jax.random.PRNGKey(0)
    k_tgt, k_mem, k_par = jax.random.split(key, 3)
    tgt = jax.random.normal(k_tgt, (B, L, D), jnp.float32)
    memory = jax.random.normal(k_mem, (B, S, D), jnp.float32)
    params = init_params(k_par, D, FF)

    ref_out, ref_w = reference_forward(tgt, memory, params, H)

    # f32 MXU path: must match the PyTorch-equivalent reference tightly.
    out, attn_w = decoder_forward(tgt, memory, params, H, matmul_dtype=jnp.float32)
    out = jax.block_until_ready(out)
    attn_w = jax.block_until_ready(attn_w)
    assert out.shape == (B, L, D) and attn_w.shape == (B, L, S)
    assert jnp.allclose(out, ref_out, rtol=1e-4, atol=1e-4), "output mismatch (f32)"
    assert jnp.allclose(attn_w, ref_w, rtol=1e-4, atol=1e-4), "attn weights mismatch (f32)"

    # bf16 MXU path: bf16 weights/operands + bf16 exp + approx reciprocal, f32 accumulation.
    out_bf, attn_bf = decoder_forward(tgt, memory, params, H, matmul_dtype=jnp.bfloat16)
    out_bf = jax.block_until_ready(out_bf)
    attn_bf = jax.block_until_ready(attn_bf)
    assert jnp.allclose(out_bf, ref_out, rtol=5e-2, atol=7e-2), "output mismatch (bf16)"
    assert jnp.allclose(attn_bf, ref_w, rtol=5e-2, atol=7e-2), "attn weights mismatch (bf16)"

    # No-weights fast path (skips the (B,L,S) HBM write and prob normalization).
    out_nw, _ = decoder_forward(tgt, memory, params, H, matmul_dtype=jnp.float32,
                                need_weights=False)
    out_nw = jax.block_until_ready(out_nw)
    assert jnp.allclose(out_nw, ref_out, rtol=1e-4, atol=1e-4), "output mismatch (no-weights)"

    print("KERNEL_OK")
</pallas_src>

<mosaic_0001>
module attributes {stable_mosaic.version = 11 : i64} {
  func.func @_decoder_kernel(%arg0: i32, %arg1: i32, %arg2: memref<1x8x32xf32, #tpu.memory_space<vmem>>, %arg3: memref<1x8x32xf32, #tpu.memory_space<vmem>>, %arg4: memref<1x8x32xf32, #tpu.memory_space<vmem>>, %arg5: memref<4x32x8xf32, #tpu.memory_space<vmem>>, %arg6: memref<4x1x8xf32, #tpu.memory_space<vmem>>, %arg7: memref<4x32x8xf32, #tpu.memory_space<vmem>>, %arg8: memref<4x1x8xf32, #tpu.memory_space<vmem>>, %arg9: memref<4x32x8xf32, #tpu.memory_space<vmem>>, %arg10: memref<4x1x8xf32, #tpu.memory_space<vmem>>, %arg11: memref<4x8x32xf32, #tpu.memory_space<vmem>>, %arg12: memref<1x32xf32, #tpu.memory_space<vmem>>, %arg13: memref<4x32x8xf32, #tpu.memory_space<vmem>>, %arg14: memref<4x1x8xf32, #tpu.memory_space<vmem>>, %arg15: memref<4x32x8xf32, #tpu.memory_space<vmem>>, %arg16: memref<4x1x8xf32, #tpu.memory_space<vmem>>, %arg17: memref<4x32x8xf32, #tpu.memory_space<vmem>>, %arg18: memref<4x1x8xf32, #tpu.memory_space<vmem>>, %arg19: memref<4x8x32xf32, #tpu.memory_space<vmem>>, %arg20: memref<1x32xf32, #tpu.memory_space<vmem>>, %arg21: memref<32x64xf32, #tpu.memory_space<vmem>>, %arg22: memref<1x64xf32, #tpu.memory_space<vmem>>, %arg23: memref<64x32xf32, #tpu.memory_space<vmem>>, %arg24: memref<1x32xf32, #tpu.memory_space<vmem>>, %arg25: memref<1x32xf32, #tpu.memory_space<vmem>>, %arg26: memref<1x32xf32, #tpu.memory_space<vmem>>, %arg27: memref<1x32xf32, #tpu.memory_space<vmem>>, %arg28: memref<1x32xf32, #tpu.memory_space<vmem>>, %arg29: memref<1x32xf32, #tpu.memory_space<vmem>>, %arg30: memref<1x32xf32, #tpu.memory_space<vmem>>, %arg31: memref<1x8x32xf32, #tpu.memory_space<vmem>>, %arg32: memref<1x8x8xf32, #tpu.memory_space<vmem>>) attributes {dimension_semantics = [#tpu.dimension_semantics<parallel>, #tpu.dimension_semantics<parallel>], iteration_bounds = array<i64: 2, 1>, scalar_prefetch = 0 : i64, scratch_operands = 0 : i64, tpu.core_type = #tpu.core_type<tc>, window_params = [{transform_indices = @transform_0, window_bounds = array<i64: 1, 8, 32>}, {transform_indices = @transform_1, window_bounds = array<i64: 1, 8, 32>}, {transform_indices = @transform_2, window_bounds = array<i64: 1, 8, 32>}, {pipeline_mode = #tpu.pipeline_mode<synchronous>, transform_indices = @transform_3, window_bounds = array<i64: 4, 32, 8>}, {pipeline_mode = #tpu.pipeline_mode<synchronous>, transform_indices = @transform_4, window_bounds = array<i64: 4, 1, 8>}, {pipeline_mode = #tpu.pipeline_mode<synchronous>, transform_indices = @transform_5, window_bounds = array<i64: 4, 32, 8>}, {pipeline_mode = #tpu.pipeline_mode<synchronous>, transform_indices = @transform_6, window_bounds = array<i64: 4, 1, 8>}, {pipeline_mode = #tpu.pipeline_mode<synchronous>, transform_indices = @transform_7, window_bounds = array<i64: 4, 32, 8>}, {pipeline_mode = #tpu.pipeline_mode<synchronous>, transform_indices = @transform_8, window_bounds = array<i64: 4, 1, 8>}, {pipeline_mode = #tpu.pipeline_mode<synchronous>, transform_indices = @transform_9, window_bounds = array<i64: 4, 8, 32>}, {pipeline_mode = #tpu.pipeline_mode<synchronous>, transform_indices = @transform_10, window_bounds = array<i64: 1, 32>}, {pipeline_mode = #tpu.pipeline_mode<synchronous>, transform_indices = @transform_11, window_bounds = array<i64: 4, 32, 8>}, {pipeline_mode = #tpu.pipeline_mode<synchronous>, transform_indices = @transform_12, window_bounds = array<i64: 4, 1, 8>}, {pipeline_mode = #tpu.pipeline_mode<synchronous>, transform_indices = @transform_13, window_bounds = array<i64: 4, 32, 8>}, {pipeline_mode = #tpu.pipeline_mode<synchronous>, transform_indices = @transform_14, window_bounds = array<i64: 4, 1, 8>}, {pipeline_mode = #tpu.pipeline_mode<synchronous>, transform_indices = @transform_15, window_bounds = array<i64: 4, 32, 8>}, {pipeline_mode = #tpu.pipeline_mode<synchronous>, transform_indices = @transform_16, window_bounds = array<i64: 4, 1, 8>}, {pipeline_mode = #tpu.pipeline_mode<synchronous>, transform_indices = @transform_17, window_bounds = array<i64: 4, 8, 32>}, {pipeline_mode = #tpu.pipeline_mode<synchronous>, transform_indices = @transform_18, window_bounds = array<i64: 1, 32>}, {pipeline_mode = #tpu.pipeline_mode<synchronous>, transform_indices = @transform_19, window_bounds = array<i64: 32, 64>}, {pipeline_mode = #tpu.pipeline_mode<synchronous>, transform_indices = @transform_20, window_bounds = array<i64: 1, 64>}, {pipeline_mode = #tpu.pipeline_mode<synchronous>, transform_indices = @transform_21, window_bounds = array<i64: 64, 32>}, {pipeline_mode = #tpu.pipeline_mode<synchronous>, transform_indices = @transform_22, window_bounds = array<i64: 1, 32>}, {pipeline_mode = #tpu.pipeline_mode<synchronous>, transform_indices = @transform_23, window_bounds = array<i64: 1, 32>}, {pipeline_mode = #tpu.pipeline_mode<synchronous>, transform_indices = @transform_24, window_bounds = array<i64: 1, 32>}, {pipeline_mode = #tpu.pipeline_mode<synchronous>, transform_indices = @transform_25, window_bounds = array<i64: 1, 32>}, {pipeline_mode = #tpu.pipeline_mode<synchronous>, transform_indices = @transform_26, window_bounds = array<i64: 1, 32>}, {pipeline_mode = #tpu.pipeline_mode<synchronous>, transform_indices = @transform_27, window_bounds = array<i64: 1, 32>}, {pipeline_mode = #tpu.pipeline_mode<synchronous>, transform_indices = @transform_28, window_bounds = array<i64: 1, 32>}, {transform_indices = @transform_29, window_bounds = array<i64: 1, 8, 32>}, {transform_indices = @transform_30, window_bounds = array<i64: 1, 8, 8>}]} {
    %c0 = arith.constant 0 : index
    %c0_0 = arith.constant 0 : index
    %c0_1 = arith.constant 0 : index
    %0 = vector.load %arg2[%c0, %c0_0, %c0_1] : memref<1x8x32xf32, #tpu.memory_space<vmem>>, vector<1x8x32xf32>
    %1 = vector.shape_cast %0 : vector<1x8x32xf32> to vector<8x32xf32>
    %c0_2 = arith.constant 0 : index
    %c0_3 = arith.constant 0 : index
    %c0_4 = arith.constant 0 : index
    %2 = vector.load %arg3[%c0_2, %c0_3, %c0_4] : memref<1x8x32xf32, #tpu.memory_space<vmem>>, vector<1x8x32xf32>
    %3 = vector.shape_cast %2 : vector<1x8x32xf32> to vector<8x32xf32>
    %c0_5 = arith.constant 0 : index
    %c0_6 = arith.constant 0 : index
    %c0_7 = arith.constant 0 : index
    %4 = vector.load %arg4[%c0_5, %c0_6, %c0_7] : memref<1x8x32xf32, #tpu.memory_space<vmem>>, vector<1x8x32xf32>
    %5 = vector.shape_cast %4 : vector<1x8x32xf32> to vector<8x32xf32>
    %6 = vector.shape_cast %1 : vector<8x32xf32> to vector<1x8x32xf32>
    %7 = vector.broadcast %6 : vector<1x8x32xf32> to vector<4x8x32xf32>
    %c0_8 = arith.constant 0 : index
    %c0_9 = arith.constant 0 : index
    %c0_10 = arith.constant 0 : index
    %8 = vector.load %arg5[%c0_8, %c0_9, %c0_10] : memref<4x32x8xf32, #tpu.memory_space<vmem>>, vector<4x32x8xf32>
    "tpu.trace_start"() <{level = 10 : i32, message = "hld,hde->hle"}> : () -> ()
    %cst = arith.constant dense<0.000000e+00> : vector<4x8x8xf32>
    %9 = tpu.matmul %7, %8, %cst {dimension_numbers = #tpu.dot_dimension_numbers<[2], [1], [1], [2], [0, 0, 0, 1, 1, 2], [0], [0]>} : vector<4x8x32xf32>, vector<4x32x8xf32>, vector<4x8x8xf32> -> vector<4x8x8xf32>
    "tpu.trace_stop"() : () -> ()
    %c0_11 = arith.constant 0 : index
    %c0_12 = arith.constant 0 : index
    %c0_13 = arith.constant 0 : index
    %10 = vector.load %arg6[%c0_11, %c0_12, %c0_13] : memref<4x1x8xf32, #tpu.memory_space<vmem>>, vector<4x1x8xf32>
    %11 = vector.broadcast %10 : vector<4x1x8xf32> to vector<4x8x8xf32>
    %12 = arith.addf %9, %11 : vector<4x8x8xf32>
    %13 = vector.shape_cast %3 : vector<8x32xf32> to vector<1x8x32xf32>
    %14 = vector.broadcast %13 : vector<1x8x32xf32> to vector<4x8x32xf32>
    %c0_14 = arith.constant 0 : index
    %c0_15 = arith.constant 0 : index
    %c0_16 = arith.constant 0 : index
    %15 = vector.load %arg7[%c0_14, %c0_15, %c0_16] : memref<4x32x8xf32, #tpu.memory_space<vmem>>, vector<4x32x8xf32>
    "tpu.trace_start"() <{level = 10 : i32, message = "hld,hde->hle"}> : () -> ()
    %cst_17 = arith.constant dense<0.000000e+00> : vector<4x8x8xf32>
    %16 = tpu.matmul %14, %15, %cst_17 {dimension_numbers = #tpu.dot_dimension_numbers<[2], [1], [1], [2], [0, 0, 0, 1, 1, 2], [0], [0]>} : vector<4x8x32xf32>, vector<4x32x8xf32>, vector<4x8x8xf32> -> vector<4x8x8xf32>
    "tpu.trace_stop"() : () -> ()
    %c0_18 = arith.constant 0 : index
    %c0_19 = arith.constant 0 : index
    %c0_20 = arith.constant 0 : index
    %17 = vector.load %arg8[%c0_18, %c0_19, %c0_20] : memref<4x1x8xf32, #tpu.memory_space<vmem>>, vector<4x1x8xf32>
    %18 = vector.broadcast %17 : vector<4x1x8xf32> to vector<4x8x8xf32>
    %19 = arith.addf %16, %18 : vector<4x8x8xf32>
    %20 = vector.shape_cast %3 : vector<8x32xf32> to vector<1x8x32xf32>
    %21 = vector.broadcast %20 : vector<1x8x32xf32> to vector<4x8x32xf32>
    %c0_21 = arith.constant 0 : index
    %c0_22 = arith.constant 0 : index
    %c0_23 = arith.constant 0 : index
    %22 = vector.load %arg9[%c0_21, %c0_22, %c0_23] : memref<4x32x8xf32, #tpu.memory_space<vmem>>, vector<4x32x8xf32>
    "tpu.trace_start"() <{level = 10 : i32, message = "hld,hde->hle"}> : () -> ()
    %cst_24 = arith.constant dense<0.000000e+00> : vector<4x8x8xf32>
    %23 = tpu.matmul %21, %22, %cst_24 {dimension_numbers = #tpu.dot_dimension_numbers<[2], [1], [1], [2], [0, 0, 0, 1, 1, 2], [0], [0]>} : vector<4x8x32xf32>, vector<4x32x8xf32>, vector<4x8x8xf32> -> vector<4x8x8xf32>
    "tpu.trace_stop"() : () -> ()
    %c0_25 = arith.constant 0 : index
    %c0_26 = arith.constant 0 : index
    %c0_27 = arith.constant 0 : index
    %24 = vector.load %arg10[%c0_25, %c0_26, %c0_27] : memref<4x1x8xf32, #tpu.memory_space<vmem>>, vector<4x1x8xf32>
    %25 = vector.broadcast %24 : vector<4x1x8xf32> to vector<4x8x8xf32>
    %26 = arith.addf %23, %25 : vector<4x8x8xf32>
    %c0_28 = arith.constant 0 : index
    %c0_29 = arith.constant 0 : index
    %c0_30 = arith.constant 0 : index
    %27 = vector.load %arg11[%c0_28, %c0_29, %c0_30] : memref<4x8x32xf32, #tpu.memory_space<vmem>>, vector<4x8x32xf32>
    %c0_31 = arith.constant 0 : index
    %c0_32 = arith.constant 0 : index
    %28 = vector.load %arg12[%c0_31, %c0_32] : memref<1x32xf32, #tpu.memory_space<vmem>>, vector<1x32xf32>
    "tpu.trace_start"() <{level = 10 : i32, message = "hle,hse->hls"}> : () -> ()
    %cst_33 = arith.constant dense<0.000000e+00> : vector<4x8x8xf32>
    %29 = tpu.matmul %12, %19, %cst_33 {dimension_numbers = #tpu.dot_dimension_numbers<[2], [2], [1], [1], [0, 0, 0, 1, 1, 1], [0], [0]>} : vector<4x8x8xf32>, vector<4x8x8xf32>, vector<4x8x8xf32> -> vector<4x8x8xf32>
    "tpu.trace_stop"() : () -> ()
    %cst_34 = arith.constant dense<0xFF800000> : vector<4x8xf32>
    %30 = vector.multi_reduction <maximumf>, %29, %cst_34 [2] : vector<4x8x8xf32> to vector<4x8xf32>
    %31 = vector.shape_cast %30 : vector<4x8xf32> to vector<4x8x1xf32>
    %32 = vector.broadcast %31 : vector<4x8x1xf32> to vector<4x8x8xf32>
    %33 = arith.subf %29, %32 : vector<4x8x8xf32>
    %34 = math.exp %33 : vector<4x8x8xf32>
    %cst_35 = arith.constant dense<0.000000e+00> : vector<4x8xf32>
    %35 = vector.multi_reduction <add>, %34, %cst_35 [2] : vector<4x8x8xf32> to vector<4x8xf32>
    %36 = vector.shape_cast %35 : vector<4x8xf32> to vector<4x8x1xf32>
    %37 = tpu.reciprocal %36 : vector<4x8x1xf32> -> vector<4x8x1xf32>
    "tpu.trace_start"() <{level = 10 : i32, message = "hls,hse->hle"}> : () -> ()
    %cst_36 = arith.constant dense<0.000000e+00> : vector<4x8x8xf32>
    %38 = tpu.matmul %34, %26, %cst_36 {dimension_numbers = #tpu.dot_dimension_numbers<[2], [1], [1], [2], [0, 0, 0, 1, 1, 2], [0], [0]>} : vector<4x8x8xf32>, vector<4x8x8xf32>, vector<4x8x8xf32> -> vector<4x8x8xf32>
    "tpu.trace_stop"() : () -> ()
    %39 = vector.broadcast %37 : vector<4x8x1xf32> to vector<4x8x8xf32>
    %40 = arith.mulf %38, %39 : vector<4x8x8xf32>
    "tpu.trace_start"() <{level = 10 : i32, message = "hle,hed->hld"}> : () -> ()
    %cst_37 = arith.constant dense<0.000000e+00> : vector<4x8x32xf32>
    %41 = tpu.matmul %40, %27, %cst_37 {dimension_numbers = #tpu.dot_dimension_numbers<[2], [1], [1], [2], [0, 0, 0, 1, 1, 2], [0], [0]>} : vector<4x8x8xf32>, vector<4x8x32xf32>, vector<4x8x32xf32> -> vector<4x8x32xf32>
    "tpu.trace_stop"() : () -> ()
    %cst_38 = arith.constant dense<0.000000e+00> : vector<8x32xf32>
    %42 = vector.multi_reduction <add>, %41, %cst_38 [0] : vector<4x8x32xf32> to vector<8x32xf32>
    %43 = vector.shape_cast %28 : vector<1x32xf32> to vector<32xf32>
    %44 = vector.shape_cast %43 : vector<32xf32> to vector<1x32xf32>
    %45 = vector.broadcast %44 : vector<1x32xf32> to vector<8x32xf32>
    %46 = arith.addf %42, %45 : vector<8x32xf32>
    %47 = arith.addf %1, %46 : vector<8x32xf32>
    %c0_39 = arith.constant 0 : index
    %c0_40 = arith.constant 0 : index
    %48 = vector.load %arg25[%c0_39, %c0_40] : memref<1x32xf32, #tpu.memory_space<vmem>>, vector<1x32xf32>
    %49 = vector.shape_cast %48 : vector<1x32xf32> to vector<32xf32>
    %c0_41 = arith.constant 0 : index
    %c0_42 = arith.constant 0 : index
    %50 = vector.load %arg26[%c0_41, %c0_42] : memref<1x32xf32, #tpu.memory_space<vmem>>, vector<1x32xf32>
    %51 = vector.shape_cast %50 : vector<1x32xf32> to vector<32xf32>
    %cst_43 = arith.constant dense<0.000000e+00> : vector<8xf32>
    %52 = vector.multi_reduction <add>, %47, %cst_43 [1] : vector<8x32xf32> to vector<8xf32>
    %53 = vector.shape_cast %52 : vector<8xf32> to vector<8x1xf32>
    %cst_44 = arith.constant 3.200000e+01 : f32
    %54 = vector.broadcast %cst_44 : f32 to vector<8x1xf32>
    %55 = arith.divf %53, %54 : vector<8x1xf32>
    %56 = vector.broadcast %55 : vector<8x1xf32> to vector<8x32xf32>
    %57 = arith.subf %47, %56 : vector<8x32xf32>
    %58 = arith.mulf %57, %57 : vector<8x32xf32>
    %cst_45 = arith.constant dense<0.000000e+00> : vector<8xf32>
    %59 = vector.multi_reduction <add>, %58, %cst_45 [1] : vector<8x32xf32> to vector<8xf32>
    %60 = vector.shape_cast %59 : vector<8xf32> to vector<8x1xf32>
    %cst_46 = arith.constant 3.200000e+01 : f32
    %61 = vector.broadcast %cst_46 : f32 to vector<8x1xf32>
    %62 = arith.divf %60, %61 : vector<8x1xf32>
    %63 = vector.broadcast %55 : vector<8x1xf32> to vector<8x32xf32>
    %64 = arith.subf %47, %63 : vector<8x32xf32>
    %cst_47 = arith.constant 9.99999974E-6 : f32
    %65 = vector.broadcast %cst_47 : f32 to vector<8x1xf32>
    %66 = arith.addf %62, %65 : vector<8x1xf32>
    %67 = math.rsqrt %66 : vector<8x1xf32>
    %68 = vector.broadcast %67 : vector<8x1xf32> to vector<8x32xf32>
    %69 = arith.mulf %64, %68 : vector<8x32xf32>
    %70 = vector.shape_cast %49 : vector<32xf32> to vector<1x32xf32>
    %71 = vector.broadcast %70 : vector<1x32xf32> to vector<8x32xf32>
    %72 = arith.mulf %69, %71 : vector<8x32xf32>
    %73 = vector.shape_cast %51 : vector<32xf32> to vector<1x32xf32>
    %74 = vector.broadcast %73 : vector<1x32xf32> to vector<8x32xf32>
    %75 = arith.addf %72, %74 : vector<8x32xf32>
    %76 = vector.shape_cast %75 : vector<8x32xf32> to vector<1x8x32xf32>
    %77 = vector.broadcast %76 : vector<1x8x32xf32> to vector<4x8x32xf32>
    %c0_48 = arith.constant 0 : index
    %c0_49 = arith.constant 0 : index
    %c0_50 = arith.constant 0 : index
    %78 = vector.load %arg13[%c0_48, %c0_49, %c0_50] : memref<4x32x8xf32, #tpu.memory_space<vmem>>, vector<4x32x8xf32>
    "tpu.trace_start"() <{level = 10 : i32, message = "hld,hde->hle"}> : () -> ()
    %cst_51 = arith.constant dense<0.000000e+00> : vector<4x8x8xf32>
    %79 = tpu.matmul %77, %78, %cst_51 {dimension_numbers = #tpu.dot_dimension_numbers<[2], [1], [1], [2], [0, 0, 0, 1, 1, 2], [0], [0]>} : vector<4x8x32xf32>, vector<4x32x8xf32>, vector<4x8x8xf32> -> vector<4x8x8xf32>
    "tpu.trace_stop"() : () -> ()
    %c0_52 = arith.constant 0 : index
    %c0_53 = arith.constant 0 : index
    %c0_54 = arith.constant 0 : index
    %80 = vector.load %arg14[%c0_52, %c0_53, %c0_54] : memref<4x1x8xf32, #tpu.memory_space<vmem>>, vector<4x1x8xf32>
    %81 = vector.broadcast %80 : vector<4x1x8xf32> to vector<4x8x8xf32>
    %82 = arith.addf %79, %81 : vector<4x8x8xf32>
    %83 = vector.shape_cast %5 : vector<8x32xf32> to vector<1x8x32xf32>
    %84 = vector.broadcast %83 : vector<1x8x32xf32> to vector<4x8x32xf32>
    %c0_55 = arith.constant 0 : index
    %c0_56 = arith.constant 0 : index
    %c0_57 = arith.constant 0 : index
    %85 = vector.load %arg15[%c0_55, %c0_56, %c0_57] : memref<4x32x8xf32, #tpu.memory_space<vmem>>, vector<4x32x8xf32>
    "tpu.trace_start"() <{level = 10 : i32, message = "hld,hde->hle"}> : () -> ()
    %cst_58 = arith.constant dense<0.000000e+00> : vector<4x8x8xf32>
    %86 = tpu.matmul %84, %85, %cst_58 {dimension_numbers = #tpu.dot_dimension_numbers<[2], [1], [1], [2], [0, 0, 0, 1, 1, 2], [0], [0]>} : vector<4x8x32xf32>, vector<4x32x8xf32>, vector<4x8x8xf32> -> vector<4x8x8xf32>
    "tpu.trace_stop"() : () -> ()
    %c0_59 = arith.constant 0 : index
    %c0_60 = arith.constant 0 : index
    %c0_61 = arith.constant 0 : index
    %87 = vector.load %arg16[%c0_59, %c0_60, %c0_61] : memref<4x1x8xf32, #tpu.memory_space<vmem>>, vector<4x1x8xf32>
    %88 = vector.broadcast %87 : vector<4x1x8xf32> to vector<4x8x8xf32>
    %89 = arith.addf %86, %88 : vector<4x8x8xf32>
    %90 = vector.shape_cast %5 : vector<8x32xf32> to vector<1x8x32xf32>
    %91 = vector.broadcast %90 : vector<1x8x32xf32> to vector<4x8x32xf32>
    %c0_62 = arith.constant 0 : index
    %c0_63 = arith.constant 0 : index
    %c0_64 = arith.constant 0 : index
    %92 = vector.load %arg17[%c0_62, %c0_63, %c0_64] : memref<4x32x8xf32, #tpu.memory_space<vmem>>, vector<4x32x8xf32>
    "tpu.trace_start"() <{level = 10 : i32, message = "hld,hde->hle"}> : () -> ()
    %cst_65 = arith.constant dense<0.000000e+00> : vector<4x8x8xf32>
    %93 = tpu.matmul %91, %92, %cst_65 {dimension_numbers = #tpu.dot_dimension_numbers<[2], [1], [1], [2], [0, 0, 0, 1, 1, 2], [0], [0]>} : vector<4x8x32xf32>, vector<4x32x8xf32>, vector<4x8x8xf32> -> vector<4x8x8xf32>
    "tpu.trace_stop"() : () -> ()
    %c0_66 = arith.constant 0 : index
    %c0_67 = arith.constant 0 : index
    %c0_68 = arith.constant 0 : index
    %94 = vector.load %arg18[%c0_66, %c0_67, %c0_68] : memref<4x1x8xf32, #tpu.memory_space<vmem>>, vector<4x1x8xf32>
    %95 = vector.broadcast %94 : vector<4x1x8xf32> to vector<4x8x8xf32>
    %96 = arith.addf %93, %95 : vector<4x8x8xf32>
    %c0_69 = arith.constant 0 : index
    %c0_70 = arith.constant 0 : index
    %c0_71 = arith.constant 0 : index
    %97 = vector.load %arg19[%c0_69, %c0_70, %c0_71] : memref<4x8x32xf32, #tpu.memory_space<vmem>>, vector<4x8x32xf32>
    %c0_72 = arith.constant 0 : index
    %c0_73 = arith.constant 0 : index
    %98 = vector.load %arg20[%c0_72, %c0_73] : memref<1x32xf32, #tpu.memory_space<vmem>>, vector<1x32xf32>
    "tpu.trace_start"() <{level = 10 : i32, message = "hle,hse->hls"}> : () -> ()
    %cst_74 = arith.constant dense<0.000000e+00> : vector<4x8x8xf32>
    %99 = tpu.matmul %82, %89, %cst_74 {dimension_numbers = #tpu.dot_dimension_numbers<[2], [2], [1], [1], [0, 0, 0, 1, 1, 1], [0], [0]>} : vector<4x8x8xf32>, vector<4x8x8xf32>, vector<4x8x8xf32> -> vector<4x8x8xf32>
    "tpu.trace_stop"() : () -> ()
    %cst_75 = arith.constant dense<0xFF800000> : vector<4x8xf32>
    %100 = vector.multi_reduction <maximumf>, %99, %cst_75 [2] : vector<4x8x8xf32> to vector<4x8xf32>
    %101 = vector.shape_cast %100 : vector<4x8xf32> to vector<4x8x1xf32>
    %102 = vector.broadcast %101 : vector<4x8x1xf32> to vector<4x8x8xf32>
    %103 = arith.subf %99, %102 : vector<4x8x8xf32>
    %104 = math.exp %103 : vector<4x8x8xf32>
    %cst_76 = arith.constant dense<0.000000e+00> : vector<4x8xf32>
    %105 = vector.multi_reduction <add>, %104, %cst_76 [2] : vector<4x8x8xf32> to vector<4x8xf32>
    %106 = vector.shape_cast %105 : vector<4x8xf32> to vector<4x8x1xf32>
    %107 = tpu.reciprocal %106 : vector<4x8x1xf32> -> vector<4x8x1xf32>
    %108 = vector.broadcast %107 : vector<4x8x1xf32> to vector<4x8x8xf32>
    %109 = arith.mulf %104, %108 : vector<4x8x8xf32>
    "tpu.trace_start"() <{level = 10 : i32, message = "hls,hse->hle"}> : () -> ()
    %cst_77 = arith.constant dense<0.000000e+00> : vector<4x8x8xf32>
    %110 = tpu.matmul %109, %96, %cst_77 {dimension_numbers = #tpu.dot_dimension_numbers<[2], [1], [1], [2], [0, 0, 0, 1, 1, 2], [0], [0]>} : vector<4x8x8xf32>, vector<4x8x8xf32>, vector<4x8x8xf32> -> vector<4x8x8xf32>
    "tpu.trace_stop"() : () -> ()
    %cst_78 = arith.constant dense<0.000000e+00> : vector<8x8xf32>
    %111 = vector.multi_reduction <add>, %109, %cst_78 [0] : vector<4x8x8xf32> to vector<8x8xf32>
    %cst_79 = arith.constant 4.000000e+00 : f32
    %112 = vector.broadcast %cst_79 : f32 to vector<8x8xf32>
    %113 = arith.divf %111, %112 : vector<8x8xf32>
    "tpu.trace_start"() <{level = 10 : i32, message = "hle,hed->hld"}> : () -> ()
    %cst_80 = arith.constant dense<0.000000e+00> : vector<4x8x32xf32>
    %114 = tpu.matmul %110, %97, %cst_80 {dimension_numbers = #tpu.dot_dimension_numbers<[2], [1], [1], [2], [0, 0, 0, 1, 1, 2], [0], [0]>} : vector<4x8x8xf32>, vector<4x8x32xf32>, vector<4x8x32xf32> -> vector<4x8x32xf32>
    "tpu.trace_stop"() : () -> ()
    %cst_81 = arith.constant dense<0.000000e+00> : vector<8x32xf32>
    %115 = vector.multi_reduction <add>, %114, %cst_81 [0] : vector<4x8x32xf32> to vector<8x32xf32>
    %116 = vector.shape_cast %98 : vector<1x32xf32> to vector<32xf32>
    %117 = vector.shape_cast %116 : vector<32xf32> to vector<1x32xf32>
    %118 = vector.broadcast %117 : vector<1x32xf32> to vector<8x32xf32>
    %119 = arith.addf %115, %118 : vector<8x32xf32>
    %120 = arith.addf %75, %119 : vector<8x32xf32>
    %c0_82 = arith.constant 0 : index
    %c0_83 = arith.constant 0 : index
    %121 = vector.load %arg27[%c0_82, %c0_83] : memref<1x32xf32, #tpu.memory_space<vmem>>, vector<1x32xf32>
    %122 = vector.shape_cast %121 : vector<1x32xf32> to vector<32xf32>
    %c0_84 = arith.constant 0 : index
    %c0_85 = arith.constant 0 : index
    %123 = vector.load %arg28[%c0_84, %c0_85] : memref<1x32xf32, #tpu.memory_space<vmem>>, vector<1x32xf32>
    %124 = vector.shape_cast %123 : vector<1x32xf32> to vector<32xf32>
    %cst_86 = arith.constant dense<0.000000e+00> : vector<8xf32>
    %125 = vector.multi_reduction <add>, %120, %cst_86 [1] : vector<8x32xf32> to vector<8xf32>
    %126 = vector.shape_cast %125 : vector<8xf32> to vector<8x1xf32>
    %cst_87 = arith.constant 3.200000e+01 : f32
    %127 = vector.broadcast %cst_87 : f32 to vector<8x1xf32>
    %128 = arith.divf %126, %127 : vector<8x1xf32>
    %129 = vector.broadcast %128 : vector<8x1xf32> to vector<8x32xf32>
    %130 = arith.subf %120, %129 : vector<8x32xf32>
    %131 = arith.mulf %130, %130 : vector<8x32xf32>
    %cst_88 = arith.constant dense<0.000000e+00> : vector<8xf32>
    %132 = vector.multi_reduction <add>, %131, %cst_88 [1] : vector<8x32xf32> to vector<8xf32>
    %133 = vector.shape_cast %132 : vector<8xf32> to vector<8x1xf32>
    %cst_89 = arith.constant 3.200000e+01 : f32
    %134 = vector.broadcast %cst_89 : f32 to vector<8x1xf32>
    %135 = arith.divf %133, %134 : vector<8x1xf32>
    %136 = vector.broadcast %128 : vector<8x1xf32> to vector<8x32xf32>
    %137 = arith.subf %120, %136 : vector<8x32xf32>
    %cst_90 = arith.constant 9.99999974E-6 : f32
    %138 = vector.broadcast %cst_90 : f32 to vector<8x1xf32>
    %139 = arith.addf %135, %138 : vector<8x1xf32>
    %140 = math.rsqrt %139 : vector<8x1xf32>
    %141 = vector.broadcast %140 : vector<8x1xf32> to vector<8x32xf32>
    %142 = arith.mulf %137, %141 : vector<8x32xf32>
    %143 = vector.shape_cast %122 : vector<32xf32> to vector<1x32xf32>
    %144 = vector.broadcast %143 : vector<1x32xf32> to vector<8x32xf32>
    %145 = arith.mulf %142, %144 : vector<8x32xf32>
    %146 = vector.shape_cast %124 : vector<32xf32> to vector<1x32xf32>
    %147 = vector.broadcast %146 : vector<1x32xf32> to vector<8x32xf32>
    %148 = arith.addf %145, %147 : vector<8x32xf32>
    %c0_91 = arith.constant 0 : index
    %c0_92 = arith.constant 0 : index
    %149 = vector.load %arg21[%c0_91, %c0_92] : memref<32x64xf32, #tpu.memory_space<vmem>>, vector<32x64xf32>
    %cst_93 = arith.constant dense<0.000000e+00> : vector<8x64xf32>
    %150 = tpu.matmul %148, %149, %cst_93 {dimension_numbers = #tpu.dot_dimension_numbers<[1], [0], [0], [1], [0, 0, 1, 1], [], []>} : vector<8x32xf32>, vector<32x64xf32>, vector<8x64xf32> -> vector<8x64xf32>
    %c0_94 = arith.constant 0 : index
    %c0_95 = arith.constant 0 : index
    %151 = vector.load %arg22[%c0_94, %c0_95] : memref<1x64xf32, #tpu.memory_space<vmem>>, vector<1x64xf32>
    %152 = vector.shape_cast %151 : vector<1x64xf32> to vector<64xf32>
    %153 = vector.shape_cast %152 : vector<64xf32> to vector<1x64xf32>
    %154 = vector.broadcast %153 : vector<1x64xf32> to vector<8x64xf32>
    %155 = arith.addf %150, %154 : vector<8x64xf32>
    %cst_96 = arith.constant 0.000000e+00 : f32
    %156 = vector.broadcast %cst_96 : f32 to vector<8x64xf32>
    %157 = arith.maximumf %155, %156 : vector<8x64xf32>
    %c0_97 = arith.constant 0 : index
    %c0_98 = arith.constant 0 : index
    %158 = vector.load %arg23[%c0_97, %c0_98] : memref<64x32xf32, #tpu.memory_space<vmem>>, vector<64x32xf32>
    %cst_99 = arith.constant dense<0.000000e+00> : vector<8x32xf32>
    %159 = tpu.matmul %157, %158, %cst_99 {dimension_numbers = #tpu.dot_dimension_numbers<[1], [0], [0], [1], [0, 0, 1, 1], [], []>} : vector<8x64xf32>, vector<64x32xf32>, vector<8x32xf32> -> vector<8x32xf32>
    %c0_100 = arith.constant 0 : index
    %c0_101 = arith.constant 0 : index
    %160 = vector.load %arg24[%c0_100, %c0_101] : memref<1x32xf32, #tpu.memory_space<vmem>>, vector<1x32xf32>
    %161 = vector.shape_cast %160 : vector<1x32xf32> to vector<32xf32>
    %162 = vector.shape_cast %161 : vector<32xf32> to vector<1x32xf32>
    %163 = vector.broadcast %162 : vector<1x32xf32> to vector<8x32xf32>
    %164 = arith.addf %159, %163 : vector<8x32xf32>
    %165 = arith.addf %148, %164 : vector<8x32xf32>
    %c0_102 = arith.constant 0 : index
    %c0_103 = arith.constant 0 : index
    %166 = vector.load %arg29[%c0_102, %c0_103] : memref<1x32xf32, #tpu.memory_space<vmem>>, vector<1x32xf32>
    %167 = vector.shape_cast %166 : vector<1x32xf32> to vector<32xf32>
    %c0_104 = arith.constant 0 : index
    %c0_105 = arith.constant 0 : index
    %168 = vector.load %arg30[%c0_104, %c0_105] : memref<1x32xf32, #tpu.memory_space<vmem>>, vector<1x32xf32>
    %169 = vector.shape_cast %168 : vector<1x32xf32> to vector<32xf32>
    %cst_106 = arith.constant dense<0.000000e+00> : vector<8xf32>
    %170 = vector.multi_reduction <add>, %165, %cst_106 [1] : vector<8x32xf32> to vector<8xf32>
    %171 = vector.shape_cast %170 : vector<8xf32> to vector<8x1xf32>
    %cst_107 = arith.constant 3.200000e+01 : f32
    %172 = vector.broadcast %cst_107 : f32 to vector<8x1xf32>
    %173 = arith.divf %171, %172 : vector<8x1xf32>
    %174 = vector.broadcast %173 : vector<8x1xf32> to vector<8x32xf32>
    %175 = arith.subf %165, %174 : vector<8x32xf32>
    %176 = arith.mulf %175, %175 : vector<8x32xf32>
    %cst_108 = arith.constant dense<0.000000e+00> : vector<8xf32>
    %177 = vector.multi_reduction <add>, %176, %cst_108 [1] : vector<8x32xf32> to vector<8xf32>
    %178 = vector.shape_cast %177 : vector<8xf32> to vector<8x1xf32>
    %cst_109 = arith.constant 3.200000e+01 : f32
    %179 = vector.broadcast %cst_109 : f32 to vector<8x1xf32>
    %180 = arith.divf %178, %179 : vector<8x1xf32>
    %181 = vector.broadcast %173 : vector<8x1xf32> to vector<8x32xf32>
    %182 = arith.subf %165, %181 : vector<8x32xf32>
    %cst_110 = arith.constant 9.99999974E-6 : f32
    %183 = vector.broadcast %cst_110 : f32 to vector<8x1xf32>
    %184 = arith.addf %180, %183 : vector<8x1xf32>
    %185 = math.rsqrt %184 : vector<8x1xf32>
    %186 = vector.broadcast %185 : vector<8x1xf32> to vector<8x32xf32>
    %187 = arith.mulf %182, %186 : vector<8x32xf32>
    %188 = vector.shape_cast %167 : vector<32xf32> to vector<1x32xf32>
    %189 = vector.broadcast %188 : vector<1x32xf32> to vector<8x32xf32>
    %190 = arith.mulf %187, %189 : vector<8x32xf32>
    %191 = vector.shape_cast %169 : vector<32xf32> to vector<1x32xf32>
    %192 = vector.broadcast %191 : vector<1x32xf32> to vector<8x32xf32>
    %193 = arith.addf %190, %192 : vector<8x32xf32>
    %c0_111 = arith.constant 0 : index
    %c0_112 = arith.constant 0 : index
    %c0_113 = arith.constant 0 : index
    %194 = vector.load %arg31[%c0_111, %c0_112, %c0_113] : memref<1x8x32xf32, #tpu.memory_space<vmem>>, vector<1x8x32xf32>
    %195 = vector.shape_cast %194 : vector<1x8x32xf32> to vector<8x32xf32>
    %196 = vector.shape_cast %193 : vector<8x32xf32> to vector<1x8x32xf32>
    tpu.vector_store %arg31[%c0_111, %c0_112, %c0_113], %196 {strides = array<i32>} : memref<1x8x32xf32, #tpu.memory_space<vmem>>, vector<1x8x32xf32>,
    %c0_114 = arith.constant 0 : index
    %c0_115 = arith.constant 0 : index
    %c0_116 = arith.constant 0 : index
    %197 = vector.load %arg32[%c0_114, %c0_115, %c0_116] : memref<1x8x8xf32, #tpu.memory_space<vmem>>, vector<1x8x8xf32>
    %198 = vector.shape_cast %197 : vector<1x8x8xf32> to vector<8x8xf32>
    %199 = vector.shape_cast %113 : vector<8x8xf32> to vector<1x8x8xf32>
    tpu.vector_store %arg32[%c0_114, %c0_115, %c0_116], %199 {strides = array<i32>} : memref<1x8x8xf32, #tpu.memory_space<vmem>>, vector<1x8x8xf32>,
    return
  }
  func.func @transform_0(%arg0: i32, %arg1: i32) -> (i32, i32, i32) {
    %c0_i32 = arith.constant 0 : i32
    %c0_i32_0 = arith.constant 0 : i32
    return %arg0, %arg1, %c0_i32 : i32, i32, i32
  }
  func.func @transform_1(%arg0: i32, %arg1: i32) -> (i32, i32, i32) {
    %c0_i32 = arith.constant 0 : i32
    %c0_i32_0 = arith.constant 0 : i32
    %c0_i32_1 = arith.constant 0 : i32
    return %arg0, %c0_i32, %c0_i32_0 : i32, i32, i32
  }
  func.func @transform_2(%arg0: i32, %arg1: i32) -> (i32, i32, i32) {
    %c0_i32 = arith.constant 0 : i32
    %c0_i32_0 = arith.constant 0 : i32
    %c0_i32_1 = arith.constant 0 : i32
    return %arg0, %c0_i32, %c0_i32_0 : i32, i32, i32
  }
  func.func @transform_3(%arg0: i32, %arg1: i32) -> (i32, i32, i32) {
    %c0_i32 = arith.constant 0 : i32
    %c0_i32_0 = arith.constant 0 : i32
    %c0_i32_1 = arith.constant 0 : i32
    %c0_i32_2 = arith.constant 0 : i32
    return %c0_i32, %c0_i32_0, %c0_i32_1 : i32, i32, i32
  }
  func.func @transform_4(%arg0: i32, %arg1: i32) -> (i32, i32, i32) {
    %c0_i32 = arith.constant 0 : i32
    %c0_i32_0 = arith.constant 0 : i32
    %c0_i32_1 = arith.constant 0 : i32
    %c0_i32_2 = arith.constant 0 : i32
    return %c0_i32, %c0_i32_0, %c0_i32_1 : i32, i32, i32
  }
  func.func @transform_5(%arg0: i32, %arg1: i32) -> (i32, i32, i32) {
    %c0_i32 = arith.constant 0 : i32
    %c0_i32_0 = arith.constant 0 : i32
    %c0_i32_1 = arith.constant 0 : i32
    %c0_i32_2 = arith.constant 0 : i32
    return %c0_i32, %c0_i32_0, %c0_i32_1 : i32, i32, i32
  }
  func.func @transform_6(%arg0: i32, %arg1: i32) -> (i32, i32, i32) {
    %c0_i32 = arith.constant 0 : i32
    %c0_i32_0 = arith.constant 0 : i32
    %c0_i32_1 = arith.constant 0 : i32
    %c0_i32_2 = arith.constant 0 : i32
    return %c0_i32, %c0_i32_0, %c0_i32_1 : i32, i32, i32
  }
  func.func @transform_7(%arg0: i32, %arg1: i32) -> (i32, i32, i32) {
    %c0_i32 = arith.constant 0 : i32
    %c0_i32_0 = arith.constant 0 : i32
    %c0_i32_1 = arith.constant 0 : i32
    %c0_i32_2 = arith.constant 0 : i32
    return %c0_i32, %c0_i32_0, %c0_i32_1 : i32, i32, i32
  }
  func.func @transform_8(%arg0: i32, %arg1: i32) -> (i32, i32, i32) {
    %c0_i32 = arith.constant 0 : i32
    %c0_i32_0 = arith.constant 0 : i32
    %c0_i32_1 = arith.constant 0 : i32
    %c0_i32_2 = arith.constant 0 : i32
    return %c0_i32, %c0_i32_0, %c0_i32_1 : i32, i32, i32
  }
  func.func @transform_9(%arg0: i32, %arg1: i32) -> (i32, i32, i32) {
    %c0_i32 = arith.constant 0 : i32
    %c0_i32_0 = arith.constant 0 : i32
    %c0_i32_1 = arith.constant 0 : i32
    %c0_i32_2 = arith.constant 0 : i32
    return %c0_i32, %c0_i32_0, %c0_i32_1 : i32, i32, i32
  }
  func.func @transform_10(%arg0: i32, %arg1: i32) -> (i32, i32) {
    %c0_i32 = arith.constant 0 : i32
    %c0_i32_0 = arith.constant 0 : i32
    %c0_i32_1 = arith.constant 0 : i32
    return %c0_i32, %c0_i32_0 : i32, i32
  }
  func.func @transform_11(%arg0: i32, %arg1: i32) -> (i32, i32, i32) {
    %c0_i32 = arith.constant 0 : i32
    %c0_i32_0 = arith.constant 0 : i32
    %c0_i32_1 = arith.constant 0 : i32
    %c0_i32_2 = arith.constant 0 : i32
    return %c0_i32, %c0_i32_0, %c0_i32_1 : i32, i32, i32
  }
  func.func @transform_12(%arg0: i32, %arg1: i32) -> (i32, i32, i32) {
    %c0_i32 = arith.constant 0 : i32
    %c0_i32_0 = arith.constant 0 : i32
    %c0_i32_1 = arith.constant 0 : i32
    %c0_i32_2 = arith.constant 0 : i32
    return %c0_i32, %c0_i32_0, %c0_i32_1 : i32, i32, i32
  }
  func.func @transform_13(%arg0: i32, %arg1: i32) -> (i32, i32, i32) {
    %c0_i32 = arith.constant 0 : i32
    %c0_i32_0 = arith.constant 0 : i32
    %c0_i32_1 = arith.constant 0 : i32
    %c0_i32_2 = arith.constant 0 : i32
    return %c0_i32, %c0_i32_0, %c0_i32_1 : i32, i32, i32
  }
  func.func @transform_14(%arg0: i32, %arg1: i32) -> (i32, i32, i32) {
    %c0_i32 = arith.constant 0 : i32
    %c0_i32_0 = arith.constant 0 : i32
    %c0_i32_1 = arith.constant 0 : i32
    %c0_i32_2 = arith.constant 0 : i32
    return %c0_i32, %c0_i32_0, %c0_i32_1 : i32, i32, i32
  }
  func.func @transform_15(%arg0: i32, %arg1: i32) -> (i32, i32, i32) {
    %c0_i32 = arith.constant 0 : i32
    %c0_i32_0 = arith.constant 0 : i32
    %c0_i32_1 = arith.constant 0 : i32
    %c0_i32_2 = arith.constant 0 : i32
    return %c0_i32, %c0_i32_0, %c0_i32_1 : i32, i32, i32
  }
  func.func @transform_16(%arg0: i32, %arg1: i32) -> (i32, i32, i32) {
    %c0_i32 = arith.constant 0 : i32
    %c0_i32_0 = arith.constant 0 : i32
    %c0_i32_1 = arith.constant 0 : i32
    %c0_i32_2 = arith.constant 0 : i32
    return %c0_i32, %c0_i32_0, %c0_i32_1 : i32, i32, i32
  }
  func.func @transform_17(%arg0: i32, %arg1: i32) -> (i32, i32, i32) {
    %c0_i32 = arith.constant 0 : i32
    %c0_i32_0 = arith.constant 0 : i32
    %c0_i32_1 = arith.constant 0 : i32
    %c0_i32_2 = arith.constant 0 : i32
    return %c0_i32, %c0_i32_0, %c0_i32_1 : i32, i32, i32
  }
  func.func @transform_18(%arg0: i32, %arg1: i32) -> (i32, i32) {
    %c0_i32 = arith.constant 0 : i32
    %c0_i32_0 = arith.constant 0 : i32
    %c0_i32_1 = arith.constant 0 : i32
    return %c0_i32, %c0_i32_0 : i32, i32
  }
  func.func @transform_19(%arg0: i32, %arg1: i32) -> (i32, i32) {
    %c0_i32 = arith.constant 0 : i32
    %c0_i32_0 = arith.constant 0 : i32
    %c0_i32_1 = arith.constant 0 : i32
    return %c0_i32, %c0_i32_0 : i32, i32
  }
  func.func @transform_20(%arg0: i32, %arg1: i32) -> (i32, i32) {
    %c0_i32 = arith.constant 0 : i32
    %c0_i32_0 = arith.constant 0 : i32
    %c0_i32_1 = arith.constant 0 : i32
    return %c0_i32, %c0_i32_0 : i32, i32
  }
  func.func @transform_21(%arg0: i32, %arg1: i32) -> (i32, i32) {
    %c0_i32 = arith.constant 0 : i32
    %c0_i32_0 = arith.constant 0 : i32
    %c0_i32_1 = arith.constant 0 : i32
    return %c0_i32, %c0_i32_0 : i32, i32
  }
  func.func @transform_22(%arg0: i32, %arg1: i32) -> (i32, i32) {
    %c0_i32 = arith.constant 0 : i32
    %c0_i32_0 = arith.constant 0 : i32
    %c0_i32_1 = arith.constant 0 : i32
    return %c0_i32, %c0_i32_0 : i32, i32
  }
  func.func @transform_23(%arg0: i32, %arg1: i32) -> (i32, i32) {
    %c0_i32 = arith.constant 0 : i32
    %c0_i32_0 = arith.constant 0 : i32
    %c0_i32_1 = arith.constant 0 : i32
    return %c0_i32, %c0_i32_0 : i32, i32
  }
  func.func @transform_24(%arg0: i32, %arg1: i32) -> (i32, i32) {
    %c0_i32 = arith.constant 0 : i32
    %c0_i32_0 = arith.constant 0 : i32
    %c0_i32_1 = arith.constant 0 : i32
    return %c0_i32, %c0_i32_0 : i32, i32
  }
  func.func @transform_25(%arg0: i32, %arg1: i32) -> (i32, i32) {
    %c0_i32 = arith.constant 0 : i32
    %c0_i32_0 = arith.constant 0 : i32
    %c0_i32_1 = arith.constant 0 : i32
    return %c0_i32, %c0_i32_0 : i32, i32
  }
  func.func @transform_26(%arg0: i32, %arg1: i32) -> (i32, i32) {
    %c0_i32 = arith.constant 0 : i32
    %c0_i32_0 = arith.constant 0 : i32
    %c0_i32_1 = arith.constant 0 : i32
    return %c0_i32, %c0_i32_0 : i32, i32
  }
  func.func @transform_27(%arg0: i32, %arg1: i32) -> (i32, i32) {
    %c0_i32 = arith.constant 0 : i32
    %c0_i32_0 = arith.constant 0 : i32
    %c0_i32_1 = arith.constant 0 : i32
    return %c0_i32, %c0_i32_0 : i32, i32
  }
  func.func @transform_28(%arg0: i32, %arg1: i32) -> (i32, i32) {
    %c0_i32 = arith.constant 0 : i32
    %c0_i32_0 = arith.constant 0 : i32
    %c0_i32_1 = arith.constant 0 : i32
    return %c0_i32, %c0_i32_0 : i32, i32
  }
  func.func @transform_29(%arg0: i32, %arg1: i32) -> (i32, i32, i32) {
    %c0_i32 = arith.constant 0 : i32
    %c0_i32_0 = arith.constant 0 : i32
    return %arg0, %arg1, %c0_i32 : i32, i32, i32
  }
  func.func @transform_30(%arg0: i32, %arg1: i32) -> (i32, i32, i32) {
    %c0_i32 = arith.constant 0 : i32
    %c0_i32_0 = arith.constant 0 : i32
    return %arg0, %arg1, %c0_i32 : i32, i32, i32
  }
}

</mosaic_0001>

<bundles_post_ra>
// kernel: tpu_custom_call.1
= control target key start
LH: loop header
LB: loop body
LE: loop exit
PB: predicated region body
PF: predicated region fallthrough
CT: control target
= control target key end

     0   :  { %s8337_s6 = smov 1   ;;  %s8338_s10 = smov 2   ;;  %s9537_s0 = inlined_call_operand.smem [shape: u32[31], index: -1, kind: input, shape index: {}] }
   0x1   :  { %s8413_s5 = sld [smem:[%s9537_s0]]   ;;  %s8339_s14 = smov 3  }
   0x2   :  { %s8418_s9 = sld [smem:[%s9537_s0 + %s8337_s6]]   ;;  %s8340_s18 = smov 4  }
   0x3   :  { %s8423_s13 = sld [smem:[%s9537_s0 + %s8338_s10]]   ;;  %s8341_s22 = smov 5  }
   0x4   :  { %s8428_s17 = sld [smem:[%s9537_s0 + %s8339_s14]]   ;;  %s8342_s26 = smov 6  }
   0x5   :  { %s8433_s21 = sld [smem:[%s9537_s0 + %s8340_s18]]   ;;  %s8343_s30 = smov 7  }
   0x6   :  { %s8438_s25 = sld [smem:[%s9537_s0 + %s8341_s22]]   ;;  %s8344_s4 = smov 8  }
   0x7   :  { %9591 = sst [smem:[#allocation67_spill]] %s8413_s5  ;;  %s8345_s10 = smov 9  }
   0x8   :  { %9592 = sst [smem:[#allocation68_spill]] %s8418_s9  ;;  %s8346_s15 = smov 10  }
   0x9   :  { %9593 = sst [smem:[#allocation69_spill]] %s8423_s13  ;;  %s8347_s20 = smov 11  }
   0xa   :  { %9594 = sst [smem:[#allocation70_spill]] %s8428_s17  ;;  %s8349_s1 = smov 13  }
   0xb   :  { %9595 = sst [smem:[#allocation71_spill]] %s8433_s21  ;;  %s8350_s7 = smov 14  }
   0xc   :  { %9596 = sst [smem:[#allocation72_spill]] %s8438_s25  ;;  %s8352_s22 = smov 16  }
   0xd   :  { %s8443_s29 = sld [smem:[%s9537_s0 + %s8342_s26]]   ;;  %s8348_s26 = smov 12  }
   0xe   :  { %s8448_s3 = sld [smem:[%s9537_s0 + %s8343_s30]]   ;;  %s8353_s28 = smov 17  }
   0xf   :  { %s8453_s8 = sld [smem:[%s9537_s0 + %s8344_s4]]  }
  0x10   :  { %s8458_s14 = sld [smem:[%s9537_s0 + %s8345_s10]]  }
  0x11   :  { %s8463_s19 = sld [smem:[%s9537_s0 + %s8346_s15]]   ;;  %s8351_s15 = smov 15  }
  0x12   :  { %s8468_s24 = sld [smem:[%s9537_s0 + %s8347_s20]]  }
  0x13   :  { %9597 = sst [smem:[#allocation73_spill]] %s8443_s29 }
  0x14   :  { %9598 = sst [smem:[#allocation74_spill]] %s8448_s3 }
  0x15   :  { %9599 = sst [smem:[#allocation75_spill]] %s8453_s8 }
  0x16   :  { %9600 = sst [smem:[#allocation76_spill]] %s8458_s14 }
  0x17   :  { %9601 = sst [smem:[#allocation77_spill]] %s8463_s19 }
  0x18   :  { %9602 = sst [smem:[#allocation78_spill]] %s8468_s24 }
  0x19   :  { %s8473_s30 = sld [smem:[%s9537_s0 + %s8348_s26]]  }
  0x1a   :  { %s8478_s6 = sld [smem:[%s9537_s0 + %s8349_s1]]  }
  0x1b   :  { %s8483_s12 = sld [smem:[%s9537_s0 + %s8350_s7]]   ;;  %s8354_s7 = smov 18  }
  0x1c   :  { %s8488_s20 = sld [smem:[%s9537_s0 + %s8351_s15]]   ;;  %s8355_s15 = smov 19  }
  0x1d   :  { %s8493_s27 = sld [smem:[%s9537_s0 + %s8352_s22]]   ;;  %s8356_s22 = smov 20  }
  0x1e   :  { %s8498_s4 = sld [smem:[%s9537_s0 + %s8353_s28]]   ;;  %s8357_s28 = smov 21  }
  0x1f   :  { %9603 = sst [smem:[#allocation79_spill]] %s8473_s30 }
  0x20   :  { %9604 = sst [smem:[#allocation80_spill]] %s8478_s6 }
  0x21   :  { %9605 = sst [smem:[#allocation81_spill]] %s8483_s12 }
  0x22   :  { %9606 = sst [smem:[#allocation82_spill]] %s8488_s20 }
  0x23   :  { %9607 = sst [smem:[#allocation83_spill]] %s8493_s27 }
  0x24   :  { %9608 = sst [smem:[#allocation84_spill]] %s8498_s4 }
  0x25   :  { %s8503_s13 = sld [smem:[%s9537_s0 + %s8354_s7]]   ;;  %s8358_s7 = smov 22  }
  0x26   :  { %s8508_s5 = sld [smem:[%s9537_s0 + %s8355_s15]]   ;;  %s8359_s15 = smov 23  }
  0x27   :  { %s8513_s27 = sld [smem:[%s9537_s0 + %s8356_s22]]   ;;  %s8360_s22 = smov 24  }
  0x28   :  { %s8518_s12 = sld [smem:[%s9537_s0 + %s8357_s28]]   ;;  %s8361_s28 = smov 25  }
  0x29   :  { %s8528_s30 = sld [smem:[%s9537_s0 + %s8359_s15]]   ;;  %s8363_s15 = smov 27  }
  0x2a   :  { %s8538_s19 = sld [smem:[%s9537_s0 + %s8361_s28]]   ;;  %s8365_s28 = smov 29  }
  0x2b   :  { %9609 = sst [smem:[#allocation85_spill]] %s8503_s13 }
  0x2c   :  { %9610 = sst [smem:[#allocation86_spill]] %s8508_s5 }
  0x2d   :  { %9611 = sst [smem:[#allocation87_spill]] %s8513_s27 }
  0x2e   :  { %9612 = sst [smem:[#allocation88_spill]] %s8518_s12 }
  0x2f   :  { %s8523_s13 = sld [smem:[%s9537_s0 + %s8358_s7]]   ;;  %s8362_s7 = smov 26  }
  0x30   :  { %s8533_s27 = sld [smem:[%s9537_s0 + %s8360_s22]]   ;;  %s8364_s22 = smov 28  }
  0x31   :  { %9615 = sst [smem:[#allocation91_spill]] %s8538_s19 }
  0x32   :  { %s8548_s8 = sld [smem:[%s9537_s0 + %s8363_s15]]  }
  0x33   :  { %s8558_s29 = sld [smem:[%s9537_s0 + %s8365_s28]]  }
  0x35   :  { %9613 = sst [smem:[#allocation89_spill]] %s8523_s13 }
  0x36   :  { %9614 = sst [smem:[#allocation90_spill]] %s8533_s27 }
  0x37   :  { %s8543_s13 = sld [smem:[%s9537_s0 + %s8362_s7]]   ;;  %s8366_s7 = smov 30  }
  0x38   :  { %9617 = sst [smem:[#allocation93_spill]] %s8548_s8 }
  0x39   :  { %s8553_s27 = sld [smem:[%s9537_s0 + %s8364_s22]]  }
  0x3a   :  { %9618 = sst [smem:[#allocation94_spill]] %s8558_s29 }
  0x3d   :  { %9616 = sst [smem:[#allocation92_spill]] %s8543_s13 }
  0x3e   :  { %s8563_s13 = sld [smem:[%s9537_s0 + %s8366_s7]]  }
  0x44   :  { %9619 = sst [smem:[#allocation95_spill]] %s8563_s13 }
  0x45   :  { %67 = vsyncpa [#allocation3], 0 }
  0x46   :  { %69 = vsyncpa [#allocation3 + $0x1], 0 }
  0x47   :  { %70 = vsyncpa [#allocation6], 0 }
  0x48   :  { %72 = vsyncpa [#allocation6 + $0x1], 0 }
  0x49   :  { %73 = vsyncpa [#allocation9], 0 }
  0x4a   :  { %74 = vsyncpa [#allocation12], 0 }
  0x4b   :  { %75 = vsyncpa [#allocation15], 0 }
  0x4c   :  { %76 = vsyncpa [#allocation18], 0 }
  0x4d   :  { %77 = vsyncpa [#allocation21], 0 }
  0x4e   :  { %78 = vsyncpa [#allocation24], 0 }
  0x4f   :  { %79 = vsyncpa [#allocation27], 0 }
  0x50   :  { %80 = vsyncpa [#allocation30], 0 }
  0x51   :  { %81 = vsyncpa [#allocation33], 0 }
  0x52   :  { %82 = vsyncpa [#allocation36], 0 }
  0x53   :  { %83 = vsyncpa [#allocation39], 0 }
  0x54   :  { %84 = vsyncpa [#allocation42], 0 }
  0x55   :  { %85 = vsyncpa [#allocation45], 0 }
  0x56   :  { %86 = vsyncpa [#allocation4], 0 }
  0x57   :  { %88 = vsyncpa [#allocation4 + $0x1], 0 }
  0x58   :  { %89 = vsyncpa [#allocation49], 0 }
  0x59   :  { %91 = vsyncpa [#allocation49 + $0x1], 0  ;;  %s8565_s0 = smov 0   ;;  %s8567_s15 = smov 0  }
  0x5a   :  { %s8569_s16 = smov 0   ;;  %s8571_s18 = smov 0  }
  0x5b   :  { %s8573_s22 = smov 0   ;;  %s8575_s23 = smov 0  }
  0x5c LB: > { %s9620_s21 = sld [smem:[#allocation71_spill]]  ;;  %s9621_s9 = sld [smem:[#allocation68_spill]]  ;;  %s8319_s15 = sphi %s8567_s15, %s9700_s15   ;;  %s8315_s0 = sphi %s8565_s0, %s9699_s0   ;;  %s8335_s23 = sphi %s8575_s23, %s97_s23   ;;  %s8331_s22 = sphi %s8573_s22, %s9703_s22   ;;  %s8327_s18 = sphi %s8571_s18, %s9702_s18   ;;  %s8323_s16 = sphi %s8569_s16, %s9701_s16  }
  0x5d   : > { %s9622_s24 = sld [smem:[#allocation78_spill]]  ;;  %s9623_s20 = sld [smem:[#allocation82_spill]] }
  0x5e   : > { %s9624_s19 = sld [smem:[#allocation91_spill]]  ;;  %s9625_s14 = sld [smem:[#allocation76_spill]] }
  0x5f   : > { %s9626_s12 = sld [smem:[#allocation88_spill]]  ;;  %s9627_s8 = sld [smem:[#allocation93_spill]] }
  0x60   : > { %s9628_s6 = sld [smem:[#allocation80_spill]]  ;;  %s9629_s5 = sld [smem:[#allocation86_spill]] }
  0x61   : > { %s9630_s4 = sld [smem:[#allocation84_spill]]  ;;  %s9631_s3 = sld [smem:[#allocation74_spill]] }
  0x62   : > { %s9632_s25 = sld [smem:[#allocation72_spill]]  ;;  %s9633_s17 = sld [smem:[#allocation70_spill]] }
  0x63   : > { %9634 = sst [smem:[#allocation96_spill]] %s8327_s18  ;;  %s8596_s26 = sadd.s32 4294967295, %s8335_s23  }
  0x64   : > { %p6012_p0 = scmp.ge.s32.totalorder %s8335_s23, 1  ;;  %p9554_p1 = scmp.eq.s32.totalorder %s8596_s26, 0 }
  0x65   : > { %p796_p2 = scmp.lt.s32.totalorder %s8335_s23, 3  ;;  %s8367_s1 = smov [#allocation8]  }
  0x66   : > { %s808_s2 = sshll.u32 %s8367_s1, 4  ;;  %s8368_s10 = smov [#allocation11]   ;;  %s8605_s2 = int_to_ptr.vmem [resolvable:$true] %s808_s2 }
  0x67   : > { %p8601_p3 = pnand %p6012_p0, %p796_p2  ;;  %s834_s11 = sshll.u32 %s8368_s10, 4  ;;  %s8616_s11 = int_to_ptr.vmem [resolvable:$true] %s834_s11 }
  0x68   : > { %s8369_s29 = smov [#allocation14]   ;;  %s7347_s18 = scalar_lea.hbm %s9633_s17, 2048 }
  0x69   : > { %s9635_s28 = scalar_select %p8601_p3, 1, 0 }
  0x6a   : > { %p7048_p4 = pneg %p8601_p3  ;;  %s8618_s13 = sshll.u32 %s8369_s29, 4  ;;  %s861_s13 = int_to_ptr.vmem [resolvable:$true] %s8618_s13 }
  0x6b   : > { %9636 = sst [smem:[#allocation97_spill]] %s9635_s28  ;;  %p7348_p7 = scmp.ne.s32.totalorder %s9633_s17, %s7347_s18 }
  0x6c   : > { %p8612_p6 = pnand %p7048_p4, %p9554_p1  ;;  %p7354_p11 = scmp.lt.u32.totalorder %s7347_s18, %s9633_s17 }
  0x6e   : > { %s9637_s7 = scalar_select %p8612_p6, 1, 0 }
  0x6f   : > { %p8624_p8 = pneg %p8612_p6 }
  0x71   : > { %s9638_s1 = scalar_select %p8624_p8, 1, 0 }
  0x72   : > { %p7350_p9 = pnand %p8624_p8, %p7348_p7 }
  0x74   : > { %p7351_p10 = pneg %p7350_p9 }
  0x76   : > { %p7356_p12 = pnand %p7354_p11, %p7351_p10 }
  0x78   : > { %7359 = shalt.err (!%p7356_p12)
}
  0x79   : > { %s7360_s29 = scalar_lea.vmem %s8605_s2, 2048  ;;  %p7368_p4 = scmp.lt.s32.totalorder %s8605_s2, %s8605_s2 }
  0x7a   : > { %p7361_p13 = scmp.ne.s32.totalorder %s8605_s2, %s7360_s29  ;;  %p7369_p5 = scmp.lt.s32.totalorder %s7360_s29, %s7360_s29 }
  0x7c   : > { %p7363_p0 = pnand %p7361_p13, %p8624_p8  ;;  %p7370_p1 = por %p7369_p5, %p7368_p4 }
  0x7e   : > { %p7364_p2 = pneg %p7363_p0 }
  0x80   : > { %p7371_p3 = pnand %p7370_p1, %p7364_p2 }
  0x82   : > { %7374 = shalt.err (!%p7371_p3)
}
  0x83   : > { %s8370_s10 = smov 128   ;;  %s8371_s18 = smov 8  }
  0x84   : > { %7051 = dma.hbm_to_vmem [thread:$0]  (!%p8612_p6), %s9633_s17, 2048, %s8605_s2, [#allocation9], %s8370_s10, %s8370_s10, %s8371_s18  }
  0x85   : > { %s7375_s28 = scalar_lea.hbm %s9632_s25, 2048 }
  0x86   : > { %p7376_p7 = scmp.ne.s32.totalorder %s9632_s25, %s7375_s28  ;;  %p7382_p3 = scmp.lt.u32.totalorder %s7375_s28, %s9632_s25 }
  0x88   : > { %p7378_p5 = pnand %p7376_p7, %p8624_p8 }
  0x8a   : > { %p7379_p1 = pneg %p7378_p5 }
  0x8c   : > { %p7384_p9 = pnand %p7382_p3, %p7379_p1 }
  0x8e   : > { %7387 = shalt.err (!%p7384_p9)
}
  0x8f   : > { %s7388_s29 = scalar_lea.vmem %s8616_s11, 2048  ;;  %p7396_p13 = scmp.lt.s32.totalorder %s8616_s11, %s8616_s11 }
  0x90   : > { %p7389_p10 = scmp.ne.s32.totalorder %s8616_s11, %s7388_s29  ;;  %p7397_p0 = scmp.lt.s32.totalorder %s7388_s29, %s7388_s29 }
  0x92   : > { %p7391_p11 = pnand %p7389_p10, %p8624_p8  ;;  %p7398_p2 = por %p7397_p0, %p7396_p13 }
  0x94   : > { %p7392_p12 = pneg %p7391_p11 }
  0x96   : > { %p7399_p4 = pnand %p7398_p2, %p7392_p12 }
  0x98   : > { %7402 = shalt.err (!%p7399_p4)
}
  0x99   : > { %7057 = dma.hbm_to_vmem [thread:$0]  (!%p8612_p6), %s9632_s25, 2048, %s8616_s11, [#allocation12], %s8370_s10, %s8370_s10, %s8371_s18  }
  0x9a   : > { %s7403_s28 = scalar_lea.hbm %s9631_s3, 2048 }
  0x9b   : > { %p7404_p7 = scmp.ne.s32.totalorder %s9631_s3, %s7403_s28  ;;  %p7410_p3 = scmp.lt.u32.totalorder %s7403_s28, %s9631_s3 }
  0x9d   : > { %p7406_p5 = pnand %p7404_p7, %p8624_p8 }
  0x9f   : > { %p7407_p1 = pneg %p7406_p5 }
  0xa1   : > { %p7412_p9 = pnand %p7410_p3, %p7407_p1 }
  0xa3   : > { %7415 = shalt.err (!%p7412_p9)
}
  0xa4   : > { %s7416_s2 = scalar_lea.vmem %s861_s13, 2048  ;;  %p7424_p13 = scmp.lt.s32.totalorder %s861_s13, %s861_s13 }
  0xa5   : > { %p7417_p10 = scmp.ne.s32.totalorder %s861_s13, %s7416_s2  ;;  %p7425_p0 = scmp.lt.s32.totalorder %s7416_s2, %s7416_s2 }
  0xa7   : > { %p7419_p11 = pnand %p7417_p10, %p8624_p8  ;;  %p7426_p2 = por %p7425_p0, %p7424_p13 }
  0xa9   : > { %p7420_p12 = pneg %p7419_p11 }
  0xab   : > { %p7427_p4 = pnand %p7426_p2, %p7420_p12 }
  0xad   : > { %7430 = shalt.err (!%p7427_p4)
}
  0xae   : > { %7063 = dma.hbm_to_vmem [thread:$0]  (!%p8612_p6), %s9631_s3, 2048, %s861_s13, [#allocation15], %s8370_s10, %s8370_s10, %s8371_s18  }
  0xaf   : > { %s8372_s11 = smov [#allocation17]   ;;  %s8373_s28 = smov [#allocation20]  }
  0xb0   : > { %s886_s29 = sshll.u32 %s8372_s11, 4  ;;  %s910_s17 = sshll.u32 %s8373_s28, 4  ;;  %s887_s29 = int_to_ptr.vmem [resolvable:$true] %s886_s29  ;;  %s911_s17 = int_to_ptr.vmem [resolvable:$true] %s910_s17 }
  0xb1   : > { %s7431_s2 = scalar_lea.hbm %s9625_s14, 512 }
  0xb2   : > { %p7432_p7 = scmp.ne.s32.totalorder %s9625_s14, %s7431_s2  ;;  %p7438_p3 = scmp.lt.u32.totalorder %s7431_s2, %s9625_s14 }
  0xb4   : > { %p7434_p5 = pnand %p7432_p7, %p8624_p8 }
  0xb6   : > { %p7435_p1 = pneg %p7434_p5 }
  0xb8   : > { %p7440_p9 = pnand %p7438_p3, %p7435_p1 }
  0xba   : > { %7443 = shalt.err (!%p7440_p9)
}
  0xbb   : > { %s7444_s25 = scalar_lea.vmem %s887_s29, 512  ;;  %p7452_p13 = scmp.lt.s32.totalorder %s887_s29, %s887_s29 }
  0xbc   : > { %p7445_p10 = scmp.ne.s32.totalorder %s887_s29, %s7444_s25  ;;  %p7453_p0 = scmp.lt.s32.totalorder %s7444_s25, %s7444_s25 }
  0xbe   : > { %p7447_p11 = pnand %p7445_p10, %p8624_p8  ;;  %p7454_p2 = por %p7453_p0, %p7452_p13 }
  0xc0   : > { %p7448_p12 = pneg %p7447_p11 }
  0xc2   : > { %p7455_p4 = pnand %p7454_p2, %p7448_p12 }
  0xc4   : > { %7458 = shalt.err (!%p7455_p4)
}
  0xc5   : > { %7069 = dma.hbm_to_vmem [thread:$0]  (!%p8612_p6), %s9625_s14, 512, %s887_s29, [#allocation18], %s8370_s10, %s8370_s10, %s8371_s18  }
  0xc6   : > { %s7459_s13 = scalar_lea.hbm %s9622_s24, 2048 }
  0xc7   : > { %p7460_p7 = scmp.ne.s32.totalorder %s9622_s24, %s7459_s13  ;;  %p7466_p3 = scmp.lt.u32.totalorder %s7459_s13, %s9622_s24 }
  0xc9   : > { %p7462_p5 = pnand %p7460_p7, %p8624_p8 }
  0xcb   : > { %p7463_p1 = pneg %p7462_p5 }
  0xcd   : > { %p7468_p9 = pnand %p7466_p3, %p7463_p1 }
  0xcf   : > { %7471 = shalt.err (!%p7468_p9)
}
  0xd0   : > { %s7472_s25 = scalar_lea.vmem %s911_s17, 2048  ;;  %p7480_p13 = scmp.lt.s32.totalorder %s911_s17, %s911_s17 }
  0xd1   : > { %p7473_p10 = scmp.ne.s32.totalorder %s911_s17, %s7472_s25  ;;  %p7481_p0 = scmp.lt.s32.totalorder %s7472_s25, %s7472_s25 }
  0xd3   : > { %p7475_p11 = pnand %p7473_p10, %p8624_p8  ;;  %p7482_p2 = por %p7481_p0, %p7480_p13 }
  0xd5   : > { %p7476_p12 = pneg %p7475_p11 }
  0xd7   : > { %p7483_p4 = pnand %p7482_p2, %p7476_p12 }
  0xd9   : > { %7486 = shalt.err (!%p7483_p4)
}
  0xda   : > { %7075 = dma.hbm_to_vmem [thread:$0]  (!%p8612_p6), %s9622_s24, 2048, %s911_s17, [#allocation21], %s8370_s10, %s8370_s10, %s8371_s18  }
  0xdb   : > { %s8374_s11 = smov [#allocation23]   ;;  %s8375_s28 = smov [#allocation26]  }
  0xdc   : > { %s936_s29 = sshll.u32 %s8374_s11, 4  ;;  %s962_s2 = sshll.u32 %s8375_s28, 4  ;;  %s937_s29 = int_to_ptr.vmem [resolvable:$true] %s936_s29  ;;  %s963_s2 = int_to_ptr.vmem [resolvable:$true] %s962_s2 }
  0xdd   : > { %s7487_s13 = scalar_lea.hbm %s9628_s6, 2048 }
  0xde   : > { %p7488_p7 = scmp.ne.s32.totalorder %s9628_s6, %s7487_s13  ;;  %p7494_p3 = scmp.lt.u32.totalorder %s7487_s13, %s9628_s6 }
  0xe0   : > { %p7490_p5 = pnand %p7488_p7, %p8624_p8 }
  0xe2   : > { %p7491_p1 = pneg %p7490_p5 }
  0xe4   : > { %p7496_p9 = pnand %p7494_p3, %p7491_p1 }
  0xe6   : > { %7499 = shalt.err (!%p7496_p9)
}
  0xe7   : > { %s7500_s25 = scalar_lea.vmem %s937_s29, 2048  ;;  %p7508_p13 = scmp.lt.s32.totalorder %s937_s29, %s937_s29 }
  0xe8   : > { %p7501_p10 = scmp.ne.s32.totalorder %s937_s29, %s7500_s25  ;;  %p7509_p0 = scmp.lt.s32.totalorder %s7500_s25, %s7500_s25 }
  0xea   : > { %p7503_p11 = pnand %p7501_p10, %p8624_p8  ;;  %p7510_p2 = por %p7509_p0, %p7508_p13 }
  0xec   : > { %p7504_p12 = pneg %p7503_p11 }
  0xee   : > { %p7511_p4 = pnand %p7510_p2, %p7504_p12 }
  0xf0   : > { %7514 = shalt.err (!%p7511_p4)
}
  0xf1   : > { %7081 = dma.hbm_to_vmem [thread:$0]  (!%p8612_p6), %s9628_s6, 2048, %s937_s29, [#allocation24], %s8370_s10, %s8370_s10, %s8371_s18  }
  0xf2   : > { %s7515_s17 = scalar_lea.hbm %s9623_s20, 2048 }
  0xf3   : > { %p7516_p7 = scmp.ne.s32.totalorder %s9623_s20, %s7515_s17  ;;  %p7522_p3 = scmp.lt.u32.totalorder %s7515_s17, %s9623_s20 }
  0xf5   : > { %p7518_p5 = pnand %p7516_p7, %p8624_p8 }
  0xf7   : > { %p7519_p1 = pneg %p7518_p5 }
  0xf9   : > { %p7524_p9 = pnand %p7522_p3, %p7519_p1 }
  0xfb   : > { %7527 = shalt.err (!%p7524_p9)
}
  0xfc   : > { %s7528_s11 = scalar_lea.vmem %s963_s2, 2048  ;;  %p7536_p13 = scmp.lt.s32.totalorder %s963_s2, %s963_s2 }
  0xfd   : > { %p7529_p10 = scmp.ne.s32.totalorder %s963_s2, %s7528_s11  ;;  %p7537_p0 = scmp.lt.s32.totalorder %s7528_s11, %s7528_s11 }
  0xff   : > { %p7531_p11 = pnand %p7529_p10, %p8624_p8  ;;  %p7538_p2 = por %p7537_p0, %p7536_p13 }
 0x101   : > { %p7532_p12 = pneg %p7531_p11 }
 0x103   : > { %p7539_p4 = pnand %p7538_p2, %p7532_p12 }
 0x105   : > { %7542 = shalt.err (!%p7539_p4)
}
 0x106   : > { %7087 = dma.hbm_to_vmem [thread:$0]  (!%p8612_p6), %s9623_s20, 2048, %s963_s2, [#allocation27], %s8370_s10, %s8370_s10, %s8371_s18  }
 0x107   : > { %s8376_s29 = smov [#allocation29]   ;;  %s8377_s13 = smov [#allocation32]  }
 0x108   : > { %s988_s28 = sshll.u32 %s8376_s29, 4  ;;  %s1012_s25 = sshll.u32 %s8377_s13, 4  ;;  %s989_s28 = int_to_ptr.vmem [resolvable:$true] %s988_s28  ;;  %s1013_s25 = int_to_ptr.vmem [resolvable:$true] %s1012_s25 }
 0x109   : > { %s7543_s17 = scalar_lea.hbm %s9630_s4, 512 }
 0x10a   : > { %p7544_p7 = scmp.ne.s32.totalorder %s9630_s4, %s7543_s17  ;;  %p7550_p3 = scmp.lt.u32.totalorder %s7543_s17, %s9630_s4 }
 0x10c   : > { %p7546_p5 = pnand %p7544_p7, %p8624_p8 }
 0x10e   : > { %p7547_p1 = pneg %p7546_p5 }
 0x110   : > { %p7552_p9 = pnand %p7550_p3, %p7547_p1 }
 0x112   : > { %7555 = shalt.err (!%p7552_p9)
}
 0x113   : > { %s7556_s11 = scalar_lea.vmem %s989_s28, 512  ;;  %p7564_p13 = scmp.lt.s32.totalorder %s989_s28, %s989_s28 }
 0x114   : > { %p7557_p10 = scmp.ne.s32.totalorder %s989_s28, %s7556_s11  ;;  %p7565_p0 = scmp.lt.s32.totalorder %s7556_s11, %s7556_s11 }
 0x116   : > { %p7559_p11 = pnand %p7557_p10, %p8624_p8  ;;  %p7566_p2 = por %p7565_p0, %p7564_p13 }
 0x118   : > { %p7560_p12 = pneg %p7559_p11 }
 0x11a   : > { %p7567_p4 = pnand %p7566_p2, %p7560_p12 }
 0x11c   : > { %7570 = shalt.err (!%p7567_p4)
}
 0x11d   : > { %7093 = dma.hbm_to_vmem [thread:$0]  (!%p8612_p6), %s9630_s4, 512, %s989_s28, [#allocation30], %s8370_s10, %s8370_s10, %s8371_s18  }
 0x11e   : > { %s7571_s2 = scalar_lea.hbm %s9629_s5, 512 }
 0x11f   : > { %p7572_p7 = scmp.ne.s32.totalorder %s9629_s5, %s7571_s2  ;;  %p7578_p3 = scmp.lt.u32.totalorder %s7571_s2, %s9629_s5 }
 0x121   : > { %p7574_p5 = pnand %p7572_p7, %p8624_p8 }
 0x123   : > { %p7575_p1 = pneg %p7574_p5 }
 0x125   : > { %p7580_p9 = pnand %p7578_p3, %p7575_p1 }
 0x127   : > { %7583 = shalt.err (!%p7580_p9)
}
 0x128   : > { %s7584_s29 = scalar_lea.vmem %s1013_s25, 512  ;;  %p7592_p13 = scmp.lt.s32.totalorder %s1013_s25, %s1013_s25 }
 0x129   : > { %p7585_p10 = scmp.ne.s32.totalorder %s1013_s25, %s7584_s29  ;;  %p7593_p0 = scmp.lt.s32.totalorder %s7584_s29, %s7584_s29 }
 0x12b   : > { %p7587_p11 = pnand %p7585_p10, %p8624_p8  ;;  %p7594_p2 = por %p7593_p0, %p7592_p13 }
 0x12d   : > { %p7588_p12 = pneg %p7587_p11 }
 0x12f   : > { %p7595_p4 = pnand %p7594_p2, %p7588_p12 }
 0x131   : > { %7598 = shalt.err (!%p7595_p4)
}
 0x132   : > { %7099 = dma.hbm_to_vmem [thread:$0]  (!%p8612_p6), %s9629_s5, 512, %s1013_s25, [#allocation33], %s8370_s10, %s8370_s10, %s8371_s18  }
 0x133   : > { %s8378_s28 = smov [#allocation35]   ;;  %s8379_s17 = smov [#allocation38]  }
 0x134   : > { %s1036_s13 = sshll.u32 %s8378_s28, 4  ;;  %s1061_s11 = sshll.u32 %s8379_s17, 4  ;;  %s1037_s13 = int_to_ptr.vmem [resolvable:$true] %s1036_s13  ;;  %s1062_s11 = int_to_ptr.vmem [resolvable:$true] %s1061_s11 }
 0x135   : > { %s7599_s2 = scalar_lea.hbm %s9626_s12, 1024 }
 0x136   : > { %p7600_p7 = scmp.ne.s32.totalorder %s9626_s12, %s7599_s2  ;;  %p7606_p3 = scmp.lt.u32.totalorder %s7599_s2, %s9626_s12 }
 0x138   : > { %p7602_p5 = pnand %p7600_p7, %p8624_p8 }
 0x13a   : > { %p7603_p1 = pneg %p7602_p5 }
 0x13c   : > { %p7608_p9 = pnand %p7606_p3, %p7603_p1 }
 0x13e   : > { %7611 = shalt.err (!%p7608_p9)
}
 0x13f   : > { %s7612_s29 = scalar_lea.vmem %s1037_s13, 1024  ;;  %p7620_p13 = scmp.lt.s32.totalorder %s1037_s13, %s1037_s13 }
 0x140   : > { %p7613_p10 = scmp.ne.s32.totalorder %s1037_s13, %s7612_s29  ;;  %p7621_p0 = scmp.lt.s32.totalorder %s7612_s29, %s7612_s29 }
 0x142   : > { %p7615_p11 = pnand %p7613_p10, %p8624_p8  ;;  %p7622_p2 = por %p7621_p0, %p7620_p13 }
 0x144   : > { %p7616_p12 = pneg %p7615_p11 }
 0x146   : > { %p7623_p4 = pnand %p7622_p2, %p7616_p12 }
 0x148   : > { %7626 = shalt.err (!%p7623_p4)
}
 0x149   : > { %7105 = dma.hbm_to_vmem [thread:$0]  (!%p8612_p6), %s9626_s12, 1024, %s1037_s13, [#allocation36], %s8370_s10, %s8370_s10, %s8371_s18  }
 0x14a   : > { %s7627_s25 = scalar_lea.hbm %s8528_s30, 16 }
 0x14b   : > { %p7628_p7 = scmp.ne.s32.totalorder %s8528_s30, %s7627_s25  ;;  %p7634_p3 = scmp.lt.u32.totalorder %s7627_s25, %s8528_s30 }
 0x14d   : > { %p7630_p5 = pnand %p7628_p7, %p8624_p8 }
 0x14f   : > { %p7631_p1 = pneg %p7630_p5 }
 0x151   : > { %p7636_p9 = pnand %p7634_p3, %p7631_p1 }
 0x153   : > { %7639 = shalt.err (!%p7636_p9)
}
 0x154   : > { %s7640_s28 = scalar_lea.vmem %s1062_s11, 16  ;;  %s7647_s17 = scalar_lea.vmem %s1062_s11, 32 }
 0x155   : > { %p7641_p10 = scmp.ne.s32.totalorder %s1062_s11, %s7640_s28  ;;  %p7648_p13 = scmp.lt.s32.totalorder %s1062_s11, %s1062_s11 }
 0x156   : > { %p7649_p0 = scmp.lt.s32.totalorder %s7647_s17, %s7640_s28 }
 0x157   : > { %p7643_p11 = pnand %p7641_p10, %p8624_p8 }
 0x158   : > { %p7650_p2 = por %p7649_p0, %p7648_p13 }
 0x159   : > { %p7644_p12 = pneg %p7643_p11 }
 0x15b   : > { %p7651_p4 = pnand %p7650_p2, %p7644_p12 }
 0x15d   : > { %7654 = shalt.err (!%p7651_p4)
}
 0x15e   : > { %7111 = dma.hbm_to_vmem [thread:$0]  (!%p8612_p6), %s8528_s30, 16, %s1062_s11, [#allocation39]  }
 0x15f   : > { %s8380_s10 = smov [#allocation41]   ;;  %s8381_s13 = smov [#allocation44]  }
 0x160   : > { %s1083_s18 = sshll.u32 %s8380_s10, 4  ;;  %s1105_s2 = sshll.u32 %s8381_s13, 4  ;;  %s1084_s18 = int_to_ptr.vmem [resolvable:$true] %s1083_s18  ;;  %s1106_s2 = int_to_ptr.vmem [resolvable:$true] %s1105_s2 }
 0x161   : > { %s7655_s29 = scalar_lea.hbm %s9624_s19, 16 }
 0x162   : > { %p7656_p7 = scmp.ne.s32.totalorder %s9624_s19, %s7655_s29  ;;  %p7662_p3 = scmp.lt.u32.totalorder %s7655_s29, %s9624_s19 }
 0x164   : > { %p7658_p5 = pnand %p7656_p7, %p8624_p8 }
 0x166   : > { %p7659_p1 = pneg %p7658_p5 }
 0x168   : > { %p7664_p9 = pnand %p7662_p3, %p7659_p1 }
 0x16a   : > { %7667 = shalt.err (!%p7664_p9)
}
 0x16b   : > { %s7668_s25 = scalar_lea.vmem %s1084_s18, 16  ;;  %s7675_s11 = scalar_lea.vmem %s1084_s18, 32 }
 0x16c   : > { %p7669_p10 = scmp.ne.s32.totalorder %s1084_s18, %s7668_s25  ;;  %p7676_p13 = scmp.lt.s32.totalorder %s1084_s18, %s1084_s18 }
 0x16d   : > { %p7677_p0 = scmp.lt.s32.totalorder %s7675_s11, %s7668_s25 }
 0x16e   : > { %p7671_p11 = pnand %p7669_p10, %p8624_p8 }
 0x16f   : > { %p7678_p2 = por %p7677_p0, %p7676_p13 }
 0x170   : > { %p7672_p12 = pneg %p7671_p11 }
 0x172   : > { %p7679_p4 = pnand %p7678_p2, %p7672_p12 }
 0x174   : > { %7682 = shalt.err (!%p7679_p4)
}
 0x175   : > { %7117 = dma.hbm_to_vmem [thread:$0]  (!%p8612_p6), %s9624_s19, 16, %s1084_s18, [#allocation42]  }
 0x176   : > { %s7683_s28 = scalar_lea.hbm %s9627_s8, 16 }
 0x177   : > { %p7684_p7 = scmp.ne.s32.totalorder %s9627_s8, %s7683_s28  ;;  %p7690_p3 = scmp.lt.u32.totalorder %s7683_s28, %s9627_s8 }
 0x179   : > { %p7686_p5 = pnand %p7684_p7, %p8624_p8 }
 0x17b   : > { %p7687_p1 = pneg %p7686_p5 }
 0x17d   : > { %p7692_p9 = pnand %p7690_p3, %p7687_p1 }
 0x17f   : > { %7695 = shalt.err (!%p7692_p9)
}
 0x180   : > { %s7696_s17 = scalar_lea.vmem %s1106_s2, 16  ;;  %s7703_s10 = scalar_lea.vmem %s1106_s2, 32 }
 0x181   : > { %p7697_p10 = scmp.ne.s32.totalorder %s1106_s2, %s7696_s17  ;;  %p7704_p13 = scmp.lt.s32.totalorder %s1106_s2, %s1106_s2 }
 0x182   : > { %p7705_p0 = scmp.lt.s32.totalorder %s7703_s10, %s7696_s17 }
 0x183   : > { %p7699_p11 = pnand %p7697_p10, %p8624_p8 }
 0x184   : > { %p7706_p2 = por %p7705_p0, %p7704_p13 }
 0x185   : > { %p7700_p12 = pneg %p7699_p11 }
 0x187   : > { %p7707_p4 = pnand %p7706_p2, %p7700_p12 }
 0x189   : > { %7710 = shalt.err (!%p7707_p4)
}
 0x18a   : > { %7123 = dma.hbm_to_vmem [thread:$0]  (!%p8612_p6), %s9627_s8, 16, %s1106_s2, [#allocation45]  }
 0x18b   : > { %s6011_s18 = sadd.s32 4294967294, %s8335_s23   ;;  %s109_s13 = sadd.s32 1, %s8331_s22 }
 0x18c   : > { %s118_s29 = sadd.s32 1, %s8323_s16  ;;  %p111_p7 = scmp.ge.s32.totalorder %s109_s13, 2 }
 0x18d   : > { %p125_p5 = scmp.ne.s32.totalorder %s8323_s16, %s8319_s15  ;;  %p126_p1 = scmp.eq.s32.totalorder %s8335_s23, 0 }
 0x18e   : > { %p131_p3 = scmp.ne.s32.totalorder %s8319_s15, %s8315_s0  ;;  %s9705_s13 = smov (%p111_p7, %s109_s13), 0 }
 0x18f   : > { %p8807_p9 = por %p126_p1, %p125_p5  ;;  %p9640_p10 = scmp.eq.s32.totalorder %s8596_s26, 0 }
 0x190   : > { %s113_s11 = ssub.s32 %s8331_s22, %s9705_s13  ;;  %p755_p12 = scmp.eq.s32.totalorder %s8596_s26, 1 }
 0x191   : > { %p8813_p11 = por %p9640_p10, %p131_p3  ;;  %p116_p13 = scmp.eq.s32.totalorder %s113_s11, 0 }
 0x192   : > { %p761_p0 = scmp.eq.s32.totalorder %s6011_s18, 1  ;;  %p8820_p2 = por %p755_p12, %p125_p5 }
 0x193   : > { %s9641_s2 = scalar_select %p8813_p11, 1, 0 }
 0x194   : > { %s9642_s28 = scalar_select %p8820_p2, 1, 0 }
 0x195   : > { %p7170_p4 = scmp.lt.s32.totalorder %s8335_s23, 2  ;;  %p8828_p7 = por %p761_p0, %p131_p3 }
 0x196   : > { %s8826_s17 = scalar_select %p116_p13, %s8323_s16, %s118_s29  }
 0x197   : > { %s9643_s10 = scalar_select %p8828_p7, 1, 0 }
 0x198   : > { %s9562_s3 = sand.u32 1, %s8323_s16   ;;  %s8838_s5 = sshll.u32 %s8331_s22, 7 }
 0x199   : > { %s8835_s4 = sshll.u32 %s9562_s3, 3  ;;  %p8842_p5 = pnand %p7170_p4, %p8807_p9 }
 0x19a   : > { %s1146_s29 = sand.u32 1, %s8335_s23   ;;  %s8849_s11 = scalar_lea.hbm %s9621_s9, %s8838_s5 }
 0x19b   : > { %s9644_s18 = scalar_select %p8842_p5, 1, 0 }
 0x19c   : > { %s1150_s3 = scalar_lea.vmem [#allocation5], %s8835_s4  ;;  %s8382_s8 = smov [#allocation10]  }
 0x19d   : > { %s1157_s6 = sshll.u32 %s1150_s3, 4  ;;  %s8854_s25 = sshll.u32 %s8382_s8, 4  ;;  %s8852_s6 = int_to_ptr.vmem [resolvable:$true] %s1157_s6  ;;  %s822_s25 = int_to_ptr.vmem [resolvable:$true] %s8854_s25 }
 0x19e   : > { %s8856_s12 = scalar_lea.sflag [#allocation6], %s1146_s29  ;;  %s7711_s14 = scalar_lea.hbm %s8849_s11, 128 }
 0x19f   : > { %p7712_p1 = scmp.ne.s32.totalorder %s8849_s11, %s7711_s14  ;;  %p8862_p3 = pneg %p8842_p5 }
 0x1a0   : > { %s7716_s20 = scalar_lea.hbm %s9621_s9, 256  ;;  %p7717_p12 = scmp.lt.u32.totalorder %s8849_s11, %s9621_s9 }
 0x1a1   : > { %s9645_s19 = scalar_select %p8862_p3, 1, 0 }
 0x1a2   : > { %p7714_p9 = pnand %p8862_p3, %p7712_p1  ;;  %p7718_p13 = scmp.lt.u32.totalorder %s7716_s20, %s7711_s14 }
 0x1a3   : > { %p7720_p4 = scmp.lt.u32.totalorder %s7711_s14, %s8849_s11 }
 0x1a4   : > { %p7715_p10 = pneg %p7714_p9  ;;  %p7719_p0 = por %p7718_p13, %p7717_p12 }
 0x1a6   : > { %p7721_p7 = por %p7720_p4, %p7719_p0 }
 0x1a8   : > { %p7722_p2 = pnand %p7721_p7, %p7715_p10 }
 0x1aa   : > { %7725 = shalt.err (!%p7722_p2)
}
 0x1ab   : > { %s7726_s3 = scalar_lea.vmem %s8852_s6, 128  ;;  %s8383_s8 = smov [#allocation5]  }
 0x1ac   : > { %p7727_p11 = scmp.ne.s32.totalorder %s8852_s6, %s7726_s3  ;;  %s7731_s29 = sshll.u32 %s8383_s8, 4  ;;  %s7732_s29 = int_to_ptr.vmem [resolvable:$false] %s7731_s29 }
 0x1ad   : > { %s7733_s24 = scalar_lea.vmem %s7732_s29, 256  ;;  %p7734_p1 = scmp.lt.s32.totalorder %s8852_s6, %s7732_s29 }
 0x1ae   : > { %p7729_p6 = pnand %p7727_p11, %p8862_p3  ;;  %p7735_p9 = scmp.lt.s32.totalorder %s7733_s24, %s7726_s3 }
 0x1b0   : > { %p7730_p8 = pneg %p7729_p6  ;;  %p7736_p12 = por %p7735_p9, %p7734_p1 }
 0x1b2   : > { %p7737_p13 = pnand %p7736_p12, %p7730_p8 }
 0x1b4   : > { %7740 = shalt.err (!%p7737_p13)
}
 0x1b5   : > { %7133 = dma.hbm_to_vmem [thread:$0]  (!%p8842_p5), %s8849_s11, 128, %s8852_s6, %s8856_s12  }
 0x1b6   : > { %s7741_s14 = scalar_lea.hbm %s9620_s21, 64  ;;  %p9646_p11 = scmp.ne.s32.totalorder %s9638_s1, 0 }
 0x1b7   : > { %p7742_p6 = scmp.ne.s32.totalorder %s9620_s21, %s7741_s14  ;;  %p7748_p10 = scmp.lt.u32.totalorder %s7741_s14, %s9620_s21 }
 0x1b9   : > { %p7744_p2 = pnand %p7742_p6, %p9646_p11 }
 0x1bb   : > { %p7745_p7 = pneg %p7744_p2 }
 0x1bd   : > { %p7750_p8 = pnand %p7748_p10, %p7745_p7 }
 0x1bf   : > { %7753 = shalt.err (!%p7750_p8)
}
 0x1c0   : > { %s7754_s24 = scalar_lea.vmem %s822_s25, 64  ;;  %p7762_p9 = scmp.lt.s32.totalorder %s822_s25, %s822_s25 }
 0x1c1   : > { %p7755_p0 = scmp.ne.s32.totalorder %s822_s25, %s7754_s24  ;;  %p7763_p12 = scmp.lt.s32.totalorder %s7754_s24, %s7754_s24 }
 0x1c3   : > { %p7757_p4 = pnand %p7755_p0, %p9646_p11  ;;  %p7764_p13 = por %p7763_p12, %p7762_p9 }
 0x1c5   : > { %p7758_p1 = pneg %p7757_p4 }
 0x1c7   : > { %p7765_p3 = pnand %p7764_p13, %p7758_p1 }
 0x1c9   : > { %7768 = shalt.err (!%p7765_p3)
}
 0x1ca   : > { %s8384_s6 = smov 16   ;;  %s9647_s20 = sld [smem:[#allocation73_spill]] }
 0x1cb   : > { %s8385_s11 = smov 1   ;;  %p9648_p6 = scmp.ne.s32.totalorder %s9637_s7, 0 }
 0x1cc   : > { %s8386_s3 = smov [#allocation13]   ;;  %s8387_s29 = smov [#allocation16]  }
 0x1cd   : > { %7054 = dma.hbm_to_vmem [thread:$0]  (!%p9648_p6), %s9620_s21, 64, %s822_s25, [#allocation9], %s8384_s6, %s8384_s6, %s8385_s11  }
 0x1ce   : > { %s847_s8 = sshll.u32 %s8386_s3, 4  ;;  %s873_s14 = sshll.u32 %s8387_s29, 4  ;;  %s848_s8 = int_to_ptr.vmem [resolvable:$true] %s847_s8  ;;  %s874_s14 = int_to_ptr.vmem [resolvable:$true] %s873_s14 }
 0x1d0   : > { %s7769_s24 = scalar_lea.hbm %s9647_s20, 64 }
 0x1d1   : > { %p7770_p3 = scmp.ne.s32.totalorder %s9647_s20, %s7769_s24  ;;  %p7776_p10 = scmp.lt.u32.totalorder %s7769_s24, %s9647_s20 }
 0x1d3   : > { %p7772_p2 = pnand %p7770_p3, %p9646_p11 }
 0x1d5   : > { %p7773_p7 = pneg %p7772_p2 }
 0x1d7   : > { %p7778_p8 = pnand %p7776_p10, %p7773_p7 }
 0x1d9   : > { %7781 = shalt.err (!%p7778_p8)
}
 0x1da   : > { %s7782_s9 = scalar_lea.vmem %s848_s8, 64  ;;  %p7790_p9 = scmp.lt.s32.totalorder %s848_s8, %s848_s8 }
 0x1db   : > { %p7783_p0 = scmp.ne.s32.totalorder %s848_s8, %s7782_s9  ;;  %p7791_p12 = scmp.lt.s32.totalorder %s7782_s9, %s7782_s9 }
 0x1dd   : > { %p7785_p4 = pnand %p7783_p0, %p9646_p11  ;;  %p7792_p13 = por %p7791_p12, %p7790_p9 }
 0x1df   : > { %p7786_p1 = pneg %p7785_p4 }
 0x1e1   : > { %p7793_p5 = pnand %p7792_p13, %p7786_p1 }
 0x1e3   : > { %7796 = shalt.err (!%p7793_p5)
}
 0x1e4   : > { %s9649_s25 = sld [smem:[#allocation75_spill]] }
 0x1e5   : > { %7060 = dma.hbm_to_vmem [thread:$0]  (!%p9648_p6), %s9647_s20, 64, %s848_s8, [#allocation12], %s8384_s6, %s8384_s6, %s8385_s11  }
 0x1ea   : > { %s7797_s3 = scalar_lea.hbm %s9649_s25, 64 }
 0x1eb   : > { %p7798_p3 = scmp.ne.s32.totalorder %s9649_s25, %s7797_s3  ;;  %p7804_p10 = scmp.lt.u32.totalorder %s7797_s3, %s9649_s25 }
 0x1ed   : > { %p7800_p2 = pnand %p7798_p3, %p9646_p11 }
 0x1ef   : > { %p7801_p7 = pneg %p7800_p2 }
 0x1f1   : > { %p7806_p8 = pnand %p7804_p10, %p7801_p7 }
 0x1f3   : > { %7809 = shalt.err (!%p7806_p8)
}
 0x1f4   : > { %s7810_s9 = scalar_lea.vmem %s874_s14, 64  ;;  %p7818_p1 = scmp.lt.s32.totalorder %s874_s14, %s874_s14 }
 0x1f5   : > { %p7811_p5 = scmp.ne.s32.totalorder %s874_s14, %s7810_s9  ;;  %p7819_p9 = scmp.lt.s32.totalorder %s7810_s9, %s7810_s9 }
 0x1f7   : > { %p7813_p0 = pnand %p7811_p5, %p9646_p11  ;;  %p7820_p12 = por %p7819_p9, %p7818_p1 }
 0x1f9   : > { %p7814_p4 = pneg %p7813_p0 }
 0x1fb   : > { %p7821_p13 = pnand %p7820_p12, %p7814_p4 }
 0x1fd   : > { %7824 = shalt.err (!%p7821_p13)
}
 0x1fe   : > { %s9650_s8 = sld [smem:[#allocation77_spill]]  ;;  %s8388_s29 = smov [#allocation19]  }
 0x1ff   : > { %7066 = dma.hbm_to_vmem [thread:$0]  (!%p9648_p6), %s9649_s25, 64, %s874_s14, [#allocation15], %s8384_s6, %s8384_s6, %s8385_s11  }
 0x200   : > { %s900_s24 = sshll.u32 %s8388_s29, 4  ;;  %s8389_s3 = smov [#allocation22]   ;;  %s901_s24 = int_to_ptr.vmem [resolvable:$true] %s900_s24 }
 0x201   : > { %s923_s20 = sshll.u32 %s8389_s3, 4  ;;  %s924_s20 = int_to_ptr.vmem [resolvable:$true] %s923_s20 }
 0x204   : > { %s7825_s9 = scalar_lea.hbm %s9650_s8, 16 }
 0x205   : > { %p7826_p3 = scmp.ne.s32.totalorder %s9650_s8, %s7825_s9  ;;  %p7832_p10 = scmp.lt.u32.totalorder %s7825_s9, %s9650_s8 }
 0x207   : > { %p7828_p2 = pnand %p7826_p3, %p9646_p11 }
 0x209   : > { %p7829_p7 = pneg %p7828_p2 }
 0x20b   : > { %p7834_p8 = pnand %p7832_p10, %p7829_p7 }
 0x20d   : > { %7837 = shalt.err (!%p7834_p8)
}
 0x20e   : > { %s7838_s21 = scalar_lea.vmem %s901_s24, 16  ;;  %s7845_s14 = scalar_lea.vmem %s901_s24, 32 }
 0x20f   : > { %p7839_p5 = scmp.ne.s32.totalorder %s901_s24, %s7838_s21  ;;  %p7846_p1 = scmp.lt.s32.totalorder %s901_s24, %s901_s24 }
 0x210   : > { %p7847_p9 = scmp.lt.s32.totalorder %s7845_s14, %s7838_s21 }
 0x211   : > { %p7841_p0 = pnand %p7839_p5, %p9646_p11 }
 0x212   : > { %p7848_p12 = por %p7847_p9, %p7846_p1 }
 0x213   : > { %p7842_p4 = pneg %p7841_p0 }
 0x215   : > { %p7849_p13 = pnand %p7848_p12, %p7842_p4 }
 0x217   : > { %7852 = shalt.err (!%p7849_p13)
}
 0x218   : > { %s9651_s29 = sld [smem:[#allocation79_spill]] }
 0x219   : > { %7072 = dma.hbm_to_vmem [thread:$0]  (!%p9648_p6), %s9650_s8, 16, %s901_s24, [#allocation18]  }
 0x21e   : > { %s7853_s3 = scalar_lea.hbm %s9651_s29, 64 }
 0x21f   : > { %p7854_p3 = scmp.ne.s32.totalorder %s9651_s29, %s7853_s3  ;;  %p7860_p10 = scmp.lt.u32.totalorder %s7853_s3, %s9651_s29 }
 0x221   : > { %p7856_p2 = pnand %p7854_p3, %p9646_p11 }
 0x223   : > { %p7857_p7 = pneg %p7856_p2 }
 0x225   : > { %p7862_p8 = pnand %p7860_p10, %p7857_p7 }
 0x227   : > { %7865 = shalt.err (!%p7862_p8)
}
 0x228   : > { %s7866_s21 = scalar_lea.vmem %s924_s20, 64  ;;  %p7874_p1 = scmp.lt.s32.totalorder %s924_s20, %s924_s20 }
 0x229   : > { %p7867_p5 = scmp.ne.s32.totalorder %s924_s20, %s7866_s21  ;;  %p7875_p9 = scmp.lt.s32.totalorder %s7866_s21, %s7866_s21 }
 0x22b   : > { %p7869_p0 = pnand %p7867_p5, %p9646_p11  ;;  %p7876_p12 = por %p7875_p9, %p7874_p1 }
 0x22d   : > { %p7870_p4 = pneg %p7869_p0 }
 0x22f   : > { %p7877_p13 = pnand %p7876_p12, %p7870_p4 }
 0x231   : > { %7880 = shalt.err (!%p7877_p13)
}
 0x232   : > { %s9652_s24 = sld [smem:[#allocation81_spill]]  ;;  %s8390_s9 = smov [#allocation25]  }
 0x233   : > { %7078 = dma.hbm_to_vmem [thread:$0]  (!%p9648_p6), %s9651_s29, 64, %s924_s20, [#allocation21], %s8384_s6, %s8384_s6, %s8385_s11  }
 0x234   : > { %s949_s14 = sshll.u32 %s8390_s9, 4  ;;  %s8391_s3 = smov [#allocation28]   ;;  %s950_s14 = int_to_ptr.vmem [resolvable:$true] %s949_s14 }
 0x235   : > { %s975_s8 = sshll.u32 %s8391_s3, 4  ;;  %s976_s8 = int_to_ptr.vmem [resolvable:$true] %s975_s8 }
 0x238   : > { %s7881_s21 = scalar_lea.hbm %s9652_s24, 64 }
 0x239   : > { %p7882_p3 = scmp.ne.s32.totalorder %s9652_s24, %s7881_s21  ;;  %p7888_p10 = scmp.lt.u32.totalorder %s7881_s21, %s9652_s24 }
 0x23b   : > { %p7884_p2 = pnand %p7882_p3, %p9646_p11 }
 0x23d   : > { %p7885_p7 = pneg %p7884_p2 }
 0x23f   : > { %p7890_p8 = pnand %p7888_p10, %p7885_p7 }
 0x241   : > { %7893 = shalt.err (!%p7890_p8)
}
 0x242   : > { %s7894_s25 = scalar_lea.vmem %s950_s14, 64  ;;  %p7902_p1 = scmp.lt.s32.totalorder %s950_s14, %s950_s14 }
 0x243   : > { %p7895_p5 = scmp.ne.s32.totalorder %s950_s14, %s7894_s25  ;;  %p7903_p9 = scmp.lt.s32.totalorder %s7894_s25, %s7894_s25 }
 0x245   : > { %p7897_p0 = pnand %p7895_p5, %p9646_p11  ;;  %p7904_p12 = por %p7903_p9, %p7902_p1 }
 0x247   : > { %p7898_p4 = pneg %p7897_p0 }
 0x249   : > { %p7905_p13 = pnand %p7904_p12, %p7898_p4 }
 0x24b   : > { %7908 = shalt.err (!%p7905_p13)
}
 0x24c   : > { %s9653_s20 = sld [smem:[#allocation83_spill]] }
 0x24d   : > { %7084 = dma.hbm_to_vmem [thread:$0]  (!%p9648_p6), %s9652_s24, 64, %s950_s14, [#allocation24], %s8384_s6, %s8384_s6, %s8385_s11  }
 0x252   : > { %s7909_s9 = scalar_lea.hbm %s9653_s20, 64 }
 0x253   : > { %p7910_p3 = scmp.ne.s32.totalorder %s9653_s20, %s7909_s9  ;;  %p7916_p10 = scmp.lt.u32.totalorder %s7909_s9, %s9653_s20 }
 0x255   : > { %p7912_p2 = pnand %p7910_p3, %p9646_p11 }
 0x257   : > { %p7913_p7 = pneg %p7912_p2 }
 0x259   : > { %p7918_p8 = pnand %p7916_p10, %p7913_p7 }
 0x25b   : > { %7921 = shalt.err (!%p7918_p8)
}
 0x25c   : > { %s7922_s25 = scalar_lea.vmem %s976_s8, 64  ;;  %p7930_p1 = scmp.lt.s32.totalorder %s976_s8, %s976_s8 }
 0x25d   : > { %p7923_p5 = scmp.ne.s32.totalorder %s976_s8, %s7922_s25  ;;  %p7931_p9 = scmp.lt.s32.totalorder %s7922_s25, %s7922_s25 }
 0x25f   : > { %p7925_p0 = pnand %p7923_p5, %p9646_p11  ;;  %p7932_p12 = por %p7931_p9, %p7930_p1 }
 0x261   : > { %p7926_p4 = pneg %p7925_p0 }
 0x263   : > { %p7933_p13 = pnand %p7932_p12, %p7926_p4 }
 0x265   : > { %7936 = shalt.err (!%p7933_p13)
}
 0x266   : > { %s9654_s14 = sld [smem:[#allocation85_spill]]  ;;  %s8392_s3 = smov [#allocation31]  }
 0x267   : > { %7090 = dma.hbm_to_vmem [thread:$0]  (!%p9648_p6), %s9653_s20, 64, %s976_s8, [#allocation27], %s8384_s6, %s8384_s6, %s8385_s11  }
 0x268   : > { %s1002_s21 = sshll.u32 %s8392_s3, 4  ;;  %s8393_s9 = smov [#allocation34]   ;;  %s1003_s21 = int_to_ptr.vmem [resolvable:$true] %s1002_s21 }
 0x269   : > { %s1026_s24 = sshll.u32 %s8393_s9, 4  ;;  %s1027_s24 = int_to_ptr.vmem [resolvable:$true] %s1026_s24 }
 0x26c   : > { %s7937_s25 = scalar_lea.hbm %s9654_s14, 16 }
 0x26d   : > { %p7938_p3 = scmp.ne.s32.totalorder %s9654_s14, %s7937_s25  ;;  %p7944_p10 = scmp.lt.u32.totalorder %s7937_s25, %s9654_s14 }
 0x26f   : > { %p7940_p2 = pnand %p7938_p3, %p9646_p11 }
 0x271   : > { %p7941_p7 = pneg %p7940_p2 }
 0x273   : > { %p7946_p8 = pnand %p7944_p10, %p7941_p7 }
 0x275   : > { %7949 = shalt.err (!%p7946_p8)
}
 0x276   : > { %s7950_s29 = scalar_lea.vmem %s1003_s21, 16  ;;  %s7957_s6 = scalar_lea.vmem %s1003_s21, 32 }
 0x277   : > { %p7951_p5 = scmp.ne.s32.totalorder %s1003_s21, %s7950_s29  ;;  %p7958_p1 = scmp.lt.s32.totalorder %s1003_s21, %s1003_s21 }
 0x278   : > { %p7959_p9 = scmp.lt.s32.totalorder %s7957_s6, %s7950_s29 }
 0x279   : > { %p7953_p0 = pnand %p7951_p5, %p9646_p11 }
 0x27a   : > { %p7960_p12 = por %p7959_p9, %p7958_p1 }
 0x27b   : > { %p7954_p4 = pneg %p7953_p0 }
 0x27d   : > { %p7961_p13 = pnand %p7960_p12, %p7954_p4 }
 0x27f   : > { %7964 = shalt.err (!%p7961_p13)
}
 0x280   : > { %s9655_s11 = sld [smem:[#allocation87_spill]] }
 0x281   : > { %7096 = dma.hbm_to_vmem [thread:$0]  (!%p9648_p6), %s9654_s14, 16, %s1003_s21, [#allocation30]  }
 0x286   : > { %s7965_s8 = scalar_lea.hbm %s9655_s11, 16 }
 0x287   : > { %p7966_p3 = scmp.ne.s32.totalorder %s9655_s11, %s7965_s8  ;;  %p7972_p10 = scmp.lt.u32.totalorder %s7965_s8, %s9655_s11 }
 0x289   : > { %p7968_p2 = pnand %p7966_p3, %p9646_p11 }
 0x28b   : > { %p7969_p7 = pneg %p7968_p2 }
 0x28d   : > { %p7974_p8 = pnand %p7972_p10, %p7969_p7 }
 0x28f   : > { %7977 = shalt.err (!%p7974_p8)
}
 0x290   : > { %s7978_s29 = scalar_lea.vmem %s1027_s24, 16  ;;  %s7985_s3 = scalar_lea.vmem %s1027_s24, 32 }
 0x291   : > { %p7979_p5 = scmp.ne.s32.totalorder %s1027_s24, %s7978_s29  ;;  %p7986_p1 = scmp.lt.s32.totalorder %s1027_s24, %s1027_s24 }
 0x292   : > { %p7987_p9 = scmp.lt.s32.totalorder %s7985_s3, %s7978_s29 }
 0x293   : > { %p7981_p0 = pnand %p7979_p5, %p9646_p11 }
 0x294   : > { %p7988_p12 = por %p7987_p9, %p7986_p1 }
 0x295   : > { %p7982_p4 = pneg %p7981_p0 }
 0x297   : > { %p7989_p13 = pnand %p7988_p12, %p7982_p4 }
 0x299   : > { %7992 = shalt.err (!%p7989_p13)
}
 0x29a   : > { %s9656_s21 = sld [smem:[#allocation89_spill]]  ;;  %s8394_s9 = smov [#allocation37]  }
 0x29b   : > { %7102 = dma.hbm_to_vmem [thread:$0]  (!%p9648_p6), %s9655_s11, 16, %s1027_s24, [#allocation33]  }
 0x29c   : > { %s1050_s25 = sshll.u32 %s8394_s9, 4  ;;  %s8395_s6 = smov [#allocation40]   ;;  %s1051_s25 = int_to_ptr.vmem [resolvable:$true] %s1050_s25 }
 0x29d   : > { %s1072_s8 = sshll.u32 %s8395_s6, 4  ;;  %s1073_s8 = int_to_ptr.vmem [resolvable:$true] %s1072_s8 }
 0x2a0   : > { %s7993_s14 = scalar_lea.hbm %s9656_s21, 16 }
 0x2a1   : > { %p7994_p3 = scmp.ne.s32.totalorder %s9656_s21, %s7993_s14  ;;  %p8000_p10 = scmp.lt.u32.totalorder %s7993_s14, %s9656_s21 }
 0x2a3   : > { %p7996_p2 = pnand %p7994_p3, %p9646_p11 }
 0x2a5   : > { %p7997_p7 = pneg %p7996_p2 }
 0x2a7   : > { %p8002_p8 = pnand %p8000_p10, %p7997_p7 }
 0x2a9   : > { %8005 = shalt.err (!%p8002_p8)
}
 0x2aa   : > { %s8006_s29 = scalar_lea.vmem %s1051_s25, 16  ;;  %s8013_s24 = scalar_lea.vmem %s1051_s25, 32 }
 0x2ab   : > { %p8007_p5 = scmp.ne.s32.totalorder %s1051_s25, %s8006_s29  ;;  %p8014_p1 = scmp.lt.s32.totalorder %s1051_s25, %s1051_s25 }
 0x2ac   : > { %p8015_p9 = scmp.lt.s32.totalorder %s8013_s24, %s8006_s29 }
 0x2ad   : > { %p8009_p0 = pnand %p8007_p5, %p9646_p11 }
 0x2ae   : > { %p8016_p12 = por %p8015_p9, %p8014_p1 }
 0x2af   : > { %p8010_p4 = pneg %p8009_p0 }
 0x2b1   : > { %p8017_p13 = pnand %p8016_p12, %p8010_p4 }
 0x2b3   : > { %8020 = shalt.err (!%p8017_p13)
}
 0x2b4   : > { %s9657_s3 = sld [smem:[#allocation90_spill]] }
 0x2b5   : > { %7108 = dma.hbm_to_vmem [thread:$0]  (!%p9648_p6), %s9656_s21, 16, %s1051_s25, [#allocation36]  }
 0x2ba   : > { %s8021_s14 = scalar_lea.hbm %s9657_s3, 16 }
 0x2bb   : > { %p8022_p3 = scmp.ne.s32.totalorder %s9657_s3, %s8021_s14  ;;  %p8028_p10 = scmp.lt.u32.totalorder %s8021_s14, %s9657_s3 }
 0x2bd   : > { %p8024_p2 = pnand %p8022_p3, %p9646_p11 }
 0x2bf   : > { %p8025_p7 = pneg %p8024_p2 }
 0x2c1   : > { %p8030_p8 = pnand %p8028_p10, %p8025_p7 }
 0x2c3   : > { %8033 = shalt.err (!%p8030_p8)
}
 0x2c4   : > { %s8034_s9 = scalar_lea.vmem %s1073_s8, 16  ;;  %s8041_s6 = scalar_lea.vmem %s1073_s8, 32 }
 0x2c5   : > { %p8035_p5 = scmp.ne.s32.totalorder %s1073_s8, %s8034_s9  ;;  %p8042_p1 = scmp.lt.s32.totalorder %s1073_s8, %s1073_s8 }
 0x2c6   : > { %p8043_p9 = scmp.lt.s32.totalorder %s8041_s6, %s8034_s9 }
 0x2c7   : > { %p8037_p0 = pnand %p8035_p5, %p9646_p11 }
 0x2c8   : > { %p8044_p12 = por %p8043_p9, %p8042_p1 }
 0x2c9   : > { %p8038_p4 = pneg %p8037_p0 }
 0x2cb   : > { %p8045_p13 = pnand %p8044_p12, %p8038_p4 }
 0x2cd   : > { %8048 = shalt.err (!%p8045_p13)
}
 0x2ce   : > { %s9658_s25 = sld [smem:[#allocation92_spill]]  ;;  %s8396_s29 = smov [#allocation43]  }
 0x2cf   : > { %7114 = dma.hbm_to_vmem [thread:$0]  (!%p9648_p6), %s9657_s3, 16, %s1073_s8, [#allocation39]  }
 0x2d0   : > { %s1094_s24 = sshll.u32 %s8396_s29, 4  ;;  %s8397_s14 = smov [#allocation46]   ;;  %s1095_s24 = int_to_ptr.vmem [resolvable:$true] %s1094_s24 }
 0x2d1   : > { %s1116_s11 = sshll.u32 %s8397_s14, 4  ;;  %s1117_s11 = int_to_ptr.vmem [resolvable:$true] %s1116_s11 }
 0x2d4   : > { %s8049_s20 = scalar_lea.hbm %s9658_s25, 16 }
 0x2d5   : > { %p8050_p3 = scmp.ne.s32.totalorder %s9658_s25, %s8049_s20  ;;  %p8056_p10 = scmp.lt.u32.totalorder %s8049_s20, %s9658_s25 }
 0x2d7   : > { %p8052_p2 = pnand %p8050_p3, %p9646_p11 }
 0x2d9   : > { %p8053_p7 = pneg %p8052_p2 }
 0x2db   : > { %p8058_p8 = pnand %p8056_p10, %p8053_p7 }
 0x2dd   : > { %8061 = shalt.err (!%p8058_p8)
}
 0x2de   : > { %s8062_s9 = scalar_lea.vmem %s1095_s24, 16  ;;  %s8069_s8 = scalar_lea.vmem %s1095_s24, 32 }
 0x2df   : > { %p8063_p5 = scmp.ne.s32.totalorder %s1095_s24, %s8062_s9  ;;  %p8070_p1 = scmp.lt.s32.totalorder %s1095_s24, %s1095_s24 }
 0x2e0   : > { %p8071_p9 = scmp.lt.s32.totalorder %s8069_s8, %s8062_s9 }
 0x2e1   : > { %p8065_p0 = pnand %p8063_p5, %p9646_p11 }
 0x2e2   : > { %p8072_p12 = por %p8071_p9, %p8070_p1 }
 0x2e3   : > { %p8066_p4 = pneg %p8065_p0 }
 0x2e5   : > { %p8073_p13 = pnand %p8072_p12, %p8066_p4 }
 0x2e7   : > { %8076 = shalt.err (!%p8073_p13)
}
 0x2e8   : > { %7120 = dma.hbm_to_vmem [thread:$0]  (!%p9648_p6), %s9658_s25, 16, %s1095_s24, [#allocation42]  }
 0x2e9   : > { %s8077_s20 = scalar_lea.hbm %s8553_s27, 16 }
 0x2ea   : > { %p8078_p3 = scmp.ne.s32.totalorder %s8553_s27, %s8077_s20  ;;  %p8084_p10 = scmp.lt.u32.totalorder %s8077_s20, %s8553_s27 }
 0x2ec   : > { %p8080_p2 = pnand %p8078_p3, %p9646_p11 }
 0x2ee   : > { %p8081_p7 = pneg %p8080_p2 }
 0x2f0   : > { %p8086_p8 = pnand %p8084_p10, %p8081_p7 }
 0x2f2   : > { %8089 = shalt.err (!%p8086_p8)
}
 0x2f3   : > { %s8090_s6 = scalar_lea.vmem %s1117_s11, 16  ;;  %s8097_s29 = scalar_lea.vmem %s1117_s11, 32 }
 0x2f4   : > { %p8091_p5 = scmp.ne.s32.totalorder %s1117_s11, %s8090_s6  ;;  %p8098_p1 = scmp.lt.s32.totalorder %s1117_s11, %s1117_s11 }
 0x2f5   : > { %p8099_p9 = scmp.lt.s32.totalorder %s8097_s29, %s8090_s6 }
 0x2f6   : > { %p8093_p0 = pnand %p8091_p5, %p9646_p11 }
 0x2f7   : > { %p8100_p12 = por %p8099_p9, %p8098_p1 }
 0x2f8   : > { %p8094_p4 = pneg %p8093_p0 }
 0x2fa   : > { %p8101_p13 = pnand %p8100_p12, %p8094_p4 }
 0x2fc   : > { %8104 = shalt.err (!%p8101_p13)
}
 0x2fd   : > { %s9659_s24 = sld [smem:[#allocation67_spill]]  ;;  %s9660_s14 = sld [smem:[#allocation69_spill]] }
 0x2fe   : > { %7126 = dma.hbm_to_vmem [thread:$0]  (!%p9648_p6), %s8553_s27, 16, %s1117_s11, [#allocation45]  }
 0x2ff   : > { %s1131_s9 = scalar_lea.vmem [#allocation2], %s8835_s4  ;;  %s9661_s20 = sand.u32 1, %s8323_s16  }
 0x300   : > { %s1139_s8 = sshll.u32 %s1131_s9, 4  ;;  %s1128_s6 = scalar_lea.sflag [#allocation3], %s9661_s20  ;;  %s9036_s8 = int_to_ptr.vmem [resolvable:$true] %s1139_s8 }
 0x301   : > { %p9662_p3 = scmp.ne.s32.totalorder %s9645_s19, 0 }
 0x303   : > { %s9033_s1 = scalar_lea.hbm %s9659_s24, %s8838_s5  ;;  %s9040_s7 = scalar_lea.hbm %s9660_s14, %s8838_s5 }
 0x304   : > { %s8105_s29 = scalar_lea.hbm %s9033_s1, 128  ;;  %s8110_s11 = scalar_lea.hbm %s9659_s24, 256 }
 0x305   : > { %p8106_p11 = scmp.ne.s32.totalorder %s9033_s1, %s8105_s29  ;;  %p8111_p6 = scmp.lt.u32.totalorder %s9033_s1, %s9659_s24 }
 0x306   : > { %p8112_p10 = scmp.lt.u32.totalorder %s8110_s11, %s8105_s29  ;;  %p8114_p5 = scmp.lt.u32.totalorder %s8105_s29, %s9033_s1 }
 0x307   : > { %p8108_p2 = pnand %p8106_p11, %p9662_p3 }
 0x308   : > { %p8113_p8 = por %p8112_p10, %p8111_p6 }
 0x309   : > { %p8109_p7 = pneg %p8108_p2 }
 0x30a   : > { %p8115_p0 = por %p8114_p5, %p8113_p8 }
 0x30c   : > { %p8116_p4 = pnand %p8115_p0, %p8109_p7 }
 0x30e   : > { %8119 = shalt.err (!%p8116_p4)
}
 0x30f   : > { %s8120_s5 = scalar_lea.vmem %s9036_s8, 128  ;;  %s8398_s9 = smov [#allocation2]  }
 0x310   : > { %p8121_p1 = scmp.ne.s32.totalorder %s9036_s8, %s8120_s5  ;;  %s8125_s20 = sshll.u32 %s8398_s9, 4  ;;  %s8126_s20 = int_to_ptr.vmem [resolvable:$false] %s8125_s20 }
 0x311   : > { %s8127_s3 = scalar_lea.vmem %s8126_s20, 256  ;;  %p8128_p13 = scmp.lt.s32.totalorder %s9036_s8, %s8126_s20 }
 0x312   : > { %p8123_p9 = pnand %p8121_p1, %p9662_p3  ;;  %p8129_p11 = scmp.lt.s32.totalorder %s8127_s3, %s8120_s5 }
 0x314   : > { %p8124_p12 = pneg %p8123_p9  ;;  %p8130_p2 = por %p8129_p11, %p8128_p13 }
 0x316   : > { %p8131_p6 = pnand %p8130_p2, %p8124_p12 }
 0x318   : > { %8134 = shalt.err (!%p8131_p6)
}
 0x319   : > { %p9663_p7 = scmp.ne.s32.totalorder %s9644_s18, 0  ;;  %s1168_s29 = scalar_lea.vmem [#allocation7], %s8835_s4 }
 0x31a   : > { %s1175_s11 = sshll.u32 %s1168_s29, 4  ;;  %s8135_s3 = scalar_lea.hbm %s9040_s7, 128  ;;  %s1176_s11 = int_to_ptr.vmem [resolvable:$true] %s1175_s11 }
 0x31b   : > { %7130 = dma.hbm_to_vmem [thread:$0]  (!%p9663_p7), %s9033_s1, 128, %s9036_s8, %s1128_s6  }
 0x31c   : > { %p8136_p10 = scmp.ne.s32.totalorder %s9040_s7, %s8135_s3  ;;  %s8140_s5 = scalar_lea.hbm %s9660_s14, 256 }
 0x31d   : > { %p8141_p0 = scmp.lt.u32.totalorder %s9040_s7, %s9660_s14  ;;  %p8142_p4 = scmp.lt.u32.totalorder %s8140_s5, %s8135_s3 }
 0x31e   : > { %p8138_p8 = pnand %p8136_p10, %p9662_p3  ;;  %p8144_p9 = scmp.lt.u32.totalorder %s8135_s3, %s9040_s7 }
 0x31f   : > { %p8143_p1 = por %p8142_p4, %p8141_p0 }
 0x320   : > { %p8139_p5 = pneg %p8138_p8 }
 0x321   : > { %p8145_p12 = por %p8144_p9, %p8143_p1 }
 0x323   : > { %p8146_p13 = pnand %p8145_p12, %p8139_p5 }
 0x325   : > { %8149 = shalt.err (!%p8146_p13)
}
 0x326   : > { %s8150_s9 = scalar_lea.vmem %s1176_s11, 128  ;;  %s8399_s4 = smov [#allocation7]  }
 0x327   : > { %p8151_p11 = scmp.ne.s32.totalorder %s1176_s11, %s8150_s9  ;;  %s8155_s1 = sshll.u32 %s8399_s4, 4  ;;  %s8156_s1 = int_to_ptr.vmem [resolvable:$false] %s8155_s1 }
 0x328   : > { %s8157_s8 = scalar_lea.vmem %s8156_s1, 256  ;;  %p8158_p10 = scmp.lt.s32.totalorder %s1176_s11, %s8156_s1 }
 0x329   : > { %p8153_p2 = pnand %p8151_p11, %p9662_p3  ;;  %p8159_p8 = scmp.lt.s32.totalorder %s8157_s8, %s8150_s9 }
 0x32b   : > { %p8154_p6 = pneg %p8153_p2  ;;  %p8160_p7 = por %p8159_p8, %p8158_p10 }
 0x32d   : > { %p8161_p0 = pnand %p8160_p7, %p8154_p6 }
 0x32f   : > { %8164 = shalt.err (!%p8161_p0)
}
 0x330   : > { %p9664_p4 = scmp.ne.s32.totalorder %s9644_s18, 0  ;;  %s9665_s6 = sld [smem:[#allocation97_spill]] }
 0x332   : > { %7136 = dma.hbm_to_vmem [thread:$0]  (!%p9664_p4), %s9040_s7, 128, %s1176_s11, %s8856_s12  }
 0x336   : > { %p9666_p5 = scmp.ne.s32.totalorder %s9665_s6, 0 }
 0x337   : > { %s9079_s19 = sand.u32 (!%p9666_p5), 1, %s8319_s15   ;;  %p9667_p3 = scmp.ne.s32.totalorder (!%p9666_p5), %s9641_s2, 0 }
 0x338   : > { %1184 = sbr.rel (%p9666_p5) target bundleno = 4519 (0x11a7), region = 136  ;;  %s9082_s20 = sshll.u32 (!%p9666_p5), %s9079_s19, 3 }
 0x339   : > { %s1187_s29 = scalar_lea.sflag (!%p9666_p5), [#allocation3], %s9079_s19  ;;  %s1190_s3 = scalar_lea.vmem (!%p9666_p5), [#allocation2], %s9082_s20 }
 0x33f   : > { %8246 = dma.done.wait (%p9667_p3), %s1187_s29, 128  }
 0x340   : > { %8248 = vsyncadd (%p9667_p3), %s1187_s29, 4294967168  ;;  %s1195_s12 = sand.u32 1, %s8596_s26   ;;  %s1199_s7 = scalar_lea.vmem [#allocation5], %s9082_s20 }
 0x341   : > { %s1196_s18 = scalar_lea.sflag [#allocation6], %s1195_s12 }
 0x342   : > { %8250 = dma.done.wait (%p9667_p3), %s1196_s18, 256  }
 0x343   : > { %8252 = vsyncadd (%p9667_p3), %s1196_s18, 4294967040  ;;  %s1208_s11 = scalar_lea.vmem [#allocation7], %s9082_s20  ;;  %p9668_p7 = scmp.eq.s32.totalorder %s8596_s26, 0 }
 0x345   : > { %8254 = dma.done.wait (%p9668_p7), [#allocation9], 2112   ;;  %p9669_p1 = pmov %p9668_p7 }
 0x347   : > { %8256 = vsyncadd (%p9669_p1), [#allocation9], 4294965184  ;;  %p9670_p9 = pmov %p9669_p1 }
 0x348   : > { %p9671_p12 = pmov %p9669_p1 }
 0x349   : > { %8258 = dma.done.wait (%p9670_p9), [#allocation12], 2112  }
 0x34a   : > { %8260 = vsyncadd (%p9671_p12), [#allocation12], 4294965184  ;;  %p9672_p13 = pmov %p9669_p1 }
 0x34b   : > { %p9673_p11 = pmov %p9669_p1 }
 0x34c   : > { %8262 = dma.done.wait (%p9672_p13), [#allocation15], 2112  }
 0x34d   : > { %8264 = vsyncadd (%p9673_p11), [#allocation15], 4294965184  ;;  %p9674_p2 = pmov %p9669_p1 }
 0x34e   : > { %p9675_p6 = pmov %p9669_p1 }
 0x34f   : > { %8266 = dma.done.wait (%p9674_p2), [#allocation18], 528  }
 0x350   : > { %8268 = vsyncadd (%p9675_p6), [#allocation18], 4294966768  ;;  %p9676_p10 = pmov %p9669_p1 }
 0x351   : > { %p9677_p8 = pmov %p9669_p1 }
 0x352   : > { %8270 = dma.done.wait (%p9676_p10), [#allocation21], 2112  }
 0x353   : > { %8272 = vsyncadd (%p9677_p8), [#allocation21], 4294965184  ;;  %p9678_p0 = pmov %p9669_p1 }
 0x355   : > { %8274 = dma.done.wait (%p9678_p0), [#allocation24], 2112   ;;  %p9679_p4 = pmov %p9678_p0 }
 0x356   : > { %p9680_p5 = pmov %p9678_p0 }
 0x357   : > { %8276 = vsyncadd (%p9679_p4), [#allocation24], 4294965184 }
 0x358   : > { %8278 = dma.done.wait (%p9680_p5), [#allocation27], 2112   ;;  %p9681_p3 = pmov %p9678_p0 }
 0x359   : > { %p9682_p7 = pmov %p9678_p0 }
 0x35a   : > { %8280 = vsyncadd (%p9681_p3), [#allocation27], 4294965184 }
 0x35b   : > { %8282 = dma.done.wait (%p9682_p7), [#allocation30], 528   ;;  %p9683_p1 = pmov %p9678_p0 }
 0x35c   : > { %p9684_p9 = pmov %p9678_p0 }
 0x35d   : > { %8284 = vsyncadd (%p9683_p1), [#allocation30], 4294966768 }
 0x35e   : > { %8286 = dma.done.wait (%p9684_p9), [#allocation33], 528   ;;  %p9685_p12 = pmov %p9678_p0 }
 0x35f   : > { %p9686_p13 = pmov %p9678_p0 }
 0x360   : > { %8288 = vsyncadd (%p9685_p12), [#allocation33], 4294966768 }
 0x361   : > { %8290 = dma.done.wait (%p9686_p13), [#allocation36], 1040   ;;  %p9687_p11 = pmov %p9678_p0 }
 0x362   : > { %p9688_p2 = pmov %p9678_p0 }
 0x363   : > { %8292 = vsyncadd (%p9687_p11), [#allocation36], 4294966256 }
 0x364   : > { %8294 = dma.done.wait (%p9688_p2), [#allocation39], 32   ;;  %p9689_p6 = pmov %p9678_p0 }
 0x365   : > { %p9690_p10 = pmov %p9678_p0 }
 0x366   : > { %8296 = vsyncadd (%p9689_p6), [#allocation39], 4294967264 }
 0x367   : > { %8298 = dma.done.wait (%p9690_p10), [#allocation42], 32   ;;  %p9691_p8 = pmov %p9678_p0 }
 0x369   : > { %8300 = vsyncadd (%p9691_p8), [#allocation42], 4294967264 }
 0x36a   : > { %8302 = dma.done.wait (%p9678_p0), [#allocation45], 32   ;;  %p9692_p4 = pmov %p9678_p0 }
 0x36b   : > { %v8400_v0 = vmov 0.0|0.0   ;;  %vm8401_vm0 = vmmov 0   ;;  %v8402_v1 = vmov 0.0   ;;  %v1407_v2 = vld [vmem:[#allocation8] sm:$0xff]  ;;  %v1408_v3 = vld [vmem:[#allocation8 + $0x8] sm:$0xff]  ;;  %v1409_v7 = vld [vmem:[#allocation8 + $0x10] sm:$0xff] }
 0x36c   : > { %8304 = vsyncadd (%p9692_p4), [#allocation45], 4294967264  ;;  %6772 = vmatprep.subr.bf16.mxu0 %v8400_v0  ;;  %6778 = vmatprep.subr.bf16.mxu1 %v8400_v0  ;;  %v1411_v4 = vld [vmem:[#allocation8 + $0x20] sm:$0xff]  ;;  %v6773_v5 = vpack.c.bf16 %v1408_v3, %v1407_v2  ;;  %v1412_v6 = vld [vmem:[#allocation8 + $0x28] sm:$0xff]  ;;  %vm1451_vm1 = vcmask 261120   ;;  %vm2391_vm2 = vcmask 64512  }
 0x36d   : > { %6366 = vmatprep.mubr.msk.f32.mxu0 %vm8401_vm0, %v8402_v1  ;;  %6377 = vmatprep.mubr.msk.f32.mxu1 %vm8401_vm0, %v8402_v1  ;;  %v1410_v8 = vld [vmem:[#allocation8 + $0x18] sm:$0xff]  ;;  %v6779_v9 = vpack.c.bf16 %v1412_v6, %v1411_v4  ;;  %v1413_v10 = vld [vmem:[#allocation8 + $0x30] sm:$0xff]  ;;  %v1415_v14 = vld [vmem:[#allocation8 + $0x40] sm:$0xff]  ;;  %s1403_s26 = scalar_lea.vmem [#allocation48], %s9082_s20  ;;  %vm5437_vm3 = vcmask 523264   ;;  %s9693_s2 = sld [smem:[#allocation96_spill]] }
 0x36e   : > { %v1414_v11 = vld [vmem:[#allocation8 + $0x38] sm:$0xff]  ;;  %6774 = vmatpush3.bf16.msra.mxu0 %v6773_v5  ;;  %v6776_v12 = vpack.c.bf16 %v1410_v8, %v1409_v7  ;;  %v1416_v15 = vld [vmem:[#allocation8 + $0x48] sm:$0xff]  ;;  %v1419_v16 = vld [vmem:[#allocation8 + $0x60] sm:$0xff]  ;;  %s9694_s5 = sld [smem:[#allocation95_spill]]  ;;  %s5577_s1 = sshll.u32 %s1403_s26, 4  ;;  %s5578_s1 = int_to_ptr.vmem [resolvable:$true] %s5577_s1 }
 0x36f   : > { %6780 = vmatpush3.bf16.msra.mxu1 %v6779_v9  ;;  %6775 = vmatprep.subr.bf16.mxu0 %v8400_v0  ;;  %v6782_v13 = vpack.c.bf16 %v1414_v11, %v1413_v10  ;;  %v1420_v17 = vld [vmem:[#allocation8 + $0x68] sm:$0xff]  ;;  %v9159_v18 = vld [vmem:[%s1190_s3] sm:$0xff]  ;;  %v6785_v19 = vpack.c.bf16 %v1416_v15, %v1415_v14  ;;  %v2065_v56 = vld [vmem:[#allocation14 + $0x18] sm:$0xff]  ;;  %s5549_s8 = scalar_lea.sflag [#allocation49], %s9079_s19  ;;  %s8165_s6 = scalar_lea.vmem %s5578_s1, 128 }
 0x370   : > { %6781 = vmatprep.subr.bf16.mxu1 %v8400_v0  ;;  %v6791_v20 = vpack.c.bf16 %v1420_v17, %v1419_v16  ;;  %v1417_v21 = vld [vmem:[#allocation8 + $0x50] sm:$0xff]  ;;  %v1418_v22 = vld [vmem:[#allocation8 + $0x58] sm:$0xff]  ;;  %v1735_v27 = vld [vmem:[#allocation11] sm:$0xff]  ;;  %p8166_p5 = scmp.ne.s32.totalorder %s5578_s1, %s8165_s6  ;;  %p9695_p3 = scmp.ne.s32.totalorder %s9642_s28, 0 }
 0x371   : > { %v1421_v23 = vld [vmem:[#allocation8 + $0x70] sm:$0xff]  ;;  %v1422_v24 = vld [vmem:[#allocation8 + $0x78] sm:$0xff]  ;;  %v6788_v25 = vpack.c.bf16 %v1418_v22, %v1417_v21  ;;  %v1739_v29 = vld [vmem:[#allocation11 + $0x20] sm:$0xff]  ;;  %s8403_s29 = smov [#allocation48]  }
 0x372   : > { %6777 = vmatpush3.bf16.msra.mxu0 %v6776_v12  ;;  %v6794_v26 = vpack.c.bf16 %v1422_v24, %v1421_v23  ;;  %v1736_v28 = vld [vmem:[#allocation11 + $0x8] sm:$0xff]  ;;  %v1737_v33 = vld [vmem:[#allocation11 + $0x10] sm:$0xff]  ;;  %v1738_v34 = vld [vmem:[#allocation11 + $0x18] sm:$0xff]  ;;  %p8167_p7 = pnand %p8166_p5, %p9695_p3  ;;  %s8169_s3 = sshll.u32 %s8403_s29, 4  ;;  %s8170_s3 = int_to_ptr.vmem [resolvable:$false] %s8169_s3 }
 0x373   : > { %6783 = vmatpush3.bf16.msra.mxu1 %v6782_v13  ;;  %6784 = vmatprep.subr.bf16.mxu0 %v8400_v0  ;;  %v1740_v30 = vld [vmem:[#allocation11 + $0x28] sm:$0xff]  ;;  %v6797_v31 = vpack.c.bf16 %v1736_v28, %v1735_v27  ;;  %v1741_v35 = vld [vmem:[#allocation11 + $0x30] sm:$0xff]  ;;  %v1742_v36 = vld [vmem:[#allocation11 + $0x38] sm:$0xff]  ;;  %v6800_v37 = vpack.c.bf16 %v1738_v34, %v1737_v33  ;;  %s6172_s9 = sshll.u32 %s9693_s2, 7  ;;  %s8171_s12 = scalar_lea.vmem %s8170_s3, 256 }
 0x374   : > { %6790 = vmatprep.subr.bf16.mxu1 %v8400_v0  ;;  %v6803_v32 = vpack.c.bf16 %v1740_v30, %v1739_v29  ;;  %v6806_v38 = vpack.c.bf16 %v1742_v36, %v1741_v35  ;;  %v1743_v39 = vld [vmem:[#allocation11 + $0x40] sm:$0xff]  ;;  %v1744_v40 = vld [vmem:[#allocation11 + $0x48] sm:$0xff]  ;;  %v1745_v46 = vld [vmem:[#allocation11 + $0x50] sm:$0xff]  ;;  %s9469_s4 = scalar_lea.hbm %s9694_s5, %s6172_s9  ;;  %p8168_p1 = pneg %p8167_p7 }
 0x375   : > { %6367 = vmatmul.mubr.msk.f32.vlgmr.msra.gmra.mrb[0].mxu0 %vm1451_vm1, %v9159_v18  ;;  %v1747_v41 = vld [vmem:[#allocation11 + $0x60] sm:$0xff]  ;;  %v1748_v42 = vld [vmem:[#allocation11 + $0x68] sm:$0xff]  ;;  %v6809_v44 = vpack.c.bf16 %v1744_v40, %v1743_v39  ;;  %v1746_v47 = vld [vmem:[#allocation11 + $0x58] sm:$0xff]  ;;  %p8172_p9 = scmp.lt.s32.totalorder %s5578_s1, %s8170_s3  ;;  %p8173_p12 = scmp.lt.s32.totalorder %s8171_s12, %s8165_s6 }
 0x376   : > { %6378 = vmatmul.mubr.msk.f32.vlgmr.msra.gmra.mrb[0].mxu1 %vm1451_vm1, %v9159_v18  ;;  %6786 = vmatpush3.bf16.msra.mxu0 %v6785_v19  ;;  %v9187_v43 = vld [vmem:[%s1199_s7] sm:$0xff]  ;;  %v6815_v45 = vpack.c.bf16 %v1748_v42, %v1747_v41  ;;  %v1749_v48 = vld [vmem:[#allocation11 + $0x70] sm:$0xff]  ;;  %v6812_v50 = vpack.c.bf16 %v1746_v47, %v1745_v46 }
 0x377   : > { %6792 = vmatpush3.bf16.msra.mxu1 %v6791_v20  ;;  %6787 = vmatprep.subr.bf16.mxu0 %v8400_v0  ;;  %v1750_v49 = vld [vmem:[#allocation11 + $0x78] sm:$0xff]  ;;  %v2062_v52 = vld [vmem:[#allocation14] sm:$0xff]  ;;  %v2063_v53 = vld [vmem:[#allocation14 + $0x8] sm:$0xff]  ;;  %p8174_p13 = por %p8173_p12, %p8172_p9 }
 0x378   : > { %6793 = vmatprep.subr.bf16.mxu1 %v8400_v0  ;;  %6388 = vmatprep.mubr.msk.f32.mxu0 %vm8401_vm0, %v8402_v1  ;;  %v6818_v51 = vpack.c.bf16 %v1750_v49, %v1749_v48  ;;  %v6821_v54 = vpack.c.bf16 %v2063_v53, %v2062_v52  ;;  %v2064_v55 = vld [vmem:[#allocation14 + $0x10] sm:$0xff]  ;;  %v2066_v58 = vld [vmem:[#allocation14 + $0x20] sm:$0xff]  ;;  %v2067_v59 = vld [vmem:[#allocation14 + $0x28] sm:$0xff] }
 0x379   : > { %6399 = vmatprep.mubr.msk.f32.mxu1 %vm8401_vm0, %v8402_v1  ;;  %v6824_v57 = vpack.c.bf16 %v2065_v56, %v2064_v55  ;;  %v2070_v60 = vld [vmem:[#allocation14 + $0x40] sm:$0xff]  ;;  %v6827_v61 = vpack.c.bf16 %v2067_v59, %v2066_v58  ;;  %v2071_v62 = vld [vmem:[#allocation14 + $0x48] sm:$0xff]  ;;  %v2068_v2 = vld [vmem:[#allocation14 + $0x30] sm:$0xff]  ;;  %p8175_p11 = pnand %p8174_p13, %p8168_p1 }
 0x37a   : > { %6789 = vmatpush3.bf16.msra.mxu0 %v6788_v25  ;;  %v6833_v63 = vpack.c.bf16 %v2071_v62, %v2070_v60  ;;  %v2069_v3 = vld [vmem:[#allocation14 + $0x38] sm:$0xff]  ;;  %v2072_v4 = vld [vmem:[#allocation14 + $0x50] sm:$0xff]  ;;  %v2074_v8 = vld [vmem:[#allocation14 + $0x60] sm:$0xff] }
 0x37b   : > { %6795 = vmatpush3.bf16.msra.mxu1 %v6794_v26  ;;  %6796 = vmatprep.subr.bf16.mxu0 %v8400_v0  ;;  %v6830_v5 = vpack.c.bf16 %v2069_v3, %v2068_v2  ;;  %v2073_v6 = vld [vmem:[#allocation14 + $0x58] sm:$0xff]  ;;  %v2075_v9 = vld [vmem:[#allocation14 + $0x68] sm:$0xff]  ;;  %v2076_v11 = vld [vmem:[#allocation14 + $0x70] sm:$0xff] }
 0x37c   : > { %6802 = vmatprep.subr.bf16.mxu1 %v8400_v0  ;;  %v6836_v7 = vpack.c.bf16 %v2073_v6, %v2072_v4  ;;  %v6839_v10 = vpack.c.bf16 %v2075_v9, %v2074_v8  ;;  %v2077_v12 = vld [vmem:[#allocation14 + $0x78] sm:$0xff]  ;;  %v6094_v47 = vld [vmem:[#allocation16] ss:$0 sm:$0xff] }
 0x37d   : > { %6389 = vmatmul.mubr.msk.f32.vlgmr.msra.gmra.mrb[2].mxu0 %vm1451_vm1, %v9159_v18  ;;  %v6842_v13 = vpack.c.bf16 %v2077_v12, %v2076_v11  ;;  %v6086_v23 = vld [vmem:[#allocation13] ss:$0 sm:$0xff]  ;;  %v6087_v25 = vld [vmem:[#allocation13 + $0x1] ss:$0 sm:$0xff]  ;;  %v6078_v26 = vld [vmem:[#allocation10] ss:$0 sm:$0xff] }
 0x37e   : > { %6400 = vmatmul.mubr.msk.f32.vlgmr.msra.gmra.mrb[2].mxu1 %vm1451_vm1, %v9159_v18  ;;  %6798 = vmatpush3.bf16.msra.mxu0 %v6797_v31  ;;  %v6079_v33 = vld [vmem:[#allocation10 + $0x1] ss:$0 sm:$0xff]  ;;  %v6088_v34 = vld [vmem:[#allocation13 + $0x2] ss:$0 sm:$0xff]  ;;  %v6089_v35 = vld [vmem:[#allocation13 + $0x3] ss:$0 sm:$0xff] }
 0x37f   : > { %6804 = vmatpush3.bf16.msra.mxu1 %v6803_v32  ;;  %6799 = vmatprep.subr.bf16.mxu0 %v8400_v0  ;;  %v6081_v42 = vld [vmem:[#allocation10 + $0x3] ss:$0 sm:$0xff] }
 0x380   : > { %6805 = vmatprep.subr.bf16.mxu1 %v8400_v0  ;;  %6410 = vmatprep.mubr.msk.f32.mxu0 %vm8401_vm0, %v8402_v1 }
 0x381   : > { %6421 = vmatprep.mubr.msk.f32.mxu1 %vm8401_vm0, %v8402_v1 }
 0x382   : > { %6801 = vmatpush3.bf16.msra.mxu0 %v6800_v37 }
 0x383   : > { %6807 = vmatpush3.bf16.msra.mxu1 %v6806_v38  ;;  %6808 = vmatprep.subr.bf16.mxu0 %v8400_v0  ;;  %v6080_v38 = vld [vmem:[#allocation10 + $0x2] ss:$0 sm:$0xff] }
 0x384   : > { %6814 = vmatprep.subr.bf16.mxu1 %v8400_v0 }
 0x385   : > { %6411 = vmatmul.mubr.msk.f32.vlgmr.msra.gmra.mrb[4].mxu0 %vm1451_vm1, %v9187_v43 }
 0x386   : > { %6422 = vmatmul.mubr.msk.f32.vlgmr.msra.gmra.mrb[4].mxu1 %vm1451_vm1, %v9187_v43  ;;  %6810 = vmatpush3.bf16.msra.mxu0 %v6809_v44 }
 0x387   : > { %6816 = vmatpush3.bf16.msra.mxu1 %v6815_v45  ;;  %6811 = vmatprep.subr.bf16.mxu0 %v8400_v0 }
 0x388   : > { %6817 = vmatprep.subr.bf16.mxu1 %v8400_v0  ;;  %6432 = vmatprep.mubr.msk.f32.mxu0 %vm8401_vm0, %v8402_v1 }
 0x389   : > { %6443 = vmatprep.mubr.msk.f32.mxu1 %vm8401_vm0, %v8402_v1 }
 0x38a   : > { %6813 = vmatpush3.bf16.msra.mxu0 %v6812_v50 }
 0x38b   : > { %6819 = vmatpush3.bf16.msra.mxu1 %v6818_v51  ;;  %6820 = vmatprep.subr.bf16.mxu0 %v8400_v0  ;;  %v6095_v51 = vld [vmem:[#allocation16 + $0x1] ss:$0 sm:$0xff] }
 0x38c   : > { %6826 = vmatprep.subr.bf16.mxu1 %v8400_v0 }
 0x38d   : > { %6433 = vmatmul.mubr.msk.f32.vlgmr.msra.gmra.mrb[6].mxu0 %vm1451_vm1, %v9187_v43 }
 0x38e   : > { %6444 = vmatmul.mubr.msk.f32.vlgmr.msra.gmra.mrb[6].mxu1 %vm1451_vm1, %v9187_v43  ;;  %6822 = vmatpush3.bf16.msra.mxu0 %v6821_v54 }
 0x38f   : > { %6823 = vmatprep.subr.bf16.mxu0 %v8400_v0  ;;  %6454 = vmatprep.mubr.msk.f32.mxu0 %vm8401_vm0, %v8402_v1 }
 0x390   : > { %6465 = vmatprep.mubr.msk.f32.mxu1 %vm8401_vm0, %v8402_v1  ;;  %6828 = vmatpush3.bf16.msra.mxu1 %v6827_v61 }
 0x391   : > { %6829 = vmatprep.subr.bf16.mxu1 %v8400_v0 }
 0x392   : > { %6825 = vmatpush3.bf16.msra.mxu0 %v6824_v57 }
 0x393   : > { %6832 = vmatprep.subr.bf16.mxu0 %v8400_v0 }
 0x394   : > { %6831 = vmatpush3.bf16.msra.mxu1 %v6830_v5 }
 0x395   : > { %6455 = vmatmul.mubr.msk.f32.vlgmr.msra.gmra.mrb[8].mxu0 %vm1451_vm1, %v9187_v43  ;;  %6838 = vmatprep.subr.bf16.mxu1 %v8400_v0 }
 0x396   : > { %6834 = vmatpush3.bf16.msra.mxu0 %v6833_v63  ;;  %6476 = vmatprep.mubr.msk.f32.mxu0 %vm8401_vm0, %v8402_v1 }
 0x397   : > { %6835 = vmatprep.subr.bf16.mxu0 %v8400_v0  ;;  %6466 = vmatmul.mubr.msk.f32.vlgmr.msra.gmra.mrb[8].mxu1 %vm1451_vm1, %v9187_v43 }
 0x398   : > { %6840 = vmatpush3.bf16.msra.mxu1 %v6839_v10  ;;  %6487 = vmatprep.mubr.msk.f32.mxu1 %vm8401_vm0, %v8402_v1 }
 0x399   : > { %6841 = vmatprep.subr.bf16.mxu1 %v8400_v0 }
 0x39a   : > { %6837 = vmatpush3.bf16.msra.mxu0 %v6836_v7 }
 0x39b   : > { %6490 = vmatprep.subr.mxu0 %v8402_v1 }
 0x39c   : > { %6843 = vmatpush3.bf16.msra.mxu1 %v6842_v13 }
 0x39d   : > { %6477 = vmatmul.mubr.msk.f32.vlgmr.msra.gmra.mrb[10].mxu0 %vm1451_vm1, %v9187_v43  ;;  %6505 = vmatprep.subr.mxu1 %v8402_v1 }
 0x39e   : > { %6492 = vmatprep.mubr.msk.f32.mxu0 %vm8401_vm0, %v8402_v1 }
 0x39f   : > { %6488 = vmatmul.mubr.msk.f32.vlgmr.msra.gmra.mrb[10].mxu1 %vm1451_vm1, %v9187_v43 }
 0x3a0   : > { %6507 = vmatprep.mubr.msk.f32.mxu1 %vm8401_vm0, %v8402_v1 }
 0x448   : > { %v1521_v14 = vpop.f32.mrb[0].mxu0 }
 0x449   : > { %v6368_v15 = vpop.f32.mrb[1].mxu0  ;;  %v1591_v16 = vpop.f32.mrb[0].mxu1  ;;  %v1522_v32 = vadd.f32 %v6078_v26, %v1521_v14 }
 0x44a   : > { %v6379_v17 = vpop.f32.mrb[1].mxu1  ;;  %v1592_v36 = vadd.f32 %v6079_v33, %v1591_v16 }
 0x450   : > { %v1661_v19 = vpop.f32.mrb[2].mxu0 }
 0x451   : > { %v6390_v20 = vpop.f32.mrb[3].mxu0  ;;  %v1731_v21 = vpop.f32.mrb[2].mxu1  ;;  %v1662_v45 = vadd.f32 %v6080_v38, %v1661_v19  ;;  %v6096_v19 = vld [vmem:[#allocation16 + $0x2] ss:$0 sm:$0xff] }
 0x452   : > { %v6401_v22 = vpop.f32.mrb[3].mxu1  ;;  %v1732_v46 = vadd.f32 %v6081_v42, %v1731_v21 }
 0x458   : > { %v1848_v24 = vpop.f32.mrb[4].mxu0 }
 0x459   : > { %v1849_v27 = vadd.f32 %v6086_v23, %v1848_v24  ;;  %v6412_v28 = vpop.f32.mrb[5].mxu0  ;;  %v1918_v29 = vpop.f32.mrb[4].mxu1 }
 0x45a   : > { %v6423_v30 = vpop.f32.mrb[5].mxu1  ;;  %v1919_v31 = vadd.f32 %v6087_v25, %v1918_v29  ;;  %v6097_v25 = vld [vmem:[#allocation16 + $0x3] ss:$0 sm:$0xff] }
 0x45b   : > { %6491 = vmatpush3.xpose.msk.msra.mxu0 %vm2391_vm2, %v1849_v27 }
 0x45c   : > { %6495 = vmatprep.subr.mxu0 %v8402_v1 }
 0x45e   : > { %6493 = vmatmul.mubr.msk.f32.vlgmr.msra.gmra.mrb[12].mxu0 %vm2391_vm2, %v1522_v32 }
 0x45f   : > { %6496 = vmatpush3.xpose.msk.msra.mxu0 %vm2391_vm2, %v1919_v31  ;;  %6497 = vmatprep.mubr.msk.f32.mxu0 %vm8401_vm0, %v8402_v1 }
 0x460   : > { %v1988_v37 = vpop.f32.mrb[6].mxu0  ;;  %6500 = vmatprep.subr.mxu0 %v8402_v1 }
 0x461   : > { %v1989_v39 = vadd.f32 %v6088_v34, %v1988_v37  ;;  %v2058_v40 = vpop.f32.mrb[6].mxu1  ;;  %v6434_v41 = vpop.f32.mrb[7].mxu0  ;;  %v2386_v34 = vld [vmem:[#allocation17] sm:$0xff] }
 0x462   : > { %v2059_v43 = vadd.f32 %v6089_v35, %v2058_v40  ;;  %6498 = vmatmul.mubr.msk.f32.vlgmr.msra.gmra.mrb[14].mxu0 %vm2391_vm2, %v1592_v36  ;;  %v6445_v44 = vpop.f32.mrb[7].mxu1  ;;  %v2387_v35 = vld [vmem:[#allocation17 + $0x8] sm:$0xff] }
 0x463   : > { %6501 = vmatpush3.xpose.msk.msra.mxu0 %vm2391_vm2, %v1989_v39  ;;  %6502 = vmatprep.mubr.msk.f32.mxu0 %vm8401_vm0, %v8402_v1  ;;  %v2388_v44 = vld [vmem:[#allocation17 + $0x10] sm:$0xff] }
 0x464   : > { %6506 = vmatpush3.xpose.msk.msra.mxu1 %vm2391_vm2, %v2059_v43  ;;  %6510 = vmatprep.subr.mxu0 %v8402_v1 }
 0x465   : > { %6515 = vmatprep.subr.mxu1 %v8402_v1 }
 0x466   : > { %6503 = vmatmul.mubr.msk.f32.vlgmr.msra.gmra.mrb[16].mxu0 %vm2391_vm2, %v1662_v45 }
 0x467   : > { %6508 = vmatmul.mubr.msk.f32.vlgmr.msra.gmra.mrb[12].mxu1 %vm2391_vm2, %v1732_v46  ;;  %6512 = vmatprep.mubr.msk.f32.mxu0 %vm8401_vm0, %v8402_v1 }
 0x468   : > { %6517 = vmatprep.mubr.msk.f32.mxu1 %vm8401_vm0, %v8402_v1  ;;  %v2172_v48 = vpop.f32.mrb[8].mxu0 }
 0x469   : > { %v2173_v49 = vadd.f32 %v6094_v47, %v2172_v48  ;;  %v6456_v50 = vpop.f32.mrb[9].mxu0 }
 0x46a   : > { %v2242_v52 = vpop.f32.mrb[8].mxu1 }
 0x46b   : > { %6511 = vmatpush3.msra.mxu0 %v2173_v49  ;;  %v2243_v53 = vadd.f32 %v6095_v51, %v2242_v52  ;;  %v6467_v55 = vpop.f32.mrb[9].mxu1  ;;  %v2389_v49 = vld [vmem:[#allocation17 + $0x18] sm:$0xff] }
 0x46c   : > { %6520 = vmatprep.subr.mxu0 %v8402_v1 }
 0x46d   : > { %6516 = vmatpush3.msra.mxu1 %v2243_v53 }
 0x46e   : > { %6525 = vmatprep.subr.mxu1 %v8402_v1 }
 0x470   : > { %v2312_v54 = vpop.f32.mrb[10].mxu0 }
 0x471   : > { %v6478_v56 = vpop.f32.mrb[11].mxu0  ;;  %v2313_v23 = vadd.f32 %v6096_v19, %v2312_v54 }
 0x472   : > { %v2382_v57 = vpop.f32.mrb[10].mxu1 }
 0x473   : > { %v6489_v58 = vpop.f32.mrb[11].mxu1  ;;  %v2383_v28 = vadd.f32 %v6097_v25, %v2382_v57  ;;  %v3374_v25 = vld [vmem:[#allocation20 + $0x28] sm:$0xff] }
 0x531   : > { %v2464_v59 = vpop.f32.mrb[12].mxu0 }
 0x532   : > { %v6494_v60 = vpop.f32.mrb[13].mxu0  ;;  %v2696_v61 = vsel %vm2391_vm2, %v2464_v59, -inf }
 0x533   : > { %2697 = vmax.xlane.f32.xlu0 %v2696_v61 }
 0x535   : > { %v2540_v62 = vpop.f32.mrb[14].mxu0 }
 0x536   : > { %v6499_v63 = vpop.f32.mrb[15].mxu0  ;;  %v2699_v2 = vsel %vm2391_vm2, %v2540_v62, -inf }
 0x537   : > { %2700 = vmax.xlane.f32.xlu0 %v2699_v2 }
 0x539   : > { %v2616_v3 = vpop.f32.mrb[16].mxu0 }
 0x53a   : > { %v2692_v4 = vpop.f32.mrb[12].mxu1  ;;  %v6504_v5 = vpop.f32.mrb[17].mxu0  ;;  %v2702_v6 = vsel %vm2391_vm2, %v2616_v3, -inf }
 0x53b   : > { %v6509_v7 = vpop.f32.mrb[13].mxu1  ;;  %2703 = vmax.xlane.f32.xlu1 %v2702_v6  ;;  %v2705_v8 = vsel %vm2391_vm2, %v2692_v4, -inf }
 0x53f   : > { %2706 = vmax.xlane.f32.xlu1 %v2705_v8  ;;  %v6118_v8 = vld [vmem:[#allocation19] ss:$0 sm:$0xff] }
 0x5c0   : > { %v2698_v9 = vpop.xlane.xlu0 %2697 }
 0x5c1   : > { %v2708_v10 = vsub.f32 %v2464_v59, %v2698_v9 }
 0x5c3   : > { %v2712_v11 = vmul.f32 1.442695, %v2708_v10 }
 0x5c4   : > { %v2701_v12 = vpop.xlane.xlu0 %2700 }
 0x5c5   : > { %7309 = vpow2.f32 %v2712_v11  ;;  %v2709_v13 = vsub.f32 %v2540_v62, %v2701_v12 }
 0x5c7   : > { %v2714_v14 = vmul.f32 1.442695, %v2709_v13 }
 0x5c8   : > { %v2704_v15 = vpop.xlane.xlu1 %2703 }
 0x5c9   : > { %7311 = vpow2.f32 %v2714_v14  ;;  %v2710_v16 = vsub.f32 %v2616_v3, %v2704_v15 }
 0x5cb   : > { %v2716_v17 = vmul.f32 1.442695, %v2710_v16 }
 0x5cc   : > { %v2707_v20 = vpop.xlane.xlu1 %2706 }
 0x5cd   : > { %7313 = vpow2.f32 %v2716_v17  ;;  %v2711_v21 = vsub.f32 %v2692_v4, %v2707_v20 }
 0x5cf   : > { %v7310_v22 = vpop.eup %7309  ;;  %v2718_v24 = vmul.f32 1.442695, %v2711_v21  ;;  %v3369_v21 = vld [vmem:[#allocation20] sm:$0xff] }
 0x5d0   : > { %6513 = vmatmul.mubr.msk.f32.vlgmr.msra.gmra.mrb[18].mxu0 %vm2391_vm2, %v7310_v22  ;;  %v2720_v26 = vsel %vm2391_vm2, %v7310_v22, 0.0  ;;  %v3370_v22 = vld [vmem:[#allocation20 + $0x8] sm:$0xff] }
 0x5d1   : > { %7315 = vpow2.f32 %v2718_v24  ;;  %6521 = vmatpush3.msra.mxu0 %v2313_v23  ;;  %2721 = vadd.xlane.f32.xlu0 %v2720_v26  ;;  %v3373_v23 = vld [vmem:[#allocation20 + $0x20] sm:$0xff]  ;;  %v6845_v24 = vpack.c.bf16 %v3370_v22, %v3369_v21 }
 0x5d2   : > { %6522 = vmatprep.mubr.msk.f32.mxu0 %vm8401_vm0, %v8402_v1  ;;  %6530 = vmatprep.subr.mxu0 %v8402_v1  ;;  %v6851_v26 = vpack.c.bf16 %v3374_v25, %v3373_v23  ;;  %v4025_v23 = vld [vmem:[#allocation26 + $0x10] sm:$0xff] }
 0x5d3   : > { %v7312_v27 = vpop.eup %7311  ;;  %v4029_v25 = vld [vmem:[#allocation26 + $0x30] sm:$0xff] }
 0x5d4   : > { %6518 = vmatmul.mubr.msk.f32.vlgmr.msra.gmra.mrb[14].mxu1 %vm2391_vm2, %v7312_v27  ;;  %v2723_v29 = vsel %vm2391_vm2, %v7312_v27, 0.0  ;;  %v3372_v27 = vld [vmem:[#allocation20 + $0x18] sm:$0xff] }
 0x5d5   : > { %6526 = vmatpush3.msra.mxu1 %v2383_v28  ;;  %2724 = vadd.xlane.f32.xlu1 %v2723_v29  ;;  %v3375_v28 = vld [vmem:[#allocation20 + $0x30] sm:$0xff] }
 0x5d6   : > { %6527 = vmatprep.mubr.msk.f32.mxu1 %vm8401_vm0, %v8402_v1  ;;  %6535 = vmatprep.subr.mxu1 %v8402_v1 }
 0x5d7   : > { %v7314_v30 = vpop.eup %7313 }
 0x5d8   : > { %6523 = vmatmul.mubr.msk.f32.vlgmr.msra.gmra.mrb[20].mxu0 %vm2391_vm2, %v7314_v30  ;;  %v2726_v31 = vsel %vm2391_vm2, %v7314_v30, 0.0  ;;  %v3376_v30 = vld [vmem:[#allocation20 + $0x38] sm:$0xff] }
 0x5d9   : > { %2727 = vadd.xlane.f32.xlu0 %v2726_v31  ;;  %6532 = vmatprep.mubr.msk.f32.mxu0 %vm8401_vm0, %v8402_v1  ;;  %v6854_v31 = vpack.c.bf16 %v3376_v30, %v3375_v28  ;;  %v4031_v28 = vld [vmem:[#allocation26 + $0x40] sm:$0xff] }
 0x5da   : > { %6531 = vmatpush3.msra.mxu0 %v2386_v34 }
 0x5db   : > { %v7316_v32 = vpop.eup %7315  ;;  %6540 = vmatprep.subr.mxu0 %v8402_v1 }
 0x5dc   : > { %6528 = vmatmul.mubr.msk.f32.vlgmr.msra.gmra.mrb[16].mxu1 %vm2391_vm2, %v7316_v32  ;;  %v2729_v33 = vsel %vm2391_vm2, %v7316_v32, 0.0 }
 0x5dd   : > { %2730 = vadd.xlane.f32.xlu1 %v2729_v33  ;;  %6537 = vmatprep.mubr.msk.f32.mxu1 %vm8401_vm0, %v8402_v1 }
 0x5de   : > { %6536 = vmatpush3.msra.mxu1 %v2387_v35 }
 0x5df   : > { %6545 = vmatprep.subr.mxu1 %v8402_v1 }
 0x65e   : > { %v2722_v36 = vpop.xlane.xlu0 %2721 }
 0x65f   : > { %7317 = vrcp.f32 %v2722_v36  ;;  %v6119_v36 = vld [vmem:[#allocation38] ss:$0 sm:$0xff] }
 0x662   : > { %v2725_v37 = vpop.xlane.xlu1 %2724 }
 0x663   : > { %7319 = vrcp.f32 %v2725_v37  ;;  %v3377_v37 = vld [vmem:[#allocation20 + $0x40] sm:$0xff] }
 0x666   : > { %v2728_v38 = vpop.xlane.xlu0 %2727 }
 0x667   : > { %7321 = vrcp.f32 %v2728_v38 }
 0x669   : > { %v7318_v40 = vpop.eup %7317 }
 0x66a   : > { %v2731_v39 = vpop.xlane.xlu1 %2730 }
 0x66b   : > { %7323 = vrcp.f32 %v2731_v39  ;;  %v3378_v39 = vld [vmem:[#allocation20 + $0x48] sm:$0xff] }
 0x66d   : > { %v7320_v45 = vpop.eup %7319 }
 0x671   : > { %v7322_v50 = vpop.eup %7321 }
 0x675   : > { %v7324_v54 = vpop.eup %7323 }
 0x6a3   : > { %v2805_v41 = vpop.f32.mrb[18].mxu0 }
 0x6a4   : > { %v3028_v42 = vmul.f32 %v7318_v40, %v2805_v41  ;;  %v6514_v43 = vpop.f32.mrb[19].mxu0  ;;  %v3381_v40 = vld [vmem:[#allocation20 + $0x60] sm:$0xff]  ;;  %v3382_v41 = vld [vmem:[#allocation20 + $0x68] sm:$0xff] }
 0x6a6   : > { %6533 = vmatmul.mubr.msk.f32.vlgmr.msra.gmra.mrb[22].mxu0 %vm2391_vm2, %v3028_v42  ;;  %v6120_v42 = vld [vmem:[#allocation40] ss:$0 sm:$0xff] }
 0x6a7   : > { %v2878_v46 = vpop.f32.mrb[14].mxu1  ;;  %6541 = vmatpush3.msra.mxu0 %v2388_v44  ;;  %6542 = vmatprep.mubr.msk.f32.mxu0 %vm8401_vm0, %v8402_v1  ;;  %v6857_v44 = vpack.c.bf16 %v3378_v39, %v3377_v37 }
 0x6a8   : > { %v3029_v47 = vmul.f32 %v7320_v45, %v2878_v46  ;;  %v6519_v48 = vpop.f32.mrb[15].mxu1  ;;  %6844 = vmatprep.subr.bf16.mxu0 %v8400_v0  ;;  %v6863_v45 = vpack.c.bf16 %v3382_v41, %v3381_v40  ;;  %v3379_v46 = vld [vmem:[#allocation20 + $0x50] sm:$0xff] }
 0x6a9   : > { %v3380_v48 = vld [vmem:[#allocation20 + $0x58] sm:$0xff] }
 0x6aa   : > { %6538 = vmatmul.mubr.msk.f32.vlgmr.msra.gmra.mrb[18].mxu1 %vm2391_vm2, %v3029_v47 }
 0x6ab   : > { %v2951_v51 = vpop.f32.mrb[20].mxu0  ;;  %6546 = vmatpush3.msra.mxu1 %v2389_v49  ;;  %6547 = vmatprep.mubr.msk.f32.mxu1 %vm8401_vm0, %v8402_v1  ;;  %v3383_v49 = vld [vmem:[#allocation20 + $0x70] sm:$0xff] }
 0x6ac   : > { %v3030_v52 = vmul.f32 %v7322_v50, %v2951_v51  ;;  %v6524_v53 = vpop.f32.mrb[21].mxu0  ;;  %6850 = vmatprep.subr.bf16.mxu1 %v8400_v0  ;;  %v3384_v50 = vld [vmem:[#allocation20 + $0x78] sm:$0xff]  ;;  %v6860_v51 = vpack.c.bf16 %v3380_v48, %v3379_v46 }
 0x6ad   : > { %v3696_v53 = vld [vmem:[#allocation23] sm:$0xff] }
 0x6ae   : > { %6543 = vmatmul.mubr.msk.f32.vlgmr.msra.gmra.mrb[24].mxu0 %vm2391_vm2, %v3030_v52  ;;  %v6866_v52 = vpack.c.bf16 %v3384_v50, %v3383_v49  ;;  %v6129_v49 = vld [vmem:[#allocation25] ss:$0 sm:$0xff]  ;;  %v6130_v50 = vld [vmem:[#allocation25 + $0x1] ss:$0 sm:$0xff] }
 0x6af   : > { %v3024_v55 = vpop.f32.mrb[16].mxu1  ;;  %6558 = vmatprep.mubr.msk.f32.mxu0 %vm8401_vm0, %v8402_v1  ;;  %6846 = vmatpush3.bf16.msra.mxu0 %v6845_v24  ;;  %v4026_v24 = vld [vmem:[#allocation26 + $0x18] sm:$0xff] }
 0x6b0   : > { %v3031_v56 = vmul.f32 %v7324_v54, %v3024_v55  ;;  %v6529_v57 = vpop.f32.mrb[17].mxu1  ;;  %6847 = vmatprep.subr.bf16.mxu0 %v8400_v0  ;;  %v3697_v54 = vld [vmem:[#allocation23 + $0x8] sm:$0xff]  ;;  %v3700_v55 = vld [vmem:[#allocation23 + $0x20] sm:$0xff] }
 0x6b1   : > { %v6869_v57 = vpack.c.bf16 %v3697_v54, %v3696_v53  ;;  %v6121_v53 = vld [vmem:[#allocation22] ss:$0 sm:$0xff]  ;;  %v6122_v54 = vld [vmem:[#allocation22 + $0x1] ss:$0 sm:$0xff] }
 0x6b2   : > { %6548 = vmatmul.mubr.msk.f32.vlgmr.msra.gmra.mrb[20].mxu1 %vm2391_vm2, %v3031_v56  ;;  %v3701_v56 = vld [vmem:[#allocation23 + $0x28] sm:$0xff] }
 0x6b3   : > { %6569 = vmatprep.mubr.msk.f32.mxu1 %vm8401_vm0, %v8402_v1  ;;  %6852 = vmatpush3.bf16.msra.mxu1 %v6851_v26  ;;  %v6896_v26 = vpack.c.bf16 %v4026_v24, %v4025_v23 }
 0x6b4   : > { %6853 = vmatprep.subr.bf16.mxu1 %v8400_v0 }
 0x6b7   : > { %6855 = vmatpush3.bf16.msra.mxu1 %v6854_v31  ;;  %v4035_v31 = vld [vmem:[#allocation26 + $0x60] sm:$0xff] }
 0x6b8   : > { %6862 = vmatprep.subr.bf16.mxu1 %v8400_v0 }
 0x779   : > { %v3101_v58 = vpop.f32.mrb[22].mxu0 }
 0x77a   : > { %v6534_v59 = vpop.f32.mrb[23].mxu0  ;;  %v3324_v61 = vsel %vm1451_vm1, %v3101_v58, 0.0  ;;  %v6875_v58 = vpack.c.bf16 %v3701_v56, %v3700_v55 }
 0x77b   : > { %v3698_v59 = vld [vmem:[#allocation23 + $0x10] sm:$0xff] }
 0x77d   : > { %v3174_v60 = vpop.f32.mrb[18].mxu1 }
 0x77e   : > { %v3325_v62 = vsel %vm1451_vm1, %v3174_v60, 0.0  ;;  %v6539_v63 = vpop.f32.mrb[19].mxu1  ;;  %v3699_v60 = vld [vmem:[#allocation23 + $0x18] sm:$0xff] }
 0x77f   : > { %v3326_v2 = vadd.f32 %v3325_v62, %v3324_v61  ;;  %v3702_v61 = vld [vmem:[#allocation23 + $0x30] sm:$0xff]  ;;  %v3703_v62 = vld [vmem:[#allocation23 + $0x38] sm:$0xff]  ;;  %v6872_v63 = vpack.c.bf16 %v3699_v60, %v3698_v59 }
 0x781   : > { %v3247_v3 = vpop.f32.mrb[24].mxu0 }
 0x782   : > { %v3327_v4 = vsel %vm1451_vm1, %v3247_v3, 0.0  ;;  %v6544_v5 = vpop.f32.mrb[25].mxu0  ;;  %v3704_v3 = vld [vmem:[#allocation23 + $0x40] sm:$0xff] }
 0x783   : > { %v3328_v6 = vadd.f32 %v3327_v4, %v3326_v2  ;;  %v6878_v2 = vpack.c.bf16 %v3703_v62, %v3702_v61  ;;  %v3705_v4 = vld [vmem:[#allocation23 + $0x48] sm:$0xff]  ;;  %v3708_v5 = vld [vmem:[#allocation23 + $0x60] sm:$0xff] }
 0x784   : > { %v6131_v61 = vld [vmem:[#allocation25 + $0x2] ss:$0 sm:$0xff]  ;;  %v6132_v62 = vld [vmem:[#allocation25 + $0x3] ss:$0 sm:$0xff] }
 0x785   : > { %v3320_v7 = vpop.f32.mrb[20].mxu1 }
 0x786   : > { %v3329_v9 = vsel %vm1451_vm1, %v3320_v7, 0.0  ;;  %v6549_v10 = vpop.f32.mrb[21].mxu1  ;;  %v9332_v7 = vld [vmem:[%s1208_s11] sm:$0xff] }
 0x787   : > { %v3330_v11 = vadd.f32 %v3329_v9, %v3328_v6  ;;  %v3709_v6 = vld [vmem:[#allocation23 + $0x68] sm:$0xff]  ;;  %v3706_v10 = vld [vmem:[#allocation23 + $0x50] sm:$0xff] }
 0x788   : > { %v6887_v9 = vpack.c.bf16 %v3709_v6, %v3708_v5 }
 0x789   : > { %v3337_v12 = vadd.f32 %v6118_v8, %v3330_v11  ;;  %v6881_v8 = vpack.c.bf16 %v3705_v4, %v3704_v3  ;;  %v3707_v11 = vld [vmem:[#allocation23 + $0x58] sm:$0xff] }
 0x78a   : > { %v6123_v3 = vld [vmem:[#allocation22 + $0x2] ss:$0 sm:$0xff]  ;;  %v6124_v4 = vld [vmem:[#allocation22 + $0x3] ss:$0 sm:$0xff] }
 0x78b   : > { %v3338_v13 = vadd.f32 %v3337_v12, %v9159_v18  ;;  %v3371_v18 = vld [vmem:[#allocation20 + $0x10] sm:$0xff] }
 0x78c   : > { %v6848_v29 = vpack.c.bf16 %v3372_v27, %v3371_v18  ;;  %v3710_v12 = vld [vmem:[#allocation23 + $0x70] sm:$0xff]  ;;  %v4030_v18 = vld [vmem:[#allocation26 + $0x38] sm:$0xff] }
 0x78d   : > { %v3341_v14 = vsel %vm1451_vm1, %v3338_v13, 0.0  ;;  %v6902_v27 = vpack.c.bf16 %v4030_v18, %v4029_v25 }
 0x78e   : > { %3342 = vadd.xlane.f32.xlu0 %v3341_v14  ;;  %6849 = vmatpush3.bf16.msra.mxu0 %v6848_v29  ;;  %v6884_v14 = vpack.c.bf16 %v3707_v11, %v3706_v10  ;;  %v4032_v29 = vld [vmem:[#allocation26 + $0x48] sm:$0xff]  ;;  %v6137_v11 = vld [vmem:[#allocation28] ss:$0 sm:$0xff] }
 0x78f   : > { %6856 = vmatprep.subr.bf16.mxu0 %v8400_v0  ;;  %v6905_v30 = vpack.c.bf16 %v4032_v29, %v4031_v28 }
 0x81b   : > { %v3343_v15 = vpop.xlane.xlu0 %3342 }
 0x81c   : > { %v3345_v16 = vmul.f32 0.03125, %v3343_v15 }
 0x81e   : > { %v3346_v17 = vsub.f32 %v3338_v13, %v3345_v16  ;;  %v3711_v13 = vld [vmem:[#allocation23 + $0x78] sm:$0xff]  ;;  %v4023_v16 = vld [vmem:[#allocation26] sm:$0xff] }
 0x81f   : > { %v6890_v15 = vpack.c.bf16 %v3711_v13, %v3710_v12  ;;  %v6138_v12 = vld [vmem:[#allocation28 + $0x1] ss:$0 sm:$0xff] }
 0x820   : > { %v3347_v19 = vmul.f32 %v3346_v17, %v3346_v17 }
 0x822   : > { %v3348_v20 = vsel %vm1451_vm1, %v3347_v19, 0.0  ;;  %v4027_v19 = vld [vmem:[#allocation26 + $0x20] sm:$0xff] }
 0x823   : > { %3349 = vadd.xlane.f32.xlu1 %v3348_v20  ;;  %v4028_v20 = vld [vmem:[#allocation26 + $0x28] sm:$0xff] }
 0x824   : > { %v6899_v22 = vpack.c.bf16 %v4028_v20, %v4027_v19 }
 0x8b0   : > { %v3350_v32 = vpop.xlane.xlu1 %3349 }
 0x8b1   : > { %v3351_v33 = vmul.f32 0.03125, %v3350_v32  ;;  %v4036_v32 = vld [vmem:[#allocation26 + $0x68] sm:$0xff] }
 0x8b3   : > { %v3352_v34 = vadd.f32 1e-05, %v3351_v33  ;;  %v6911_v33 = vpack.c.bf16 %v4036_v32, %v4035_v31 }
 0x8b5   : > { %7325 = vrsqrt.f32 %v3352_v34  ;;  %v4033_v34 = vld [vmem:[#allocation26 + $0x50] sm:$0xff] }
 0x8bf   : > { %v7326_v35 = vpop.eup %7325 }
 0x8c0   : > { %v3354_v38 = vmul.f32 %v7326_v35, %v3346_v17  ;;  %v4024_v17 = vld [vmem:[#allocation26 + $0x8] sm:$0xff]  ;;  %v4034_v35 = vld [vmem:[#allocation26 + $0x58] sm:$0xff] }
 0x8c1   : > { %v6893_v21 = vpack.c.bf16 %v4024_v17, %v4023_v16  ;;  %v6908_v37 = vpack.c.bf16 %v4034_v35, %v4033_v34 }
 0x8c2   : > { %v3361_v43 = vmul.f32 %v6119_v36, %v3354_v38  ;;  %v4037_v36 = vld [vmem:[#allocation26 + $0x70] sm:$0xff]  ;;  %v4038_v38 = vld [vmem:[#allocation26 + $0x78] sm:$0xff] }
 0x8c3   : > { %v6914_v39 = vpack.c.bf16 %v4038_v38, %v4037_v36 }
 0x8c4   : > { %v9306_v47 = vadd.f32 %v6120_v42, %v3361_v43 }
 0x8c6   : > { %6559 = vmatmul.mubr.msk.f32.vlgmr.msra.gmra.mrb[26].mxu0 %vm1451_vm1, %v9306_v47  ;;  %6570 = vmatmul.mubr.msk.f32.vlgmr.msra.gmra.mrb[22].mxu1 %vm1451_vm1, %v9306_v47 }
 0x8c7   : > { %6858 = vmatpush3.bf16.msra.mxu0 %v6857_v44  ;;  %6864 = vmatpush3.bf16.msra.mxu1 %v6863_v45 }
 0x8c8   : > { %6859 = vmatprep.subr.bf16.mxu0 %v8400_v0  ;;  %6865 = vmatprep.subr.bf16.mxu1 %v8400_v0 }
 0x8c9   : > { %6580 = vmatprep.mubr.msk.f32.mxu0 %vm8401_vm0, %v8402_v1  ;;  %6591 = vmatprep.mubr.msk.f32.mxu1 %vm8401_vm0, %v8402_v1 }
 0x8cb   : > { %6861 = vmatpush3.bf16.msra.mxu0 %v6860_v51  ;;  %6867 = vmatpush3.bf16.msra.mxu1 %v6866_v52 }
 0x8cc   : > { %6868 = vmatprep.subr.bf16.mxu0 %v8400_v0  ;;  %6874 = vmatprep.subr.bf16.mxu1 %v8400_v0 }
 0x8ce   : > { %6581 = vmatmul.mubr.msk.f32.vlgmr.msra.gmra.mrb[28].mxu0 %vm1451_vm1, %v9306_v47  ;;  %6592 = vmatmul.mubr.msk.f32.vlgmr.msra.gmra.mrb[24].mxu1 %vm1451_vm1, %v9306_v47 }
 0x8cf   : > { %6870 = vmatpush3.bf16.msra.mxu0 %v6869_v57  ;;  %6876 = vmatpush3.bf16.msra.mxu1 %v6875_v58 }
 0x8d0   : > { %6871 = vmatprep.subr.bf16.mxu0 %v8400_v0  ;;  %6877 = vmatprep.subr.bf16.mxu1 %v8400_v0 }
 0x8d1   : > { %6602 = vmatprep.mubr.msk.f32.mxu0 %vm8401_vm0, %v8402_v1  ;;  %6613 = vmatprep.mubr.msk.f32.mxu1 %vm8401_vm0, %v8402_v1 }
 0x8d3   : > { %6873 = vmatpush3.bf16.msra.mxu0 %v6872_v63  ;;  %6879 = vmatpush3.bf16.msra.mxu1 %v6878_v2 }
 0x8d4   : > { %6880 = vmatprep.subr.bf16.mxu0 %v8400_v0  ;;  %6886 = vmatprep.subr.bf16.mxu1 %v8400_v0 }
 0x8d6   : > { %6603 = vmatmul.mubr.msk.f32.vlgmr.msra.gmra.mrb[30].mxu0 %vm1451_vm1, %v9332_v7  ;;  %6614 = vmatmul.mubr.msk.f32.vlgmr.msra.gmra.mrb[26].mxu1 %vm1451_vm1, %v9332_v7 }
 0x8d7   : > { %6882 = vmatpush3.bf16.msra.mxu0 %v6881_v8  ;;  %6888 = vmatpush3.bf16.msra.mxu1 %v6887_v9 }
 0x8d8   : > { %6883 = vmatprep.subr.bf16.mxu0 %v8400_v0  ;;  %6889 = vmatprep.subr.bf16.mxu1 %v8400_v0 }
 0x8d9   : > { %6624 = vmatprep.mubr.msk.f32.mxu0 %vm8401_vm0, %v8402_v1  ;;  %6635 = vmatprep.mubr.msk.f32.mxu1 %vm8401_vm0, %v8402_v1 }
 0x8db   : > { %6885 = vmatpush3.bf16.msra.mxu0 %v6884_v14  ;;  %6891 = vmatpush3.bf16.msra.mxu1 %v6890_v15 }
 0x8dc   : > { %6892 = vmatprep.subr.bf16.mxu0 %v8400_v0  ;;  %6898 = vmatprep.subr.bf16.mxu1 %v8400_v0 }
 0x8de   : > { %6625 = vmatmul.mubr.msk.f32.vlgmr.msra.gmra.mrb[32].mxu0 %vm1451_vm1, %v9332_v7  ;;  %6636 = vmatmul.mubr.msk.f32.vlgmr.msra.gmra.mrb[28].mxu1 %vm1451_vm1, %v9332_v7 }
 0x8df   : > { %6894 = vmatpush3.bf16.msra.mxu0 %v6893_v21  ;;  %6900 = vmatpush3.bf16.msra.mxu1 %v6899_v22 }
 0x8e0   : > { %6895 = vmatprep.subr.bf16.mxu0 %v8400_v0  ;;  %6901 = vmatprep.subr.bf16.mxu1 %v8400_v0 }
 0x8e1   : > { %6646 = vmatprep.mubr.msk.f32.mxu0 %vm8401_vm0, %v8402_v1  ;;  %6657 = vmatprep.mubr.msk.f32.mxu1 %vm8401_vm0, %v8402_v1 }
 0x8e3   : > { %6897 = vmatpush3.bf16.msra.mxu0 %v6896_v26  ;;  %6903 = vmatpush3.bf16.msra.mxu1 %v6902_v27 }
 0x8e4   : > { %6904 = vmatprep.subr.bf16.mxu0 %v8400_v0  ;;  %6910 = vmatprep.subr.bf16.mxu1 %v8400_v0 }
 0x8e6   : > { %6647 = vmatmul.mubr.msk.f32.vlgmr.msra.gmra.mrb[34].mxu0 %vm1451_vm1, %v9332_v7  ;;  %6658 = vmatmul.mubr.msk.f32.vlgmr.msra.gmra.mrb[30].mxu1 %vm1451_vm1, %v9332_v7 }
 0x8e7   : > { %6906 = vmatpush3.bf16.msra.mxu0 %v6905_v30  ;;  %6912 = vmatpush3.bf16.msra.mxu1 %v6911_v33 }
 0x8e8   : > { %6907 = vmatprep.subr.bf16.mxu0 %v8400_v0  ;;  %6913 = vmatprep.subr.bf16.mxu1 %v8400_v0 }
 0x8e9   : > { %6668 = vmatprep.mubr.msk.f32.mxu0 %vm8401_vm0, %v8402_v1  ;;  %6679 = vmatprep.mubr.msk.f32.mxu1 %vm8401_vm0, %v8402_v1 }
 0x8eb   : > { %6909 = vmatpush3.bf16.msra.mxu0 %v6908_v37  ;;  %6915 = vmatpush3.bf16.msra.mxu1 %v6914_v39 }
 0x8ec   : > { %6682 = vmatprep.subr.mxu0 %v8402_v1  ;;  %6687 = vmatprep.subr.mxu1 %v8402_v1 }
 0x8ee   : > { %6669 = vmatmul.mubr.msk.f32.vlgmr.msra.gmra.mrb[36].mxu0 %vm1451_vm1, %v9332_v7  ;;  %6680 = vmatmul.mubr.msk.f32.vlgmr.msra.gmra.mrb[32].mxu1 %vm1451_vm1, %v9332_v7 }
 0x8ef   : > { %6684 = vmatprep.mubr.msk.f32.mxu0 %vm8401_vm0, %v8402_v1  ;;  %6689 = vmatprep.mubr.msk.f32.mxu1 %vm8401_vm0, %v8402_v1 }
 0x999   : > { %v3482_v40 = vpop.f32.mrb[26].mxu0  ;;  %v3552_v41 = vpop.f32.mrb[22].mxu1 }
 0x99a   : > { %v6560_v42 = vpop.f32.mrb[27].mxu0  ;;  %v6571_v43 = vpop.f32.mrb[23].mxu1  ;;  %v3483_v59 = vadd.f32 %v6121_v53, %v3482_v40  ;;  %v3553_v60 = vadd.f32 %v6122_v54, %v3552_v41 }
 0x9a1   : > { %v3622_v44 = vpop.f32.mrb[28].mxu0  ;;  %v3692_v45 = vpop.f32.mrb[24].mxu1 }
 0x9a2   : > { %v6582_v46 = vpop.f32.mrb[29].mxu0  ;;  %v6593_v48 = vpop.f32.mrb[25].mxu1  ;;  %v3623_v9 = vadd.f32 %v6123_v3, %v3622_v44  ;;  %v3693_v10 = vadd.f32 %v6124_v4, %v3692_v45 }
 0x9a9   : > { %v3809_v51 = vpop.f32.mrb[30].mxu0  ;;  %v3879_v52 = vpop.f32.mrb[26].mxu1 }
 0x9aa   : > { %v3810_v55 = vadd.f32 %v6129_v49, %v3809_v51  ;;  %v3880_v56 = vadd.f32 %v6130_v50, %v3879_v52  ;;  %v6604_v57 = vpop.f32.mrb[31].mxu0  ;;  %v6615_v58 = vpop.f32.mrb[27].mxu1 }
 0x9ac   : > { %6683 = vmatpush3.xpose.msk.msra.mxu0 %vm2391_vm2, %v3810_v55  ;;  %6688 = vmatpush3.xpose.msk.msra.mxu1 %vm2391_vm2, %v3880_v56 }
 0x9ad   : > { %6692 = vmatprep.subr.mxu0 %v8402_v1  ;;  %6697 = vmatprep.subr.mxu1 %v8402_v1 }
 0x9af   : > { %6685 = vmatmul.mubr.msk.f32.vlgmr.msra.gmra.mrb[38].mxu0 %vm2391_vm2, %v3483_v59  ;;  %6690 = vmatmul.mubr.msk.f32.vlgmr.msra.gmra.mrb[34].mxu1 %vm2391_vm2, %v3553_v60  ;;  %v6140_v60 = vld [vmem:[#allocation28 + $0x3] ss:$0 sm:$0xff] }
 0x9b0   : > { %6694 = vmatprep.mubr.msk.f32.mxu0 %vm8401_vm0, %v8402_v1  ;;  %6699 = vmatprep.mubr.msk.f32.mxu1 %vm8401_vm0, %v8402_v1 }
 0x9b1   : > { %v3949_v63 = vpop.f32.mrb[32].mxu0  ;;  %v4019_v2 = vpop.f32.mrb[28].mxu1 }
 0x9b2   : > { %v3950_v5 = vadd.f32 %v6131_v61, %v3949_v63  ;;  %v4020_v6 = vadd.f32 %v6132_v62, %v4019_v2  ;;  %v6626_v7 = vpop.f32.mrb[33].mxu0  ;;  %v6637_v8 = vpop.f32.mrb[29].mxu1  ;;  %v6139_v62 = vld [vmem:[#allocation28 + $0x2] ss:$0 sm:$0xff] }
 0x9b4   : > { %6693 = vmatpush3.xpose.msk.msra.mxu0 %vm2391_vm2, %v3950_v5  ;;  %6698 = vmatpush3.xpose.msk.msra.mxu1 %vm2391_vm2, %v4020_v6 }
 0x9b5   : > { %6702 = vmatprep.subr.mxu0 %v8402_v1  ;;  %6707 = vmatprep.subr.mxu1 %v8402_v1 }
 0x9b7   : > { %6695 = vmatmul.mubr.msk.f32.vlgmr.msra.gmra.mrb[40].mxu0 %vm2391_vm2, %v3623_v9  ;;  %6700 = vmatmul.mubr.msk.f32.vlgmr.msra.gmra.mrb[36].mxu1 %vm2391_vm2, %v3693_v10 }
 0x9b8   : > { %6704 = vmatprep.mubr.msk.f32.mxu0 %vm8401_vm0, %v8402_v1  ;;  %6709 = vmatprep.mubr.msk.f32.mxu1 %vm8401_vm0, %v8402_v1 }
 0x9b9   : > { %v4133_v13 = vpop.f32.mrb[34].mxu0  ;;  %v4203_v16 = vpop.f32.mrb[30].mxu1 }
 0x9ba   : > { %v4134_v14 = vadd.f32 %v6137_v11, %v4133_v13  ;;  %v6648_v15 = vpop.f32.mrb[35].mxu0  ;;  %v4204_v17 = vadd.f32 %v6138_v12, %v4203_v16  ;;  %v6659_v19 = vpop.f32.mrb[31].mxu1 }
 0x9bb   : > { %v4347_v19 = vld [vmem:[#allocation29] sm:$0xff] }
 0x9bc   : > { %6703 = vmatpush3.msra.mxu0 %v4134_v14  ;;  %6708 = vmatpush3.msra.mxu1 %v4204_v17 }
 0x9bd   : > { %6712 = vmatprep.subr.mxu0 %v8402_v1  ;;  %6717 = vmatprep.subr.mxu1 %v8402_v1 }
 0x9c1   : > { %v9402_v20 = vpop.f32.mrb[36].mxu0  ;;  %v4343_v21 = vpop.f32.mrb[32].mxu1 }
 0x9c2   : > { %v6670_v22 = vpop.f32.mrb[37].mxu0  ;;  %v6681_v23 = vpop.f32.mrb[33].mxu1  ;;  %v4344_v3 = vadd.f32 %v6140_v60, %v4343_v21  ;;  %v4274_v5 = vadd.f32 %v6139_v62, %v9402_v20  ;;  %v4348_v20 = vld [vmem:[#allocation29 + $0x8] sm:$0xff]  ;;  %v4350_v21 = vld [vmem:[#allocation29 + $0x18] sm:$0xff] }
 0x9c3   : > { %v4349_v23 = vld [vmem:[#allocation29 + $0x10] sm:$0xff] }
 0x9c4   : > { %v5423_v60 = vld [vmem:[#allocation35 + $0x8] sm:$0xff] }
 0xa82   : > { %v4424_v24 = vpop.f32.mrb[38].mxu0  ;;  %v4500_v25 = vpop.f32.mrb[34].mxu1 }
 0xa83   : > { %v6686_v26 = vpop.f32.mrb[39].mxu0  ;;  %v6691_v18 = vpop.f32.mrb[35].mxu1  ;;  %v4659_v27 = vsel %vm2391_vm2, %v4500_v25, -inf  ;;  %v4656_v28 = vsel %vm2391_vm2, %v4424_v24, -inf }
 0xa84   : > { %4660 = vmax.xlane.f32.xlu1 %v4659_v27  ;;  %4657 = vmax.xlane.f32.xlu0 %v4656_v28 }
 0xa8a   : > { %v4576_v29 = vpop.f32.mrb[40].mxu0  ;;  %v4652_v30 = vpop.f32.mrb[36].mxu1 }
 0xa8b   : > { %v6696_v31 = vpop.f32.mrb[41].mxu0  ;;  %v6701_v32 = vpop.f32.mrb[37].mxu1  ;;  %v4665_v33 = vsel %vm2391_vm2, %v4652_v30, -inf  ;;  %v4662_v34 = vsel %vm2391_vm2, %v4576_v29, -inf }
 0xa8c   : > { %4666 = vmax.xlane.f32.xlu1 %v4665_v33  ;;  %4663 = vmax.xlane.f32.xlu0 %v4662_v34 }
 0xb11   : > { %v4661_v35 = vpop.xlane.xlu1 %4660  ;;  %v4658_v36 = vpop.xlane.xlu0 %4657 }
 0xb12   : > { %v4669_v37 = vsub.f32 %v4500_v25, %v4661_v35  ;;  %v4668_v38 = vsub.f32 %v4424_v24, %v4658_v36 }
 0xb14   : > { %v4674_v39 = vmul.f32 1.442695, %v4669_v37  ;;  %v4672_v40 = vmul.f32 1.442695, %v4668_v38 }
 0xb16   : > { %7327 = vpow2.f32 %v4674_v39 }
 0xb17   : > { %7329 = vpow2.f32 %v4672_v40 }
 0xb19   : > { %v4667_v41 = vpop.xlane.xlu1 %4666  ;;  %v4664_v42 = vpop.xlane.xlu0 %4663 }
 0xb1a   : > { %v4671_v43 = vsub.f32 %v4652_v30, %v4667_v41  ;;  %v4670_v44 = vsub.f32 %v4576_v29, %v4664_v42 }
 0xb1c   : > { %v4678_v45 = vmul.f32 1.442695, %v4671_v43  ;;  %v4676_v46 = vmul.f32 1.442695, %v4670_v44  ;;  %v6161_v43 = vld [vmem:[#allocation31] ss:$0 sm:$0xff] }
 0xb1e   : > { %7331 = vpow2.f32 %v4678_v45 }
 0xb1f   : > { %7333 = vpow2.f32 %v4676_v46 }
 0xb20   : > { %v7328_v48 = vpop.eup %7327 }
 0xb21   : > { %v7330_v49 = vpop.eup %7329  ;;  %v4683_v50 = vsel %vm2391_vm2, %v7328_v48, 0.0 }
 0xb22   : > { %4684 = vadd.xlane.f32.xlu1 %v4683_v50  ;;  %v4680_v51 = vsel %vm2391_vm2, %v7330_v49, 0.0 }
 0xb23   : > { %4681 = vadd.xlane.f32.xlu0 %v4680_v51 }
 0xb28   : > { %v7332_v52 = vpop.eup %7331 }
 0xb29   : > { %v7334_v53 = vpop.eup %7333  ;;  %v4689_v54 = vsel %vm2391_vm2, %v7332_v52, 0.0 }
 0xb2a   : > { %4690 = vadd.xlane.f32.xlu1 %v4689_v54  ;;  %v4686_v55 = vsel %vm2391_vm2, %v7334_v53, 0.0  ;;  %v5337_v54 = vld [vmem:[#allocation32] sm:$0xff] }
 0xb2b   : > { %4687 = vadd.xlane.f32.xlu0 %v4686_v55  ;;  %v5338_v55 = vld [vmem:[#allocation32 + $0x8] sm:$0xff] }
 0xbaf   : > { %v4685_v56 = vpop.xlane.xlu1 %4684 }
 0xbb0   : > { %7335 = vrcp.f32 %v4685_v56  ;;  %v4682_v57 = vpop.xlane.xlu0 %4681  ;;  %v6917_v56 = vpack.c.bf16 %v5338_v55, %v5337_v54 }
 0xbb1   : > { %7337 = vrcp.f32 %v4682_v57  ;;  %v5339_v57 = vld [vmem:[#allocation32 + $0x10] sm:$0xff] }
 0xbb7   : > { %v4691_v58 = vpop.xlane.xlu1 %4690 }
 0xbb8   : > { %7339 = vrcp.f32 %v4691_v58  ;;  %v4688_v59 = vpop.xlane.xlu0 %4687  ;;  %v5340_v58 = vld [vmem:[#allocation32 + $0x18] sm:$0xff] }
 0xbb9   : > { %7341 = vrcp.f32 %v4688_v59  ;;  %v6920_v59 = vpack.c.bf16 %v5340_v58, %v5339_v57 }
 0xbba   : > { %v7336_v61 = vpop.eup %7335 }
 0xbbb   : > { %v7338_v63 = vpop.eup %7337  ;;  %v4697_v2 = vmul.f32 %v7336_v61, %v7328_v48  ;;  %v5424_v61 = vld [vmem:[#allocation35 + $0x10] sm:$0xff] }
 0xbbc   : > { %v4696_v4 = vmul.f32 %v7338_v63, %v7330_v49  ;;  %v5425_v63 = vld [vmem:[#allocation35 + $0x18] sm:$0xff] }
 0xbbd   : > { %6710 = vmatmul.mubr.msk.f32.vlgmr.msra.gmra.mrb[38].mxu1 %vm2391_vm2, %v4697_v2  ;;  %v4993_v7 = vsel %vm2391_vm2, %v4697_v2, 0.0  ;;  %v6926_v2 = vpack.c.bf16 %v5425_v63, %v5424_v61 }
 0xbbe   : > { %6705 = vmatmul.mubr.msk.f32.vlgmr.msra.gmra.mrb[42].mxu0 %vm2391_vm2, %v4696_v4  ;;  %6718 = vmatpush3.msra.mxu1 %v4344_v3  ;;  %v4992_v8 = vsel %vm2391_vm2, %v4696_v4, 0.0  ;;  %v5426_v3 = vld [vmem:[#allocation35 + $0x20] sm:$0xff]  ;;  %v5427_v4 = vld [vmem:[#allocation35 + $0x28] sm:$0xff] }
 0xbbf   : > { %6713 = vmatpush3.msra.mxu0 %v4274_v5  ;;  %6714 = vmatprep.mubr.msk.f32.mxu0 %vm8401_vm0, %v8402_v1  ;;  %v4994_v12 = vadd.f32 %v4993_v7, %v4992_v8  ;;  %v6929_v5 = vpack.c.bf16 %v5427_v4, %v5426_v3 }
 0xbc0   : > { %6719 = vmatprep.mubr.msk.f32.mxu1 %vm8401_vm0, %v8402_v1  ;;  %6722 = vmatprep.subr.mxu0 %v8402_v1 }
 0xbc1   : > { %6727 = vmatprep.subr.mxu1 %v8402_v1 }
 0xbc2   : > { %v7340_v6 = vpop.eup %7339 }
 0xbc3   : > { %v7342_v9 = vpop.eup %7341  ;;  %v4699_v10 = vmul.f32 %v7340_v6, %v7332_v52 }
 0xbc4   : > { %v4698_v11 = vmul.f32 %v7342_v9, %v7334_v53 }
 0xbc5   : > { %6720 = vmatmul.mubr.msk.f32.vlgmr.msra.gmra.mrb[40].mxu1 %vm2391_vm2, %v4699_v10  ;;  %v4997_v15 = vsel %vm2391_vm2, %v4699_v10, 0.0  ;;  %v6162_v10 = vld [vmem:[#allocation41] ss:$0 sm:$0xff] }
 0xbc6   : > { %v4995_v13 = vsel %vm2391_vm2, %v4698_v11, 0.0  ;;  %6715 = vmatmul.mubr.msk.f32.vlgmr.msra.gmra.mrb[44].mxu0 %vm2391_vm2, %v4698_v11  ;;  %6729 = vmatprep.mubr.msk.f32.mxu1 %vm8401_vm0, %v8402_v1 }
 0xbc7   : > { %v4996_v14 = vadd.f32 %v4995_v13, %v4994_v12  ;;  %6724 = vmatprep.mubr.msk.f32.mxu0 %vm8401_vm0, %v8402_v1  ;;  %6723 = vmatpush3.msra.mxu0 %v4347_v19  ;;  %v6163_v12 = vld [vmem:[#allocation43] ss:$0 sm:$0xff]  ;;  %v6164_v19 = vld [vmem:[#allocation34] ss:$0 sm:$0xff] }
 0xbc8   : > { %6728 = vmatpush3.msra.mxu1 %v4348_v20  ;;  %6732 = vmatprep.subr.mxu0 %v8402_v1 }
 0xbc9   : > { %v4998_v16 = vadd.f32 %v4997_v15, %v4996_v14  ;;  %6737 = vmatprep.subr.mxu1 %v8402_v1  ;;  %v5428_v15 = vld [vmem:[#allocation35 + $0x30] sm:$0xff] }
 0xbcb   : > { %v5000_v17 = vmul.f32 0.25, %v4998_v16  ;;  %v5429_v16 = vld [vmem:[#allocation35 + $0x38] sm:$0xff] }
 0xbcd   : > { %5542 = vst.msk [vmem:[%s1403_s26] sm:$0xff] %vm2391_vm2, %v5000_v17  ;;  %v6932_v17 = vpack.c.bf16 %v5429_v16, %v5428_v15 }
 0xc90   : > { %v4842_v22 = vpop.f32.mrb[38].mxu1 }
 0xc91   : > { %v4769_v24 = vpop.f32.mrb[42].mxu0  ;;  %v6711_v25 = vpop.f32.mrb[39].mxu1  ;;  %6730 = vmatmul.mubr.msk.f32.vlgmr.msra.gmra.mrb[42].mxu1 %vm2391_vm2, %v4842_v22 }
 0xc92   : > { %v6706_v26 = vpop.f32.mrb[43].mxu0  ;;  %6725 = vmatmul.mubr.msk.f32.vlgmr.msra.gmra.mrb[46].mxu0 %vm2391_vm2, %v4769_v24  ;;  %6738 = vmatpush3.msra.mxu1 %v4350_v21 }
 0xc93   : > { %6733 = vmatpush3.msra.mxu0 %v4349_v23  ;;  %6734 = vmatprep.mubr.msk.f32.mxu0 %vm8401_vm0, %v8402_v1  ;;  %v6166_v23 = vld [vmem:[#allocation37] ss:$0 sm:$0xff] }
 0xc94   : > { %6739 = vmatprep.mubr.msk.f32.mxu1 %vm8401_vm0, %v8402_v1  ;;  %6916 = vmatprep.subr.bf16.mxu0 %v8400_v0 }
 0xc95   : > { %6922 = vmatprep.subr.bf16.mxu1 %v8400_v0 }
 0xc98   : > { %v4988_v18 = vpop.f32.mrb[40].mxu1 }
 0xc99   : > { %v4915_v27 = vpop.f32.mrb[44].mxu0  ;;  %v6721_v28 = vpop.f32.mrb[41].mxu1  ;;  %6740 = vmatmul.mubr.msk.f32.vlgmr.msra.gmra.mrb[44].mxu1 %vm2391_vm2, %v4988_v18 }
 0xc9a   : > { %v6716_v29 = vpop.f32.mrb[45].mxu0  ;;  %6735 = vmatmul.mubr.msk.f32.vlgmr.msra.gmra.mrb[48].mxu0 %vm2391_vm2, %v4915_v27  ;;  %6769 = vmatprep.mubr.msk.f32.mxu1 %vm8401_vm0, %v8402_v1 }
 0xc9b   : > { %6750 = vmatprep.mubr.msk.f32.mxu0 %vm8401_vm0, %v8402_v1  ;;  %6918 = vmatpush3.bf16.msra.mxu0 %v6917_v56 }
 0xc9c   : > { %6919 = vmatprep.subr.bf16.mxu0 %v8400_v0 }
 0xc9f   : > { %6921 = vmatpush3.bf16.msra.mxu0 %v6920_v59 }
 0xd64   : > { %v5143_v30 = vpop.f32.mrb[42].mxu1 }
 0xd65   : > { %v5070_v31 = vpop.f32.mrb[46].mxu0  ;;  %v5294_v32 = vsel %vm1451_vm1, %v5143_v30, 0.0  ;;  %v6731_v33 = vpop.f32.mrb[43].mxu1 }
 0xd66   : > { %v5293_v34 = vsel %vm1451_vm1, %v5070_v31, 0.0  ;;  %v6726_v35 = vpop.f32.mrb[47].mxu0 }
 0xd67   : > { %v5295_v36 = vadd.f32 %v5294_v32, %v5293_v34 }
 0xd6c   : > { %v5289_v37 = vpop.f32.mrb[44].mxu1 }
 0xd6d   : > { %v5216_v38 = vpop.f32.mrb[48].mxu0  ;;  %v6741_v39 = vpop.f32.mrb[45].mxu1  ;;  %v5298_v44 = vsel %vm1451_vm1, %v5289_v37, 0.0 }
 0xd6e   : > { %v5296_v40 = vsel %vm1451_vm1, %v5216_v38, 0.0  ;;  %v6736_v41 = vpop.f32.mrb[49].mxu0 }
 0xd6f   : > { %v5297_v42 = vadd.f32 %v5296_v40, %v5295_v36 }
 0xd71   : > { %v5299_v1 = vadd.f32 %v5298_v44, %v5297_v42 }
 0xd73   : > { %v5306_v45 = vadd.f32 %v6161_v43, %v5299_v1 }
 0xd75   : > { %v5307_v46 = vadd.f32 %v5306_v45, %v9306_v47  ;;  %v5422_v47 = vld [vmem:[#allocation35] sm:$0xff] }
 0xd76   : > { %v6923_v62 = vpack.c.bf16 %v5423_v60, %v5422_v47 }
 0xd77   : > { %v5310_v48 = vsel %vm1451_vm1, %v5307_v46, 0.0 }
 0xd78   : > { %5311 = vadd.xlane.f32.xlu0 %v5310_v48  ;;  %6924 = vmatpush3.bf16.msra.mxu1 %v6923_v62 }
 0xd79   : > { %6925 = vmatprep.subr.bf16.mxu1 %v8400_v0 }
 0xd7c   : > { %6927 = vmatpush3.bf16.msra.mxu1 %v6926_v2 }
 0xd7d   : > { %6928 = vmatprep.subr.bf16.mxu1 %v8400_v0 }
 0xd80   : > { %6930 = vmatpush3.bf16.msra.mxu1 %v6929_v5 }
 0xd81   : > { %6931 = vmatprep.subr.bf16.mxu1 %v8400_v0 }
 0xd84   : > { %6933 = vmatpush3.bf16.msra.mxu1 %v6932_v17 }
 0xe05   : > { %v5312_v49 = vpop.xlane.xlu0 %5311 }
 0xe06   : > { %v5313_v50 = vmul.f32 0.03125, %v5312_v49 }
 0xe08   : > { %v5314_v51 = vsub.f32 %v5307_v46, %v5313_v50 }
 0xe0a   : > { %v5315_v52 = vmul.f32 %v5314_v51, %v5314_v51 }
 0xe0c   : > { %v5316_v53 = vsel %vm1451_vm1, %v5315_v52, 0.0 }
 0xe0d   : > { %5317 = vadd.xlane.f32.xlu1 %v5316_v53 }
 0xe9a   : > { %v5318_v6 = vpop.xlane.xlu1 %5317 }
 0xe9b   : > { %v5319_v7 = vmul.f32 0.03125, %v5318_v6 }
 0xe9d   : > { %v5320_v8 = vadd.f32 1e-05, %v5319_v7 }
 0xe9f   : > { %7343 = vrsqrt.f32 %v5320_v8 }
 0xea9   : > { %v7344_v9 = vpop.eup %7343 }
 0xeaa   : > { %v5322_v11 = vmul.f32 %v7344_v9, %v5314_v51 }
 0xeac   : > { %v5329_v13 = vmul.f32 %v6162_v10, %v5322_v11 }
 0xeae   : > { %v5336_v14 = vadd.f32 %v6163_v12, %v5329_v13 }
 0xeb0   : > { %6751 = vmatmul.mubr.msk.f32.vlgmr.msra.gmra.mrb[50].mxu0 %vm1451_vm1, %v5336_v14 }
 0xf83   : > { %v5417_v20 = vpop.f32.mrb[50].mxu0 }
 0xf84   : > { %v5418_v21 = vadd.f32 %v6164_v19, %v5417_v20  ;;  %v6752_v0 = vpop.f32.mrb[51].mxu0 }
 0xf86   : > { %v5421_v22 = vmax.f32 %v5418_v21, 0.0 }
 0xf88   : > { %6770 = vmatmul.mubr.msk.f32.vlgmr.msra.gmra.mrb[46].mxu1 %vm5437_vm3, %v5421_v22 }
0x105b   : > { %v5507_v24 = vpop.f32.mrb[46].mxu1 }
0x105c   : > { %v5508_v25 = vadd.f32 %v6166_v23, %v5507_v24  ;;  %v6771_v26 = vpop.f32.mrb[47].mxu1 }
0x105e   : > { %v5511_v18 = vadd.f32 %v5508_v25, %v5336_v14 }
0x1060   : > { %v5514_v27 = vsel %vm1451_vm1, %v5511_v18, 0.0 }
0x1061   : > { %5515 = vadd.xlane.f32.xlu0 %v5514_v27 }
0x10ee   : > { %v5516_v28 = vpop.xlane.xlu0 %5515 }
0x10ef   : > { %v5517_v29 = vmul.f32 0.03125, %v5516_v28 }
0x10f1   : > { %v5518_v30 = vsub.f32 %v5511_v18, %v5517_v29 }
0x10f3   : > { %v5519_v31 = vmul.f32 %v5518_v30, %v5518_v30 }
0x10f5   : > { %v5520_v32 = vsel %vm1451_vm1, %v5519_v31, 0.0 }
0x10f6   : > { %5521 = vadd.xlane.f32.xlu1 %v5520_v32 }
0x10f7   : > { %8178 = shalt.err (!%p8175_p11)
}
0x10f8   : > { %s8179_s18 = scalar_lea.hbm %s9469_s4, 128  ;;  %s8183_s7 = scalar_lea.hbm %s9694_s5, 256 }
0x10f9   : > { %p8180_p2 = scmp.ne.s32.totalorder %s9469_s4, %s8179_s18  ;;  %p8184_p8 = scmp.lt.u32.totalorder %s9469_s4, %s9694_s5 }
0x10fa   : > { %p8185_p0 = scmp.lt.u32.totalorder %s8183_s7, %s8179_s18  ;;  %p8187_p5 = scmp.lt.u32.totalorder %s8179_s18, %s9469_s4 }
0x10fb   : > { %p8181_p6 = pnand %p8180_p2, %p9695_p3 }
0x10fc   : > { %p8186_p4 = por %p8185_p0, %p8184_p8 }
0x10fd   : > { %p8182_p10 = pneg %p8181_p6 }
0x10fe   : > { %p8188_p7 = por %p8187_p5, %p8186_p4 }
0x1100   : > { %p8189_p1 = pnand %p8188_p7, %p8182_p10 }
0x1102   : > { %8192 = shalt.err (!%p8189_p1)
}
0x1103   : > { %s9696_s11 = sld [smem:[#allocation94_spill]]  ;;  %v6168_v37 = vld [vmem:[#allocation44] ss:$0 sm:$0xff]  ;;  %v6169_v39 = vld [vmem:[#allocation46] ss:$0 sm:$0xff]  ;;  %s1396_s26 = scalar_lea.vmem [#allocation47], %s9082_s20 }
0x1104   : > { %7045 = dma.vmem_to_hbm [thread:$0]  (%p9695_p3), %s5578_s1, 128, %s9469_s4, %s5549_s8  }
0x1105   : > { %s5563_s6 = sshll.u32 %s1396_s26, 4  ;;  %s5544_s4 = scalar_lea.sflag [#allocation4], %s9079_s19  ;;  %s9493_s6 = int_to_ptr.vmem [resolvable:$true] %s5563_s6 }
0x1106   : > { %s8193_s1 = scalar_lea.vmem %s9493_s6, 128  ;;  %s8404_s20 = smov [#allocation47]  }
0x1107   : > { %p8194_p9 = scmp.ne.s32.totalorder %s9493_s6, %s8193_s1  ;;  %s8197_s8 = sshll.u32 %s8404_s20, 4  ;;  %s8198_s8 = int_to_ptr.vmem [resolvable:$false] %s8197_s8 }
0x1108   : > { %s8199_s3 = scalar_lea.vmem %s8198_s8, 256  ;;  %p8200_p11 = scmp.lt.s32.totalorder %s9493_s6, %s8198_s8 }
0x1109   : > { %s9491_s29 = scalar_lea.hbm %s9696_s11, %s6172_s9  ;;  %p8195_p12 = pnand %p8194_p9, %p9695_p3 }
0x110a   : > { %p8201_p2 = scmp.lt.s32.totalorder %s8199_s3, %s8193_s1 }
0x110b   : > { %p8196_p13 = pneg %p8195_p12 }
0x110c   : > { %p8202_p6 = por %p8201_p2, %p8200_p11 }
0x110e   : > { %p8203_p10 = pnand %p8202_p6, %p8196_p13 }
0x1183   : > { %v5522_v33 = vpop.xlane.xlu1 %5521 }
0x1184   : > { %v5523_v34 = vmul.f32 0.03125, %v5522_v33 }
0x1186   : > { %v5524_v35 = vadd.f32 1e-05, %v5523_v34 }
0x1188   : > { %7345 = vrsqrt.f32 %v5524_v35 }
0x1192   : > { %v7346_v36 = vpop.eup %7345 }
0x1193   : > { %v5526_v38 = vmul.f32 %v7346_v36, %v5518_v30 }
0x1195   : > { %v5533_v40 = vmul.f32 %v6168_v37, %v5526_v38 }
0x1197   : > { %v5540_v41 = vadd.f32 %v6169_v39, %v5533_v40 }
0x1199   : > { %5541 = vst.msk [vmem:[%s1396_s26] sm:$0xff] %vm1451_vm1, %v5540_v41 }
0x119a   : > { %8206 = shalt.err (!%p8203_p10)
}
0x119b   : > { %s8207_s19 = scalar_lea.hbm %s9491_s29, 128  ;;  %s8211_s2 = scalar_lea.hbm %s9696_s11, 256 }
0x119c   : > { %p8208_p8 = scmp.ne.s32.totalorder %s9491_s29, %s8207_s19  ;;  %p8212_p5 = scmp.lt.u32.totalorder %s9491_s29, %s9696_s11 }
0x119d   : > { %p8213_p7 = scmp.lt.u32.totalorder %s8211_s2, %s8207_s19  ;;  %p8215_p9 = scmp.lt.u32.totalorder %s8207_s19, %s9491_s29 }
0x119e   : > { %p8209_p0 = pnand %p8208_p8, %p9695_p3 }
0x119f   : > { %p8214_p1 = por %p8213_p7, %p8212_p5 }
0x11a0   : > { %p8210_p4 = pneg %p8209_p0 }
0x11a1   : > { %p8216_p12 = por %p8215_p9, %p8214_p1 }
0x11a3   : > { %p8217_p13 = pnand %p8216_p12, %p8210_p4 }
0x11a5   : > { %8220 = shalt.err (!%p8217_p13)
}
0x11a6   : > { %7044 = dma.vmem_to_hbm [thread:$0]  (%p9695_p3), %s9493_s6, 128, %s9491_s29, %s5544_s4  }
0x11a7 PF: > { %s5589_s9 = sand.u32 1, %s8315_s0   ;;  %p9697_p11 = scmp.ne.s32.totalorder %s9643_s10, 0 }
0x11a8   : > { %p9698_p2 = scmp.ge.s32.totalorder %s8335_s23, 2  ;;  %s5590_s12 = scalar_lea.sflag [#allocation4], %s5589_s9 }
0x11aa   : > { %p7138_p6 = pnand %p9698_p2, %p9697_p11 }
0x11ac   : > { %8306 = dma.done.wait (!%p7138_p6), %s5590_s12, 128  }
0x11ad   : > { %8308 = vsyncadd (!%p7138_p6), %s5590_s12, 4294967168  ;;  %s5599_s18 = scalar_lea.sflag [#allocation49], %s5589_s9 }
0x11ae   : > { %8310 = dma.done.wait (!%p7138_p6), %s5599_s18, 128  }
0x11af   : > { %8312 = vsyncadd (!%p7138_p6), %s5599_s18, 4294967168  ;;  %s97_s23 = sadd.s32 1, %s8335_s23   ;;  %s9699_s0 = smov %s8319_s15 }
0x11b0   : > { %p94_p10 = scmp.ge.s32.totalorder %s97_s23, 4   ;;  %s9700_s15 = smov %s8323_s16 }
0x11b1   : > { %s9701_s16 = smov %s8826_s17  ;;  %s9702_s18 = smov %s8331_s22 }
0x11b2   : > { %s9703_s22 = smov %s9705_s13  ;;  %96 = sbr.rel (!%p94_p10) target bundleno = 92 (0x5c), region = 356 }
0x11b9   :  { %5604 = vsyncpa [#allocation3], 1 }
0x11ba   :  { %5606 = vsyncpa [#allocation3 + $0x1], 1 }
0x11bb   :  { %5607 = vsyncpa [#allocation6], 1 }
0x11bc   :  { %5609 = vsyncpa [#allocation6 + $0x1], 1 }
0x11bd   :  { %5610 = vsyncpa [#allocation9], 1 }
0x11be   :  { %5611 = vsyncpa [#allocation12], 1 }
0x11bf   :  { %5612 = vsyncpa [#allocation15], 1 }
0x11c0   :  { %5613 = vsyncpa [#allocation18], 1 }
0x11c1   :  { %5614 = vsyncpa [#allocation21], 1 }
0x11c2   :  { %5615 = vsyncpa [#allocation24], 1 }
0x11c3   :  { %5616 = vsyncpa [#allocation27], 1 }
0x11c4   :  { %5617 = vsyncpa [#allocation30], 1 }
0x11c5   :  { %5618 = vsyncpa [#allocation33], 1 }
0x11c6   :  { %5619 = vsyncpa [#allocation36], 1 }
0x11c7   :  { %5620 = vsyncpa [#allocation39], 1 }
0x11c8   :  { %5621 = vsyncpa [#allocation42], 1 }
0x11c9   :  { %5622 = vsyncpa [#allocation45], 1 }
0x11ca   :  { %5623 = vsyncpa [#allocation4], 1 }
0x11cb   :  { %5625 = vsyncpa [#allocation4 + $0x1], 1 }
0x11cc   :  { %5626 = vsyncpa [#allocation49], 1 }
0x11cd   :  { %5628 = vsyncpa [#allocation49 + $0x1], 1 }

</bundles_post_ra>
